<compile_context>
chip_gen: v6e
topology: v6e:2x2x1
jax: 0.10.0
libtpu: 0.0.40
codegen_flags: <defaults>
</compile_context>

<pallas_src>
import functools
import math

import jax
import jax.numpy as jnp
from jax.experimental import pallas as pl
from jax.experimental.pallas import tpu as pltpu

# Matmul operand dtype. float32 keeps parity with the PyTorch module and the XLA
# reference below; set to jnp.bfloat16 on v6e/v7x for ~2-4x MXU throughput
# (accumulation is always float32 via preferred_element_type).
MXU_DTYPE = jnp.float32

# Explicit scoped-VMEM budget (blocks here are tiny; raise this together with an
# H-band grid axis for large images -- see TODO below).
_VMEM_LIMIT_BYTES = 32 * 1024 * 1024


def _cparams(*sems):
    return pltpu.CompilerParams(dimension_semantics=sems,
                                vmem_limit_bytes=_VMEM_LIMIT_BYTES)


def _cout_block(cout):
    # 128-wide Cout tiles exactly fill one v5e MXU pass and keep the (Cout, H*W)
    # accumulator small; small Cout stays un-tiled.
    return 128 if cout % 128 == 0 else cout


# --------------------------------------------------------------------------- #
# 3x3 conv (padding=1), optional bias, optional ReLU
# --------------------------------------------------------------------------- #
def _conv3x3_kernel(x_ref, w_ref, b_ref, o_ref, col_ref, *, relu):
    """One fused (Cout_blk, 9*Cin) @ (9*Cin, H*W) MXU matmul per image.

    x_ref  : (1, Cin, H, W)      one image (NCHW block, un-padded)
    w_ref  : (CB, 9*Cin)         weights for this Cout block, K ordered (kh, kw, cin)
    b_ref  : (CB, 1)             bias (zeros when the torch conv has bias=False)
    o_ref  : (1, CB, H*W)        lane-dense output block
    col_ref: VMEM (9*Cin, H*W)   im2col matrix, built once per image
    """
    _, cin, h, w = x_ref.shape

    # Build im2col once per image; reused by every Cout block (grid axis 1).
    # The 1-pixel zero halo is handled here (no wrapper-side jnp.pad HBM pass).
    # TODO(synk): for large images add a halo'd H-band grid axis so this scratch
    # fits v7x's 64 MiB VMEM, and replace the per-row copies with row-band copies.
    @pl.when(pl.program_id(1) == 0)
    def _build_im2col():
        col_ref[...] = jnp.zeros_like(col_ref)
        for kh in range(3):
            for kw in range(3):
                t = kh * 3 + kw
                dr, dc = kh - 1, kw - 1
                c_lo, c_hi = max(0, -dc), min(w, w - dc)
                for r in range(h):
                    sr = r + dr
                    if 0 <= sr < h:          # rows falling in the zero halo stay 0
                        col_ref[t * cin:(t + 1) * cin,
                                r * w + c_lo:r * w + c_hi] = (
                            x_ref[0, :, sr, c_lo + dc:c_hi + dc])

    acc = jnp.dot(w_ref[...], col_ref[...], preferred_element_type=jnp.float32)
    acc = acc + b_ref[...]
    if relu:
        acc = jnp.maximum(acc, 0.0)
    o_ref[0] = acc.astype(o_ref.dtype)


def conv3x3(x, w, b=None, relu=True):
    """Conv2d(Cin, Cout, 3, padding=1) [+ bias] [+ ReLU], NCHW in / NCHW out."""
    n, cin, h, wd = x.shape
    cout = w.shape[0]
    hw = h * wd
    # Pre-flatten the weight to (Cout, 9*Cin); K ordered (kh, kw, cin) = im2col rows.
    w2 = jnp.transpose(w, (0, 2, 3, 1)).reshape(cout, 9 * cin).astype(MXU_DTYPE)
    if b is None:
        b = jnp.zeros((cout,), jnp.float32)
    b2 = jnp.asarray(b, jnp.float32).reshape(cout, 1)
    cb = _cout_block(cout)

    out = pl.pallas_call(
        functools.partial(_conv3x3_kernel, relu=relu),
        out_shape=jax.ShapeDtypeStruct((n, cout, hw), jnp.float32),
        grid=(n, cout // cb),
        in_specs=[
            pl.BlockSpec((1, cin, h, wd), lambda i, j: (i, 0, 0, 0)),
            pl.BlockSpec((cb, 9 * cin), lambda i, j: (j, 0)),
            pl.BlockSpec((cb, 1), lambda i, j: (j, 0)),
        ],
        out_specs=pl.BlockSpec((1, cb, hw), lambda i, j: (i, j, 0)),
        scratch_shapes=[pltpu.VMEM((9 * cin, hw), MXU_DTYPE)],
        compiler_params=_cparams("parallel", "arbitrary"),
    )(x.astype(MXU_DTYPE), w2, b2)
    return out.reshape(n, cout, h, wd)


# --------------------------------------------------------------------------- #
# 1x1 conv family (RDB fuse layer with fused residual, outconv, ConvTranspose)
# --------------------------------------------------------------------------- #
def _matmul_kernel(x_ref, w_ref, b_ref, o_ref):
    acc = jnp.dot(w_ref[...], x_ref[0], preferred_element_type=jnp.float32)
    o_ref[0] = (acc + b_ref[...]).astype(o_ref.dtype)


def _matmul_res_kernel(x_ref, w_ref, b_ref, r_ref, o_ref):
    acc = jnp.dot(w_ref[...], x_ref[0], preferred_element_type=jnp.float32)
    o_ref[0] = (acc + b_ref[...] + r_ref[0]).astype(o_ref.dtype)


def _matmul_conv(x, w2, b=None, residual=None):
    """out[n, co, hw] = sum_ci w2[co, ci] * x[n, ci, hw] (+ bias) (+ residual)."""
    n, cin, h, wd = x.shape
    cout = w2.shape[0]
    hw = h * wd
    xf = x.reshape(n, cin, hw).astype(MXU_DTYPE)
    w2 = w2.astype(MXU_DTYPE)
    if b is None:
        b = jnp.zeros((cout,), jnp.float32)
    b2 = jnp.asarray(b, jnp.float32).reshape(cout, 1)
    cb = _cout_block(cout)

    common = dict(
        out_shape=jax.ShapeDtypeStruct((n, cout, hw), jnp.float32),
        grid=(n, cout // cb),
        out_specs=pl.BlockSpec((1, cb, hw), lambda i, j: (i, j, 0)),
        compiler_params=_cparams("parallel", "parallel"),
    )
    x_spec = pl.BlockSpec((1, cin, hw), lambda i, j: (i, 0, 0))
    w_spec = pl.BlockSpec((cb, cin), lambda i, j: (j, 0))
    b_spec = pl.BlockSpec((cb, 1), lambda i, j: (j, 0))

    if residual is None:
        out = pl.pallas_call(_matmul_kernel,
                             in_specs=[x_spec, w_spec, b_spec],
                             **common)(xf, w2, b2)
    else:
        rf = residual.reshape(n, cout, hw).astype(jnp.float32)
        r_spec = pl.BlockSpec((1, cb, hw), lambda i, j: (i, j, 0))
        out = pl.pallas_call(_matmul_res_kernel,
                             in_specs=[x_spec, w_spec, b_spec, r_spec],
                             **common)(xf, w2, b2, rf)
    return out.reshape(n, cout, h, wd)


def conv1x1(x, w, b=None, residual=None):
    """Conv2d(Cin, Cout, 1) [+ bias] [+ fused residual add]."""
    cout, cin = w.shape[0], w.shape[1]
    return _matmul_conv(x, w.reshape(cout, cin), b, residual)


def conv_transpose2x2(x, w, b):
    """ConvTranspose2d(Cin, Cout, 2, stride=2): the 4 sub-pixel 1x1 convs are packed
    into one lane-dense matmul; the pixel interleave is a cheap reshape/transpose."""
    n, cin, h, wd = x.shape
    cout = w.shape[1]                                           # torch: (Cin, Cout, 2, 2)
    wp = jnp.transpose(w, (2, 3, 1, 0)).reshape(4 * cout, cin)  # rows = (kh, kw, co)
    bp = jnp.tile(b, 4)
    y = _matmul_conv(x, wp, bp)                                 # (N, 4*Cout, H, W)
    y = y.reshape(n, 2, 2, cout, h, wd)
    y = jnp.transpose(y, (0, 3, 4, 1, 5, 2)).reshape(n, cout, 2 * h, 2 * wd)
    return y


def avgpool2(x):
    # TODO(synk): fold the 2x2 average pool into the preceding conv kernel's epilogue
    # to save one HBM round trip; as a pure data-movement/mean op it is left to XLA.
    n, c, h, w = x.shape
    return x.reshape(n, c, h // 2, 2, w // 2, 2).mean(axis=(3, 5))


# --------------------------------------------------------------------------- #
# Pure-XLA reference ops (for the correctness check)
# --------------------------------------------------------------------------- #
def ref_conv3x3(x, w, b=None, relu=True):
    out = jax.lax.conv_general_dilated(x, w, (1, 1), ((1, 1), (1, 1)),
                                       dimension_numbers=("NCHW", "OIHW", "NCHW"))
    if b is not None:
        out = out + b[None, :, None, None]
    return jnp.maximum(out, 0.0) if relu else out


def ref_conv1x1(x, w, b=None, residual=None):
    out = jax.lax.conv_general_dilated(x, w, (1, 1), ((0, 0), (0, 0)),
                                       dimension_numbers=("NCHW", "OIHW", "NCHW"))
    if b is not None:
        out = out + b[None, :, None, None]
    if residual is not None:
        out = out + residual
    return out


def ref_conv_transpose2x2(x, w, b):
    # PyTorch ConvTranspose2d == lhs-dilated conv with the flipped, IO-swapped kernel.
    wf = jnp.transpose(w, (1, 0, 2, 3))[:, :, ::-1, ::-1]
    out = jax.lax.conv_general_dilated(x, wf, (1, 1), ((1, 1), (1, 1)),
                                       lhs_dilation=(2, 2),
                                       dimension_numbers=("NCHW", "OIHW", "NCHW"))
    return out + b[None, :, None, None]


# --------------------------------------------------------------------------- #
# UNet_ND forward (shared between the Pallas path and the XLA reference path)
# --------------------------------------------------------------------------- #
def build_forward(conv3x3_fn, conv1x1_fn, convT_fn):
    def single(p, x):                       # single_conv: Conv3x3 + ReLU
        return conv3x3_fn(x, p["w"], p["b"], relu=True)

    def rdb(p, x):                          # RDB: dense layers + 1x1 fuse + residual
        h = x
        for d in p["dense"]:                # make_dense: Conv3x3(no bias)+ReLU, concat
            y = conv3x3_fn(h, d["w"], None, relu=True)
            h = jnp.concatenate([h, y], axis=1)
        return conv1x1_fn(h, p["w1x1"], None, residual=x)

    def up_add(p, x1, x2):                  # up: ConvTranspose 2x2/s2, pad, skip-add
        y = convT_fn(x1, p["w"], p["b"])
        dy, dx = x2.shape[2] - y.shape[2], x2.shape[3] - y.shape[3]
        if dy or dx:
            y = jnp.pad(y, ((0, 0), (0, 0),
                            (dy // 2, dy - dy // 2), (dx // 2, dx - dx // 2)))
        return x2 + y

    def mainnet(p, x):
        inx = single(p["inc2"], single(p["inc1"], x))
        d1 = avgpool2(inx)
        c1 = rdb(p["rdb1"], single(p["sc1"], d1))
        d2 = avgpool2(c1)
        c2 = rdb(p["rdb2"], single(p["sc2"], d2))
        u1 = up_add(p["up1"], c2, c1)
        c3 = rdb(p["rdb3"], u1)
        u2 = up_add(p["up2"], c3, inx)
        c4 = rdb(p["rdb4"], u2)
        return conv1x1_fn(c4, p["outc"]["w"], p["outc"]["b"])

    def unet(p, x):
        o1 = mainnet(p["main"], x)
        o1 = o1.at[:, :3].add(x)
        o2 = mainnet(p["main2"], jnp.concatenate([x, o1], axis=1))
        o2 = o2.at[:, :3].add(x)
        o2 = o2.at[:, 12:].add(o1)
        return conv3x3_fn(o2, p["out"]["w"], p["out"]["b"], relu=False) + x

    return unet


# --------------------------------------------------------------------------- #
# Deterministic PyTorch-style parameter init
# --------------------------------------------------------------------------- #
class _Keys:
    def __init__(self, key):
        self._k = key

    def __call__(self):
        self._k, k = jax.random.split(self._k)
        return k


def _uniform(key, shape, bound):
    return jax.random.uniform(key, shape, jnp.float32, -bound, bound)


def init_conv(keys, cout, cin, ksize, bias=True):
    bound = 1.0 / math.sqrt(cin * ksize * ksize)
    p = {"w": _uniform(keys(), (cout, cin, ksize, ksize), bound)}
    if bias:
        p["b"] = _uniform(keys(), (cout,), bound)
    return p


def init_single(keys, cin, cout):
    return init_conv(keys, cout, cin, 3, bias=True)


def init_rdb(keys, nch, nlayers, growth):
    dense, c = [], nch
    for _ in range(nlayers):
        dense.append({"w": init_conv(keys, growth, c, 3, bias=False)["w"]})
        c += growth
    w1 = init_conv(keys, nch, c, 1, bias=False)["w"]
    return {"dense": dense, "w1x1": w1}


def init_up(keys, cin):
    cout = cin // 2
    bound = 1.0 / math.sqrt(cout * 4)
    return {"w": _uniform(keys(), (cin, cout, 2, 2), bound),
            "b": _uniform(keys(), (cout,), bound)}


def init_mainnet(keys, in_nc, out_nc):
    return {
        "inc1": init_single(keys, in_nc, 64),
        "inc2": init_single(keys, 64, 64),
        "sc1": init_single(keys, 64, 128),
        "rdb1": init_rdb(keys, 128, 4, 32),
        "sc2": init_single(keys, 128, 256),
        "rdb2": init_rdb(keys, 256, 10, 32),
        "up1": init_up(keys, 256),
        "rdb3": init_rdb(keys, 128, 6, 32),
        "up2": init_up(keys, 128),
        "rdb4": init_rdb(keys, 64, 4, 32),
        "outc": init_conv(keys, out_nc, 64, 1, bias=True),
    }


def init_unet(keys):
    return {"main": init_mainnet(keys, 3, 12),
            "main2": init_mainnet(keys, 15, 24),
            "out": init_conv(keys, 3, 24, 3, bias=True)}


if __name__ == "__main__":
    keys = _Keys(jax.random.PRNGKey(0))
    params = init_unet(keys)
    x = jax.random.normal(keys(), (2, 3, 16, 16), dtype=jnp.float32)

    unet_pallas = build_forward(conv3x3, conv1x1, conv_transpose2x2)
    unet_ref = build_forward(ref_conv3x3, ref_conv1x1, ref_conv_transpose2x2)

    out = jax.block_until_ready(unet_pallas(params, x))
    assert out.shape == (2, 3, 16, 16), out.shape
    assert out.dtype == jnp.float32

    ref = jax.block_until_ready(unet_ref(params, x))
    max_err = float(jnp.max(jnp.abs(out - ref)))
    assert jnp.allclose(out, ref, atol=2e-3, rtol=2e-3), f"max abs err {max_err}"

    print("KERNEL_OK")
</pallas_src>

<mosaic_0001>
module attributes {stable_mosaic.version = 11 : i64} {
  func.func @_conv3x3_kernel(%arg0: i32, %arg1: i32, %arg2: memref<1x3x16x16xf32, #tpu.memory_space<vmem>>, %arg3: memref<64x27xf32, #tpu.memory_space<vmem>>, %arg4: memref<64x1xf32, #tpu.memory_space<vmem>>, %arg5: memref<1x64x256xf32, #tpu.memory_space<vmem>>, %arg6: memref<27x256xf32, #tpu.memory_space<vmem>>) attributes {dimension_semantics = [#tpu.dimension_semantics<parallel>, #tpu.dimension_semantics<arbitrary>], iteration_bounds = array<i64: 2, 1>, scalar_prefetch = 0 : i64, scratch_operands = 1 : i64, tpu.core_type = #tpu.core_type<tc>, window_params = [{transform_indices = @transform_0, window_bounds = array<i64: 1, 3, 16, 16>}, {transform_indices = @transform_1, window_bounds = array<i64: 64, 27>}, {transform_indices = @transform_2, window_bounds = array<i64: 64, 1>}, {transform_indices = @transform_3, window_bounds = array<i64: 1, 64, 256>}]} {
    %c0_i32 = arith.constant 0 : i32
    %0 = arith.cmpi eq, %arg1, %c0_i32 : i32
    %1 = arith.extui %0 : i1 to i32
    %c0_i32_0 = arith.constant 0 : i32
    %2 = arith.cmpi ne, %1, %c0_i32_0 : i32
    scf.if %2 {
      %cst_10 = arith.constant 0.000000e+00 : f32
      %14 = vector.broadcast %cst_10 : f32 to vector<27x256xf32>
      %c0_11 = arith.constant 0 : index
      %c0_12 = arith.constant 0 : index
      %15 = vector.load %arg6[%c0_11, %c0_12] : memref<27x256xf32, #tpu.memory_space<vmem>>, vector<27x256xf32>
      tpu.vector_store %arg6[%c0_11, %c0_12], %14 {strides = array<i32>} : memref<27x256xf32, #tpu.memory_space<vmem>>, vector<27x256xf32>,
      %c0_13 = arith.constant 0 : index
      %c0_14 = arith.constant 0 : index
      %c0_15 = arith.constant 0 : index
      %c0_16 = arith.constant 0 : index
      %16 = vector.load %arg2[%c0_13, %c0_14, %c0_15, %c0_16] : memref<1x3x16x16xf32, #tpu.memory_space<vmem>>, vector<1x3x1x15xf32>
      %17 = vector.shape_cast %16 : vector<1x3x1x15xf32> to vector<3x15xf32>
      %c0_17 = arith.constant 0 : index
      %c17 = arith.constant 17 : index
      %18 = vector.load %arg6[%c0_17, %c17] : memref<27x256xf32, #tpu.memory_space<vmem>>, vector<3x15xf32>
      tpu.vector_store %arg6[%c0_17, %c17], %17 {strides = array<i32>} : memref<27x256xf32, #tpu.memory_space<vmem>>, vector<3x15xf32>,
      %c0_18 = arith.constant 0 : index
      %c0_19 = arith.constant 0 : index
      %c1 = arith.constant 1 : index
      %c0_20 = arith.constant 0 : index
      %19 = vector.load %arg2[%c0_18, %c0_19, %c1, %c0_20] : memref<1x3x16x16xf32, #tpu.memory_space<vmem>>, vector<1x3x1x15xf32>
      %20 = vector.shape_cast %19 : vector<1x3x1x15xf32> to vector<3x15xf32>
      %c0_21 = arith.constant 0 : index
      %c33 = arith.constant 33 : index
      %21 = vector.load %arg6[%c0_21, %c33] : memref<27x256xf32, #tpu.memory_space<vmem>>, vector<3x15xf32>
      tpu.vector_store %arg6[%c0_21, %c33], %20 {strides = array<i32>} : memref<27x256xf32, #tpu.memory_space<vmem>>, vector<3x15xf32>,
      %c0_22 = arith.constant 0 : index
      %c0_23 = arith.constant 0 : index
      %c2 = arith.constant 2 : index
      %c0_24 = arith.constant 0 : index
      %22 = vector.load %arg2[%c0_22, %c0_23, %c2, %c0_24] : memref<1x3x16x16xf32, #tpu.memory_space<vmem>>, vector<1x3x1x15xf32>
      %23 = vector.shape_cast %22 : vector<1x3x1x15xf32> to vector<3x15xf32>
      %c0_25 = arith.constant 0 : index
      %c49 = arith.constant 49 : index
      %24 = vector.load %arg6[%c0_25, %c49] : memref<27x256xf32, #tpu.memory_space<vmem>>, vector<3x15xf32>
      tpu.vector_store %arg6[%c0_25, %c49], %23 {strides = array<i32>} : memref<27x256xf32, #tpu.memory_space<vmem>>, vector<3x15xf32>,
      %c0_26 = arith.constant 0 : index
      %c0_27 = arith.constant 0 : index
      %c3 = arith.constant 3 : index
      %c0_28 = arith.constant 0 : index
      %25 = vector.load %arg2[%c0_26, %c0_27, %c3, %c0_28] : memref<1x3x16x16xf32, #tpu.memory_space<vmem>>, vector<1x3x1x15xf32>
      %26 = vector.shape_cast %25 : vector<1x3x1x15xf32> to vector<3x15xf32>
      %c0_29 = arith.constant 0 : index
      %c65 = arith.constant 65 : index
      %27 = vector.load %arg6[%c0_29, %c65] : memref<27x256xf32, #tpu.memory_space<vmem>>, vector<3x15xf32>
      tpu.vector_store %arg6[%c0_29, %c65], %26 {strides = array<i32>} : memref<27x256xf32, #tpu.memory_space<vmem>>, vector<3x15xf32>,
      %c0_30 = arith.constant 0 : index
      %c0_31 = arith.constant 0 : index
      %c4 = arith.constant 4 : index
      %c0_32 = arith.constant 0 : index
      %28 = vector.load %arg2[%c0_30, %c0_31, %c4, %c0_32] : memref<1x3x16x16xf32, #tpu.memory_space<vmem>>, vector<1x3x1x15xf32>
      %29 = vector.shape_cast %28 : vector<1x3x1x15xf32> to vector<3x15xf32>
      %c0_33 = arith.constant 0 : index
      %c81 = arith.constant 81 : index
      %30 = vector.load %arg6[%c0_33, %c81] : memref<27x256xf32, #tpu.memory_space<vmem>>, vector<3x15xf32>
      tpu.vector_store %arg6[%c0_33, %c81], %29 {strides = array<i32>} : memref<27x256xf32, #tpu.memory_space<vmem>>, vector<3x15xf32>,
      %c0_34 = arith.constant 0 : index
      %c0_35 = arith.constant 0 : index
      %c5 = arith.constant 5 : index
      %c0_36 = arith.constant 0 : index
      %31 = vector.load %arg2[%c0_34, %c0_35, %c5, %c0_36] : memref<1x3x16x16xf32, #tpu.memory_space<vmem>>, vector<1x3x1x15xf32>
      %32 = vector.shape_cast %31 : vector<1x3x1x15xf32> to vector<3x15xf32>
      %c0_37 = arith.constant 0 : index
      %c97 = arith.constant 97 : index
      %33 = vector.load %arg6[%c0_37, %c97] : memref<27x256xf32, #tpu.memory_space<vmem>>, vector<3x15xf32>
      tpu.vector_store %arg6[%c0_37, %c97], %32 {strides = array<i32>} : memref<27x256xf32, #tpu.memory_space<vmem>>, vector<3x15xf32>,
      %c0_38 = arith.constant 0 : index
      %c0_39 = arith.constant 0 : index
      %c6 = arith.constant 6 : index
      %c0_40 = arith.constant 0 : index
      %34 = vector.load %arg2[%c0_38, %c0_39, %c6, %c0_40] : memref<1x3x16x16xf32, #tpu.memory_space<vmem>>, vector<1x3x1x15xf32>
      %35 = vector.shape_cast %34 : vector<1x3x1x15xf32> to vector<3x15xf32>
      %c0_41 = arith.constant 0 : index
      %c113 = arith.constant 113 : index
      %36 = vector.load %arg6[%c0_41, %c113] : memref<27x256xf32, #tpu.memory_space<vmem>>, vector<3x15xf32>
      tpu.vector_store %arg6[%c0_41, %c113], %35 {strides = array<i32>} : memref<27x256xf32, #tpu.memory_space<vmem>>, vector<3x15xf32>,
      %c0_42 = arith.constant 0 : index
      %c0_43 = arith.constant 0 : index
      %c7 = arith.constant 7 : index
      %c0_44 = arith.constant 0 : index
      %37 = vector.load %arg2[%c0_42, %c0_43, %c7, %c0_44] : memref<1x3x16x16xf32, #tpu.memory_space<vmem>>, vector<1x3x1x15xf32>
      %38 = vector.shape_cast %37 : vector<1x3x1x15xf32> to vector<3x15xf32>
      %c0_45 = arith.constant 0 : index
      %c129 = arith.constant 129 : index
      %39 = vector.load %arg6[%c0_45, %c129] : memref<27x256xf32, #tpu.memory_space<vmem>>, vector<3x15xf32>
      tpu.vector_store %arg6[%c0_45, %c129], %38 {strides = array<i32>} : memref<27x256xf32, #tpu.memory_space<vmem>>, vector<3x15xf32>,
      %c0_46 = arith.constant 0 : index
      %c0_47 = arith.constant 0 : index
      %c8 = arith.constant 8 : index
      %c0_48 = arith.constant 0 : index
      %40 = vector.load %arg2[%c0_46, %c0_47, %c8, %c0_48] : memref<1x3x16x16xf32, #tpu.memory_space<vmem>>, vector<1x3x1x15xf32>
      %41 = vector.shape_cast %40 : vector<1x3x1x15xf32> to vector<3x15xf32>
      %c0_49 = arith.constant 0 : index
      %c145 = arith.constant 145 : index
      %42 = vector.load %arg6[%c0_49, %c145] : memref<27x256xf32, #tpu.memory_space<vmem>>, vector<3x15xf32>
      tpu.vector_store %arg6[%c0_49, %c145], %41 {strides = array<i32>} : memref<27x256xf32, #tpu.memory_space<vmem>>, vector<3x15xf32>,
      %c0_50 = arith.constant 0 : index
      %c0_51 = arith.constant 0 : index
      %c9 = arith.constant 9 : index
      %c0_52 = arith.constant 0 : index
      %43 = vector.load %arg2[%c0_50, %c0_51, %c9, %c0_52] : memref<1x3x16x16xf32, #tpu.memory_space<vmem>>, vector<1x3x1x15xf32>
      %44 = vector.shape_cast %43 : vector<1x3x1x15xf32> to vector<3x15xf32>
      %c0_53 = arith.constant 0 : index
      %c161 = arith.constant 161 : index
      %45 = vector.load %arg6[%c0_53, %c161] : memref<27x256xf32, #tpu.memory_space<vmem>>, vector<3x15xf32>
      tpu.vector_store %arg6[%c0_53, %c161], %44 {strides = array<i32>} : memref<27x256xf32, #tpu.memory_space<vmem>>, vector<3x15xf32>,
      %c0_54 = arith.constant 0 : index
      %c0_55 = arith.constant 0 : index
      %c10 = arith.constant 10 : index
      %c0_56 = arith.constant 0 : index
      %46 = vector.load %arg2[%c0_54, %c0_55, %c10, %c0_56] : memref<1x3x16x16xf32, #tpu.memory_space<vmem>>, vector<1x3x1x15xf32>
      %47 = vector.shape_cast %46 : vector<1x3x1x15xf32> to vector<3x15xf32>
      %c0_57 = arith.constant 0 : index
      %c177 = arith.constant 177 : index
      %48 = vector.load %arg6[%c0_57, %c177] : memref<27x256xf32, #tpu.memory_space<vmem>>, vector<3x15xf32>
      tpu.vector_store %arg6[%c0_57, %c177], %47 {strides = array<i32>} : memref<27x256xf32, #tpu.memory_space<vmem>>, vector<3x15xf32>,
      %c0_58 = arith.constant 0 : index
      %c0_59 = arith.constant 0 : index
      %c11 = arith.constant 11 : index
      %c0_60 = arith.constant 0 : index
      %49 = vector.load %arg2[%c0_58, %c0_59, %c11, %c0_60] : memref<1x3x16x16xf32, #tpu.memory_space<vmem>>, vector<1x3x1x15xf32>
      %50 = vector.shape_cast %49 : vector<1x3x1x15xf32> to vector<3x15xf32>
      %c0_61 = arith.constant 0 : index
      %c193 = arith.constant 193 : index
      %51 = vector.load %arg6[%c0_61, %c193] : memref<27x256xf32, #tpu.memory_space<vmem>>, vector<3x15xf32>
      tpu.vector_store %arg6[%c0_61, %c193], %50 {strides = array<i32>} : memref<27x256xf32, #tpu.memory_space<vmem>>, vector<3x15xf32>,
      %c0_62 = arith.constant 0 : index
      %c0_63 = arith.constant 0 : index
      %c12 = arith.constant 12 : index
      %c0_64 = arith.constant 0 : index
      %52 = vector.load %arg2[%c0_62, %c0_63, %c12, %c0_64] : memref<1x3x16x16xf32, #tpu.memory_space<vmem>>, vector<1x3x1x15xf32>
      %53 = vector.shape_cast %52 : vector<1x3x1x15xf32> to vector<3x15xf32>
      %c0_65 = arith.constant 0 : index
      %c209 = arith.constant 209 : index
      %54 = vector.load %arg6[%c0_65, %c209] : memref<27x256xf32, #tpu.memory_space<vmem>>, vector<3x15xf32>
      tpu.vector_store %arg6[%c0_65, %c209], %53 {strides = array<i32>} : memref<27x256xf32, #tpu.memory_space<vmem>>, vector<3x15xf32>,
      %c0_66 = arith.constant 0 : index
      %c0_67 = arith.constant 0 : index
      %c13 = arith.constant 13 : index
      %c0_68 = arith.constant 0 : index
      %55 = vector.load %arg2[%c0_66, %c0_67, %c13, %c0_68] : memref<1x3x16x16xf32, #tpu.memory_space<vmem>>, vector<1x3x1x15xf32>
      %56 = vector.shape_cast %55 : vector<1x3x1x15xf32> to vector<3x15xf32>
      %c0_69 = arith.constant 0 : index
      %c225 = arith.constant 225 : index
      %57 = vector.load %arg6[%c0_69, %c225] : memref<27x256xf32, #tpu.memory_space<vmem>>, vector<3x15xf32>
      tpu.vector_store %arg6[%c0_69, %c225], %56 {strides = array<i32>} : memref<27x256xf32, #tpu.memory_space<vmem>>, vector<3x15xf32>,
      %c0_70 = arith.constant 0 : index
      %c0_71 = arith.constant 0 : index
      %c14 = arith.constant 14 : index
      %c0_72 = arith.constant 0 : index
      %58 = vector.load %arg2[%c0_70, %c0_71, %c14, %c0_72] : memref<1x3x16x16xf32, #tpu.memory_space<vmem>>, vector<1x3x1x15xf32>
      %59 = vector.shape_cast %58 : vector<1x3x1x15xf32> to vector<3x15xf32>
      %c0_73 = arith.constant 0 : index
      %c241 = arith.constant 241 : index
      %60 = vector.load %arg6[%c0_73, %c241] : memref<27x256xf32, #tpu.memory_space<vmem>>, vector<3x15xf32>
      tpu.vector_store %arg6[%c0_73, %c241], %59 {strides = array<i32>} : memref<27x256xf32, #tpu.memory_space<vmem>>, vector<3x15xf32>,
      %c0_74 = arith.constant 0 : index
      %c0_75 = arith.constant 0 : index
      %c0_76 = arith.constant 0 : index
      %c0_77 = arith.constant 0 : index
      %61 = vector.load %arg2[%c0_74, %c0_75, %c0_76, %c0_77] : memref<1x3x16x16xf32, #tpu.memory_space<vmem>>, vector<1x3x1x16xf32>
      %62 = vector.shape_cast %61 : vector<1x3x1x16xf32> to vector<3x16xf32>
      %c3_78 = arith.constant 3 : index
      %c16 = arith.constant 16 : index
      %63 = vector.load %arg6[%c3_78, %c16] : memref<27x256xf32, #tpu.memory_space<vmem>>, vector<3x16xf32>
      tpu.vector_store %arg6[%c3_78, %c16], %62 {strides = array<i32>} : memref<27x256xf32, #tpu.memory_space<vmem>>, vector<3x16xf32>,
      %c0_79 = arith.constant 0 : index
      %c0_80 = arith.constant 0 : index
      %c1_81 = arith.constant 1 : index
      %c0_82 = arith.constant 0 : index
      %64 = vector.load %arg2[%c0_79, %c0_80, %c1_81, %c0_82] : memref<1x3x16x16xf32, #tpu.memory_space<vmem>>, vector<1x3x1x16xf32>
      %65 = vector.shape_cast %64 : vector<1x3x1x16xf32> to vector<3x16xf32>
      %c3_83 = arith.constant 3 : index
      %c32 = arith.constant 32 : index
      %66 = vector.load %arg6[%c3_83, %c32] : memref<27x256xf32, #tpu.memory_space<vmem>>, vector<3x16xf32>
      tpu.vector_store %arg6[%c3_83, %c32], %65 {strides = array<i32>} : memref<27x256xf32, #tpu.memory_space<vmem>>, vector<3x16xf32>,
      %c0_84 = arith.constant 0 : index
      %c0_85 = arith.constant 0 : index
      %c2_86 = arith.constant 2 : index
      %c0_87 = arith.constant 0 : index
      %67 = vector.load %arg2[%c0_84, %c0_85, %c2_86, %c0_87] : memref<1x3x16x16xf32, #tpu.memory_space<vmem>>, vector<1x3x1x16xf32>
      %68 = vector.shape_cast %67 : vector<1x3x1x16xf32> to vector<3x16xf32>
      %c3_88 = arith.constant 3 : index
      %c48 = arith.constant 48 : index
      %69 = vector.load %arg6[%c3_88, %c48] : memref<27x256xf32, #tpu.memory_space<vmem>>, vector<3x16xf32>
      tpu.vector_store %arg6[%c3_88, %c48], %68 {strides = array<i32>} : memref<27x256xf32, #tpu.memory_space<vmem>>, vector<3x16xf32>,
      %c0_89 = arith.constant 0 : index
      %c0_90 = arith.constant 0 : index
      %c3_91 = arith.constant 3 : index
      %c0_92 = arith.constant 0 : index
      %70 = vector.load %arg2[%c0_89, %c0_90, %c3_91, %c0_92] : memref<1x3x16x16xf32, #tpu.memory_space<vmem>>, vector<1x3x1x16xf32>
      %71 = vector.shape_cast %70 : vector<1x3x1x16xf32> to vector<3x16xf32>
      %c3_93 = arith.constant 3 : index
      %c64 = arith.constant 64 : index
      %72 = vector.load %arg6[%c3_93, %c64] : memref<27x256xf32, #tpu.memory_space<vmem>>, vector<3x16xf32>
      tpu.vector_store %arg6[%c3_93, %c64], %71 {strides = array<i32>} : memref<27x256xf32, #tpu.memory_space<vmem>>, vector<3x16xf32>,
      %c0_94 = arith.constant 0 : index
      %c0_95 = arith.constant 0 : index
      %c4_96 = arith.constant 4 : index
      %c0_97 = arith.constant 0 : index
      %73 = vector.load %arg2[%c0_94, %c0_95, %c4_96, %c0_97] : memref<1x3x16x16xf32, #tpu.memory_space<vmem>>, vector<1x3x1x16xf32>
      %74 = vector.shape_cast %73 : vector<1x3x1x16xf32> to vector<3x16xf32>
      %c3_98 = arith.constant 3 : index
      %c80 = arith.constant 80 : index
      %75 = vector.load %arg6[%c3_98, %c80] : memref<27x256xf32, #tpu.memory_space<vmem>>, vector<3x16xf32>
      tpu.vector_store %arg6[%c3_98, %c80], %74 {strides = array<i32>} : memref<27x256xf32, #tpu.memory_space<vmem>>, vector<3x16xf32>,
      %c0_99 = arith.constant 0 : index
      %c0_100 = arith.constant 0 : index
      %c5_101 = arith.constant 5 : index
      %c0_102 = arith.constant 0 : index
      %76 = vector.load %arg2[%c0_99, %c0_100, %c5_101, %c0_102] : memref<1x3x16x16xf32, #tpu.memory_space<vmem>>, vector<1x3x1x16xf32>
      %77 = vector.shape_cast %76 : vector<1x3x1x16xf32> to vector<3x16xf32>
      %c3_103 = arith.constant 3 : index
      %c96 = arith.constant 96 : index
      %78 = vector.load %arg6[%c3_103, %c96] : memref<27x256xf32, #tpu.memory_space<vmem>>, vector<3x16xf32>
      tpu.vector_store %arg6[%c3_103, %c96], %77 {strides = array<i32>} : memref<27x256xf32, #tpu.memory_space<vmem>>, vector<3x16xf32>,
      %c0_104 = arith.constant 0 : index
      %c0_105 = arith.constant 0 : index
      %c6_106 = arith.constant 6 : index
      %c0_107 = arith.constant 0 : index
      %79 = vector.load %arg2[%c0_104, %c0_105, %c6_106, %c0_107] : memref<1x3x16x16xf32, #tpu.memory_space<vmem>>, vector<1x3x1x16xf32>
      %80 = vector.shape_cast %79 : vector<1x3x1x16xf32> to vector<3x16xf32>
      %c3_108 = arith.constant 3 : index
      %c112 = arith.constant 112 : index
      %81 = vector.load %arg6[%c3_108, %c112] : memref<27x256xf32, #tpu.memory_space<vmem>>, vector<3x16xf32>
      tpu.vector_store %arg6[%c3_108, %c112], %80 {strides = array<i32>} : memref<27x256xf32, #tpu.memory_space<vmem>>, vector<3x16xf32>,
      %c0_109 = arith.constant 0 : index
      %c0_110 = arith.constant 0 : index
      %c7_111 = arith.constant 7 : index
      %c0_112 = arith.constant 0 : index
      %82 = vector.load %arg2[%c0_109, %c0_110, %c7_111, %c0_112] : memref<1x3x16x16xf32, #tpu.memory_space<vmem>>, vector<1x3x1x16xf32>
      %83 = vector.shape_cast %82 : vector<1x3x1x16xf32> to vector<3x16xf32>
      %c3_113 = arith.constant 3 : index
      %c128 = arith.constant 128 : index
      %84 = vector.load %arg6[%c3_113, %c128] : memref<27x256xf32, #tpu.memory_space<vmem>>, vector<3x16xf32>
      tpu.vector_store %arg6[%c3_113, %c128], %83 {strides = array<i32>} : memref<27x256xf32, #tpu.memory_space<vmem>>, vector<3x16xf32>,
      %c0_114 = arith.constant 0 : index
      %c0_115 = arith.constant 0 : index
      %c8_116 = arith.constant 8 : index
      %c0_117 = arith.constant 0 : index
      %85 = vector.load %arg2[%c0_114, %c0_115, %c8_116, %c0_117] : memref<1x3x16x16xf32, #tpu.memory_space<vmem>>, vector<1x3x1x16xf32>
      %86 = vector.shape_cast %85 : vector<1x3x1x16xf32> to vector<3x16xf32>
      %c3_118 = arith.constant 3 : index
      %c144 = arith.constant 144 : index
      %87 = vector.load %arg6[%c3_118, %c144] : memref<27x256xf32, #tpu.memory_space<vmem>>, vector<3x16xf32>
      tpu.vector_store %arg6[%c3_118, %c144], %86 {strides = array<i32>} : memref<27x256xf32, #tpu.memory_space<vmem>>, vector<3x16xf32>,
      %c0_119 = arith.constant 0 : index
      %c0_120 = arith.constant 0 : index
      %c9_121 = arith.constant 9 : index
      %c0_122 = arith.constant 0 : index
      %88 = vector.load %arg2[%c0_119, %c0_120, %c9_121, %c0_122] : memref<1x3x16x16xf32, #tpu.memory_space<vmem>>, vector<1x3x1x16xf32>
      %89 = vector.shape_cast %88 : vector<1x3x1x16xf32> to vector<3x16xf32>
      %c3_123 = arith.constant 3 : index
      %c160 = arith.constant 160 : index
      %90 = vector.load %arg6[%c3_123, %c160] : memref<27x256xf32, #tpu.memory_space<vmem>>, vector<3x16xf32>
      tpu.vector_store %arg6[%c3_123, %c160], %89 {strides = array<i32>} : memref<27x256xf32, #tpu.memory_space<vmem>>, vector<3x16xf32>,
      %c0_124 = arith.constant 0 : index
      %c0_125 = arith.constant 0 : index
      %c10_126 = arith.constant 10 : index
      %c0_127 = arith.constant 0 : index
      %91 = vector.load %arg2[%c0_124, %c0_125, %c10_126, %c0_127] : memref<1x3x16x16xf32, #tpu.memory_space<vmem>>, vector<1x3x1x16xf32>
      %92 = vector.shape_cast %91 : vector<1x3x1x16xf32> to vector<3x16xf32>
      %c3_128 = arith.constant 3 : index
      %c176 = arith.constant 176 : index
      %93 = vector.load %arg6[%c3_128, %c176] : memref<27x256xf32, #tpu.memory_space<vmem>>, vector<3x16xf32>
      tpu.vector_store %arg6[%c3_128, %c176], %92 {strides = array<i32>} : memref<27x256xf32, #tpu.memory_space<vmem>>, vector<3x16xf32>,
      %c0_129 = arith.constant 0 : index
      %c0_130 = arith.constant 0 : index
      %c11_131 = arith.constant 11 : index
      %c0_132 = arith.constant 0 : index
      %94 = vector.load %arg2[%c0_129, %c0_130, %c11_131, %c0_132] : memref<1x3x16x16xf32, #tpu.memory_space<vmem>>, vector<1x3x1x16xf32>
      %95 = vector.shape_cast %94 : vector<1x3x1x16xf32> to vector<3x16xf32>
      %c3_133 = arith.constant 3 : index
      %c192 = arith.constant 192 : index
      %96 = vector.load %arg6[%c3_133, %c192] : memref<27x256xf32, #tpu.memory_space<vmem>>, vector<3x16xf32>
      tpu.vector_store %arg6[%c3_133, %c192], %95 {strides = array<i32>} : memref<27x256xf32, #tpu.memory_space<vmem>>, vector<3x16xf32>,
      %c0_134 = arith.constant 0 : index
      %c0_135 = arith.constant 0 : index
      %c12_136 = arith.constant 12 : index
      %c0_137 = arith.constant 0 : index
      %97 = vector.load %arg2[%c0_134, %c0_135, %c12_136, %c0_137] : memref<1x3x16x16xf32, #tpu.memory_space<vmem>>, vector<1x3x1x16xf32>
      %98 = vector.shape_cast %97 : vector<1x3x1x16xf32> to vector<3x16xf32>
      %c3_138 = arith.constant 3 : index
      %c208 = arith.constant 208 : index
      %99 = vector.load %arg6[%c3_138, %c208] : memref<27x256xf32, #tpu.memory_space<vmem>>, vector<3x16xf32>
      tpu.vector_store %arg6[%c3_138, %c208], %98 {strides = array<i32>} : memref<27x256xf32, #tpu.memory_space<vmem>>, vector<3x16xf32>,
      %c0_139 = arith.constant 0 : index
      %c0_140 = arith.constant 0 : index
      %c13_141 = arith.constant 13 : index
      %c0_142 = arith.constant 0 : index
      %100 = vector.load %arg2[%c0_139, %c0_140, %c13_141, %c0_142] : memref<1x3x16x16xf32, #tpu.memory_space<vmem>>, vector<1x3x1x16xf32>
      %101 = vector.shape_cast %100 : vector<1x3x1x16xf32> to vector<3x16xf32>
      %c3_143 = arith.constant 3 : index
      %c224 = arith.constant 224 : index
      %102 = vector.load %arg6[%c3_143, %c224] : memref<27x256xf32, #tpu.memory_space<vmem>>, vector<3x16xf32>
      tpu.vector_store %arg6[%c3_143, %c224], %101 {strides = array<i32>} : memref<27x256xf32, #tpu.memory_space<vmem>>, vector<3x16xf32>,
      %c0_144 = arith.constant 0 : index
      %c0_145 = arith.constant 0 : index
      %c14_146 = arith.constant 14 : index
      %c0_147 = arith.constant 0 : index
      %103 = vector.load %arg2[%c0_144, %c0_145, %c14_146, %c0_147] : memref<1x3x16x16xf32, #tpu.memory_space<vmem>>, vector<1x3x1x16xf32>
      %104 = vector.shape_cast %103 : vector<1x3x1x16xf32> to vector<3x16xf32>
      %c3_148 = arith.constant 3 : index
      %c240 = arith.constant 240 : index
      %105 = vector.load %arg6[%c3_148, %c240] : memref<27x256xf32, #tpu.memory_space<vmem>>, vector<3x16xf32>
      tpu.vector_store %arg6[%c3_148, %c240], %104 {strides = array<i32>} : memref<27x256xf32, #tpu.memory_space<vmem>>, vector<3x16xf32>,
      %c0_149 = arith.constant 0 : index
      %c0_150 = arith.constant 0 : index
      %c0_151 = arith.constant 0 : index
      %c1_152 = arith.constant 1 : index
      %106 = vector.load %arg2[%c0_149, %c0_150, %c0_151, %c1_152] : memref<1x3x16x16xf32, #tpu.memory_space<vmem>>, vector<1x3x1x15xf32>
      %107 = vector.shape_cast %106 : vector<1x3x1x15xf32> to vector<3x15xf32>
      %c6_153 = arith.constant 6 : index
      %c16_154 = arith.constant 16 : index
      %108 = vector.load %arg6[%c6_153, %c16_154] : memref<27x256xf32, #tpu.memory_space<vmem>>, vector<3x15xf32>
      tpu.vector_store %arg6[%c6_153, %c16_154], %107 {strides = array<i32>} : memref<27x256xf32, #tpu.memory_space<vmem>>, vector<3x15xf32>,
      %c0_155 = arith.constant 0 : index
      %c0_156 = arith.constant 0 : index
      %c1_157 = arith.constant 1 : index
      %c1_158 = arith.constant 1 : index
      %109 = vector.load %arg2[%c0_155, %c0_156, %c1_157, %c1_158] : memref<1x3x16x16xf32, #tpu.memory_space<vmem>>, vector<1x3x1x15xf32>
      %110 = vector.shape_cast %109 : vector<1x3x1x15xf32> to vector<3x15xf32>
      %c6_159 = arith.constant 6 : index
      %c32_160 = arith.constant 32 : index
      %111 = vector.load %arg6[%c6_159, %c32_160] : memref<27x256xf32, #tpu.memory_space<vmem>>, vector<3x15xf32>
      tpu.vector_store %arg6[%c6_159, %c32_160], %110 {strides = array<i32>} : memref<27x256xf32, #tpu.memory_space<vmem>>, vector<3x15xf32>,
      %c0_161 = arith.constant 0 : index
      %c0_162 = arith.constant 0 : index
      %c2_163 = arith.constant 2 : index
      %c1_164 = arith.constant 1 : index
      %112 = vector.load %arg2[%c0_161, %c0_162, %c2_163, %c1_164] : memref<1x3x16x16xf32, #tpu.memory_space<vmem>>, vector<1x3x1x15xf32>
      %113 = vector.shape_cast %112 : vector<1x3x1x15xf32> to vector<3x15xf32>
      %c6_165 = arith.constant 6 : index
      %c48_166 = arith.constant 48 : index
      %114 = vector.load %arg6[%c6_165, %c48_166] : memref<27x256xf32, #tpu.memory_space<vmem>>, vector<3x15xf32>
      tpu.vector_store %arg6[%c6_165, %c48_166], %113 {strides = array<i32>} : memref<27x256xf32, #tpu.memory_space<vmem>>, vector<3x15xf32>,
      %c0_167 = arith.constant 0 : index
      %c0_168 = arith.constant 0 : index
      %c3_169 = arith.constant 3 : index
      %c1_170 = arith.constant 1 : index
      %115 = vector.load %arg2[%c0_167, %c0_168, %c3_169, %c1_170] : memref<1x3x16x16xf32, #tpu.memory_space<vmem>>, vector<1x3x1x15xf32>
      %116 = vector.shape_cast %115 : vector<1x3x1x15xf32> to vector<3x15xf32>
      %c6_171 = arith.constant 6 : index
      %c64_172 = arith.constant 64 : index
      %117 = vector.load %arg6[%c6_171, %c64_172] : memref<27x256xf32, #tpu.memory_space<vmem>>, vector<3x15xf32>
      tpu.vector_store %arg6[%c6_171, %c64_172], %116 {strides = array<i32>} : memref<27x256xf32, #tpu.memory_space<vmem>>, vector<3x15xf32>,
      %c0_173 = arith.constant 0 : index
      %c0_174 = arith.constant 0 : index
      %c4_175 = arith.constant 4 : index
      %c1_176 = arith.constant 1 : index
      %118 = vector.load %arg2[%c0_173, %c0_174, %c4_175, %c1_176] : memref<1x3x16x16xf32, #tpu.memory_space<vmem>>, vector<1x3x1x15xf32>
      %119 = vector.shape_cast %118 : vector<1x3x1x15xf32> to vector<3x15xf32>
      %c6_177 = arith.constant 6 : index
      %c80_178 = arith.constant 80 : index
      %120 = vector.load %arg6[%c6_177, %c80_178] : memref<27x256xf32, #tpu.memory_space<vmem>>, vector<3x15xf32>
      tpu.vector_store %arg6[%c6_177, %c80_178], %119 {strides = array<i32>} : memref<27x256xf32, #tpu.memory_space<vmem>>, vector<3x15xf32>,
      %c0_179 = arith.constant 0 : index
      %c0_180 = arith.constant 0 : index
      %c5_181 = arith.constant 5 : index
      %c1_182 = arith.constant 1 : index
      %121 = vector.load %arg2[%c0_179, %c0_180, %c5_181, %c1_182] : memref<1x3x16x16xf32, #tpu.memory_space<vmem>>, vector<1x3x1x15xf32>
      %122 = vector.shape_cast %121 : vector<1x3x1x15xf32> to vector<3x15xf32>
      %c6_183 = arith.constant 6 : index
      %c96_184 = arith.constant 96 : index
      %123 = vector.load %arg6[%c6_183, %c96_184] : memref<27x256xf32, #tpu.memory_space<vmem>>, vector<3x15xf32>
      tpu.vector_store %arg6[%c6_183, %c96_184], %122 {strides = array<i32>} : memref<27x256xf32, #tpu.memory_space<vmem>>, vector<3x15xf32>,
      %c0_185 = arith.constant 0 : index
      %c0_186 = arith.constant 0 : index
      %c6_187 = arith.constant 6 : index
      %c1_188 = arith.constant 1 : index
      %124 = vector.load %arg2[%c0_185, %c0_186, %c6_187, %c1_188] : memref<1x3x16x16xf32, #tpu.memory_space<vmem>>, vector<1x3x1x15xf32>
      %125 = vector.shape_cast %124 : vector<1x3x1x15xf32> to vector<3x15xf32>
      %c6_189 = arith.constant 6 : index
      %c112_190 = arith.constant 112 : index
      %126 = vector.load %arg6[%c6_189, %c112_190] : memref<27x256xf32, #tpu.memory_space<vmem>>, vector<3x15xf32>
      tpu.vector_store %arg6[%c6_189, %c112_190], %125 {strides = array<i32>} : memref<27x256xf32, #tpu.memory_space<vmem>>, vector<3x15xf32>,
      %c0_191 = arith.constant 0 : index
      %c0_192 = arith.constant 0 : index
      %c7_193 = arith.constant 7 : index
      %c1_194 = arith.constant 1 : index
      %127 = vector.load %arg2[%c0_191, %c0_192, %c7_193, %c1_194] : memref<1x3x16x16xf32, #tpu.memory_space<vmem>>, vector<1x3x1x15xf32>
      %128 = vector.shape_cast %127 : vector<1x3x1x15xf32> to vector<3x15xf32>
      %c6_195 = arith.constant 6 : index
      %c128_196 = arith.constant 128 : index
      %129 = vector.load %arg6[%c6_195, %c128_196] : memref<27x256xf32, #tpu.memory_space<vmem>>, vector<3x15xf32>
      tpu.vector_store %arg6[%c6_195, %c128_196], %128 {strides = array<i32>} : memref<27x256xf32, #tpu.memory_space<vmem>>, vector<3x15xf32>,
      %c0_197 = arith.constant 0 : index
      %c0_198 = arith.constant 0 : index
      %c8_199 = arith.constant 8 : index
      %c1_200 = arith.constant 1 : index
      %130 = vector.load %arg2[%c0_197, %c0_198, %c8_199, %c1_200] : memref<1x3x16x16xf32, #tpu.memory_space<vmem>>, vector<1x3x1x15xf32>
      %131 = vector.shape_cast %130 : vector<1x3x1x15xf32> to vector<3x15xf32>
      %c6_201 = arith.constant 6 : index
      %c144_202 = arith.constant 144 : index
      %132 = vector.load %arg6[%c6_201, %c144_202] : memref<27x256xf32, #tpu.memory_space<vmem>>, vector<3x15xf32>
      tpu.vector_store %arg6[%c6_201, %c144_202], %131 {strides = array<i32>} : memref<27x256xf32, #tpu.memory_space<vmem>>, vector<3x15xf32>,
      %c0_203 = arith.constant 0 : index
      %c0_204 = arith.constant 0 : index
      %c9_205 = arith.constant 9 : index
      %c1_206 = arith.constant 1 : index
      %133 = vector.load %arg2[%c0_203, %c0_204, %c9_205, %c1_206] : memref<1x3x16x16xf32, #tpu.memory_space<vmem>>, vector<1x3x1x15xf32>
      %134 = vector.shape_cast %133 : vector<1x3x1x15xf32> to vector<3x15xf32>
      %c6_207 = arith.constant 6 : index
      %c160_208 = arith.constant 160 : index
      %135 = vector.load %arg6[%c6_207, %c160_208] : memref<27x256xf32, #tpu.memory_space<vmem>>, vector<3x15xf32>
      tpu.vector_store %arg6[%c6_207, %c160_208], %134 {strides = array<i32>} : memref<27x256xf32, #tpu.memory_space<vmem>>, vector<3x15xf32>,
      %c0_209 = arith.constant 0 : index
      %c0_210 = arith.constant 0 : index
      %c10_211 = arith.constant 10 : index
      %c1_212 = arith.constant 1 : index
      %136 = vector.load %arg2[%c0_209, %c0_210, %c10_211, %c1_212] : memref<1x3x16x16xf32, #tpu.memory_space<vmem>>, vector<1x3x1x15xf32>
      %137 = vector.shape_cast %136 : vector<1x3x1x15xf32> to vector<3x15xf32>
      %c6_213 = arith.constant 6 : index
      %c176_214 = arith.constant 176 : index
      %138 = vector.load %arg6[%c6_213, %c176_214] : memref<27x256xf32, #tpu.memory_space<vmem>>, vector<3x15xf32>
      tpu.vector_store %arg6[%c6_213, %c176_214], %137 {strides = array<i32>} : memref<27x256xf32, #tpu.memory_space<vmem>>, vector<3x15xf32>,
      %c0_215 = arith.constant 0 : index
      %c0_216 = arith.constant 0 : index
      %c11_217 = arith.constant 11 : index
      %c1_218 = arith.constant 1 : index
      %139 = vector.load %arg2[%c0_215, %c0_216, %c11_217, %c1_218] : memref<1x3x16x16xf32, #tpu.memory_space<vmem>>, vector<1x3x1x15xf32>
      %140 = vector.shape_cast %139 : vector<1x3x1x15xf32> to vector<3x15xf32>
      %c6_219 = arith.constant 6 : index
      %c192_220 = arith.constant 192 : index
      %141 = vector.load %arg6[%c6_219, %c192_220] : memref<27x256xf32, #tpu.memory_space<vmem>>, vector<3x15xf32>
      tpu.vector_store %arg6[%c6_219, %c192_220], %140 {strides = array<i32>} : memref<27x256xf32, #tpu.memory_space<vmem>>, vector<3x15xf32>,
      %c0_221 = arith.constant 0 : index
      %c0_222 = arith.constant 0 : index
      %c12_223 = arith.constant 12 : index
      %c1_224 = arith.constant 1 : index
      %142 = vector.load %arg2[%c0_221, %c0_222, %c12_223, %c1_224] : memref<1x3x16x16xf32, #tpu.memory_space<vmem>>, vector<1x3x1x15xf32>
      %143 = vector.shape_cast %142 : vector<1x3x1x15xf32> to vector<3x15xf32>
      %c6_225 = arith.constant 6 : index
      %c208_226 = arith.constant 208 : index
      %144 = vector.load %arg6[%c6_225, %c208_226] : memref<27x256xf32, #tpu.memory_space<vmem>>, vector<3x15xf32>
      tpu.vector_store %arg6[%c6_225, %c208_226], %143 {strides = array<i32>} : memref<27x256xf32, #tpu.memory_space<vmem>>, vector<3x15xf32>,
      %c0_227 = arith.constant 0 : index
      %c0_228 = arith.constant 0 : index
      %c13_229 = arith.constant 13 : index
      %c1_230 = arith.constant 1 : index
      %145 = vector.load %arg2[%c0_227, %c0_228, %c13_229, %c1_230] : memref<1x3x16x16xf32, #tpu.memory_space<vmem>>, vector<1x3x1x15xf32>
      %146 = vector.shape_cast %145 : vector<1x3x1x15xf32> to vector<3x15xf32>
      %c6_231 = arith.constant 6 : index
      %c224_232 = arith.constant 224 : index
      %147 = vector.load %arg6[%c6_231, %c224_232] : memref<27x256xf32, #tpu.memory_space<vmem>>, vector<3x15xf32>
      tpu.vector_store %arg6[%c6_231, %c224_232], %146 {strides = array<i32>} : memref<27x256xf32, #tpu.memory_space<vmem>>, vector<3x15xf32>,
      %c0_233 = arith.constant 0 : index
      %c0_234 = arith.constant 0 : index
      %c14_235 = arith.constant 14 : index
      %c1_236 = arith.constant 1 : index
      %148 = vector.load %arg2[%c0_233, %c0_234, %c14_235, %c1_236] : memref<1x3x16x16xf32, #tpu.memory_space<vmem>>, vector<1x3x1x15xf32>
      %149 = vector.shape_cast %148 : vector<1x3x1x15xf32> to vector<3x15xf32>
      %c6_237 = arith.constant 6 : index
      %c240_238 = arith.constant 240 : index
      %150 = vector.load %arg6[%c6_237, %c240_238] : memref<27x256xf32, #tpu.memory_space<vmem>>, vector<3x15xf32>
      tpu.vector_store %arg6[%c6_237, %c240_238], %149 {strides = array<i32>} : memref<27x256xf32, #tpu.memory_space<vmem>>, vector<3x15xf32>,
      %c0_239 = arith.constant 0 : index
      %c0_240 = arith.constant 0 : index
      %c0_241 = arith.constant 0 : index
      %c0_242 = arith.constant 0 : index
      %151 = vector.load %arg2[%c0_239, %c0_240, %c0_241, %c0_242] : memref<1x3x16x16xf32, #tpu.memory_space<vmem>>, vector<1x3x1x15xf32>
      %152 = vector.shape_cast %151 : vector<1x3x1x15xf32> to vector<3x15xf32>
      %c9_243 = arith.constant 9 : index
      %c1_244 = arith.constant 1 : index
      %153 = vector.load %arg6[%c9_243, %c1_244] : memref<27x256xf32, #tpu.memory_space<vmem>>, vector<3x15xf32>
      tpu.vector_store %arg6[%c9_243, %c1_244], %152 {strides = array<i32>} : memref<27x256xf32, #tpu.memory_space<vmem>>, vector<3x15xf32>,
      %c0_245 = arith.constant 0 : index
      %c0_246 = arith.constant 0 : index
      %c1_247 = arith.constant 1 : index
      %c0_248 = arith.constant 0 : index
      %154 = vector.load %arg2[%c0_245, %c0_246, %c1_247, %c0_248] : memref<1x3x16x16xf32, #tpu.memory_space<vmem>>, vector<1x3x1x15xf32>
      %155 = vector.shape_cast %154 : vector<1x3x1x15xf32> to vector<3x15xf32>
      %c9_249 = arith.constant 9 : index
      %c17_250 = arith.constant 17 : index
      %156 = vector.load %arg6[%c9_249, %c17_250] : memref<27x256xf32, #tpu.memory_space<vmem>>, vector<3x15xf32>
      tpu.vector_store %arg6[%c9_249, %c17_250], %155 {strides = array<i32>} : memref<27x256xf32, #tpu.memory_space<vmem>>, vector<3x15xf32>,
      %c0_251 = arith.constant 0 : index
      %c0_252 = arith.constant 0 : index
      %c2_253 = arith.constant 2 : index
      %c0_254 = arith.constant 0 : index
      %157 = vector.load %arg2[%c0_251, %c0_252, %c2_253, %c0_254] : memref<1x3x16x16xf32, #tpu.memory_space<vmem>>, vector<1x3x1x15xf32>
      %158 = vector.shape_cast %157 : vector<1x3x1x15xf32> to vector<3x15xf32>
      %c9_255 = arith.constant 9 : index
      %c33_256 = arith.constant 33 : index
      %159 = vector.load %arg6[%c9_255, %c33_256] : memref<27x256xf32, #tpu.memory_space<vmem>>, vector<3x15xf32>
      tpu.vector_store %arg6[%c9_255, %c33_256], %158 {strides = array<i32>} : memref<27x256xf32, #tpu.memory_space<vmem>>, vector<3x15xf32>,
      %c0_257 = arith.constant 0 : index
      %c0_258 = arith.constant 0 : index
      %c3_259 = arith.constant 3 : index
      %c0_260 = arith.constant 0 : index
      %160 = vector.load %arg2[%c0_257, %c0_258, %c3_259, %c0_260] : memref<1x3x16x16xf32, #tpu.memory_space<vmem>>, vector<1x3x1x15xf32>
      %161 = vector.shape_cast %160 : vector<1x3x1x15xf32> to vector<3x15xf32>
      %c9_261 = arith.constant 9 : index
      %c49_262 = arith.constant 49 : index
      %162 = vector.load %arg6[%c9_261, %c49_262] : memref<27x256xf32, #tpu.memory_space<vmem>>, vector<3x15xf32>
      tpu.vector_store %arg6[%c9_261, %c49_262], %161 {strides = array<i32>} : memref<27x256xf32, #tpu.memory_space<vmem>>, vector<3x15xf32>,
      %c0_263 = arith.constant 0 : index
      %c0_264 = arith.constant 0 : index
      %c4_265 = arith.constant 4 : index
      %c0_266 = arith.constant 0 : index
      %163 = vector.load %arg2[%c0_263, %c0_264, %c4_265, %c0_266] : memref<1x3x16x16xf32, #tpu.memory_space<vmem>>, vector<1x3x1x15xf32>
      %164 = vector.shape_cast %163 : vector<1x3x1x15xf32> to vector<3x15xf32>
      %c9_267 = arith.constant 9 : index
      %c65_268 = arith.constant 65 : index
      %165 = vector.load %arg6[%c9_267, %c65_268] : memref<27x256xf32, #tpu.memory_space<vmem>>, vector<3x15xf32>
      tpu.vector_store %arg6[%c9_267, %c65_268], %164 {strides = array<i32>} : memref<27x256xf32, #tpu.memory_space<vmem>>, vector<3x15xf32>,
      %c0_269 = arith.constant 0 : index
      %c0_270 = arith.constant 0 : index
      %c5_271 = arith.constant 5 : index
      %c0_272 = arith.constant 0 : index
      %166 = vector.load %arg2[%c0_269, %c0_270, %c5_271, %c0_272] : memref<1x3x16x16xf32, #tpu.memory_space<vmem>>, vector<1x3x1x15xf32>
      %167 = vector.shape_cast %166 : vector<1x3x1x15xf32> to vector<3x15xf32>
      %c9_273 = arith.constant 9 : index
      %c81_274 = arith.constant 81 : index
      %168 = vector.load %arg6[%c9_273, %c81_274] : memref<27x256xf32, #tpu.memory_space<vmem>>, vector<3x15xf32>
      tpu.vector_store %arg6[%c9_273, %c81_274], %167 {strides = array<i32>} : memref<27x256xf32, #tpu.memory_space<vmem>>, vector<3x15xf32>,
      %c0_275 = arith.constant 0 : index
      %c0_276 = arith.constant 0 : index
      %c6_277 = arith.constant 6 : index
      %c0_278 = arith.constant 0 : index
      %169 = vector.load %arg2[%c0_275, %c0_276, %c6_277, %c0_278] : memref<1x3x16x16xf32, #tpu.memory_space<vmem>>, vector<1x3x1x15xf32>
      %170 = vector.shape_cast %169 : vector<1x3x1x15xf32> to vector<3x15xf32>
      %c9_279 = arith.constant 9 : index
      %c97_280 = arith.constant 97 : index
      %171 = vector.load %arg6[%c9_279, %c97_280] : memref<27x256xf32, #tpu.memory_space<vmem>>, vector<3x15xf32>
      tpu.vector_store %arg6[%c9_279, %c97_280], %170 {strides = array<i32>} : memref<27x256xf32, #tpu.memory_space<vmem>>, vector<3x15xf32>,
      %c0_281 = arith.constant 0 : index
      %c0_282 = arith.constant 0 : index
      %c7_283 = arith.constant 7 : index
      %c0_284 = arith.constant 0 : index
      %172 = vector.load %arg2[%c0_281, %c0_282, %c7_283, %c0_284] : memref<1x3x16x16xf32, #tpu.memory_space<vmem>>, vector<1x3x1x15xf32>
      %173 = vector.shape_cast %172 : vector<1x3x1x15xf32> to vector<3x15xf32>
      %c9_285 = arith.constant 9 : index
      %c113_286 = arith.constant 113 : index
      %174 = vector.load %arg6[%c9_285, %c113_286] : memref<27x256xf32, #tpu.memory_space<vmem>>, vector<3x15xf32>
      tpu.vector_store %arg6[%c9_285, %c113_286], %173 {strides = array<i32>} : memref<27x256xf32, #tpu.memory_space<vmem>>, vector<3x15xf32>,
      %c0_287 = arith.constant 0 : index
      %c0_288 = arith.constant 0 : index
      %c8_289 = arith.constant 8 : index
      %c0_290 = arith.constant 0 : index
      %175 = vector.load %arg2[%c0_287, %c0_288, %c8_289, %c0_290] : memref<1x3x16x16xf32, #tpu.memory_space<vmem>>, vector<1x3x1x15xf32>
      %176 = vector.shape_cast %175 : vector<1x3x1x15xf32> to vector<3x15xf32>
      %c9_291 = arith.constant 9 : index
      %c129_292 = arith.constant 129 : index
      %177 = vector.load %arg6[%c9_291, %c129_292] : memref<27x256xf32, #tpu.memory_space<vmem>>, vector<3x15xf32>
      tpu.vector_store %arg6[%c9_291, %c129_292], %176 {strides = array<i32>} : memref<27x256xf32, #tpu.memory_space<vmem>>, vector<3x15xf32>,
      %c0_293 = arith.constant 0 : index
      %c0_294 = arith.constant 0 : index
      %c9_295 = arith.constant 9 : index
      %c0_296 = arith.constant 0 : index
      %178 = vector.load %arg2[%c0_293, %c0_294, %c9_295, %c0_296] : memref<1x3x16x16xf32, #tpu.memory_space<vmem>>, vector<1x3x1x15xf32>
      %179 = vector.shape_cast %178 : vector<1x3x1x15xf32> to vector<3x15xf32>
      %c9_297 = arith.constant 9 : index
      %c145_298 = arith.constant 145 : index
      %180 = vector.load %arg6[%c9_297, %c145_298] : memref<27x256xf32, #tpu.memory_space<vmem>>, vector<3x15xf32>
      tpu.vector_store %arg6[%c9_297, %c145_298], %179 {strides = array<i32>} : memref<27x256xf32, #tpu.memory_space<vmem>>, vector<3x15xf32>,
      %c0_299 = arith.constant 0 : index
      %c0_300 = arith.constant 0 : index
      %c10_301 = arith.constant 10 : index
      %c0_302 = arith.constant 0 : index
      %181 = vector.load %arg2[%c0_299, %c0_300, %c10_301, %c0_302] : memref<1x3x16x16xf32, #tpu.memory_space<vmem>>, vector<1x3x1x15xf32>
      %182 = vector.shape_cast %181 : vector<1x3x1x15xf32> to vector<3x15xf32>
      %c9_303 = arith.constant 9 : index
      %c161_304 = arith.constant 161 : index
      %183 = vector.load %arg6[%c9_303, %c161_304] : memref<27x256xf32, #tpu.memory_space<vmem>>, vector<3x15xf32>
      tpu.vector_store %arg6[%c9_303, %c161_304], %182 {strides = array<i32>} : memref<27x256xf32, #tpu.memory_space<vmem>>, vector<3x15xf32>,
      %c0_305 = arith.constant 0 : index
      %c0_306 = arith.constant 0 : index
      %c11_307 = arith.constant 11 : index
      %c0_308 = arith.constant 0 : index
      %184 = vector.load %arg2[%c0_305, %c0_306, %c11_307, %c0_308] : memref<1x3x16x16xf32, #tpu.memory_space<vmem>>, vector<1x3x1x15xf32>
      %185 = vector.shape_cast %184 : vector<1x3x1x15xf32> to vector<3x15xf32>
      %c9_309 = arith.constant 9 : index
      %c177_310 = arith.constant 177 : index
      %186 = vector.load %arg6[%c9_309, %c177_310] : memref<27x256xf32, #tpu.memory_space<vmem>>, vector<3x15xf32>
      tpu.vector_store %arg6[%c9_309, %c177_310], %185 {strides = array<i32>} : memref<27x256xf32, #tpu.memory_space<vmem>>, vector<3x15xf32>,
      %c0_311 = arith.constant 0 : index
      %c0_312 = arith.constant 0 : index
      %c12_313 = arith.constant 12 : index
      %c0_314 = arith.constant 0 : index
      %187 = vector.load %arg2[%c0_311, %c0_312, %c12_313, %c0_314] : memref<1x3x16x16xf32, #tpu.memory_space<vmem>>, vector<1x3x1x15xf32>
      %188 = vector.shape_cast %187 : vector<1x3x1x15xf32> to vector<3x15xf32>
      %c9_315 = arith.constant 9 : index
      %c193_316 = arith.constant 193 : index
      %189 = vector.load %arg6[%c9_315, %c193_316] : memref<27x256xf32, #tpu.memory_space<vmem>>, vector<3x15xf32>
      tpu.vector_store %arg6[%c9_315, %c193_316], %188 {strides = array<i32>} : memref<27x256xf32, #tpu.memory_space<vmem>>, vector<3x15xf32>,
      %c0_317 = arith.constant 0 : index
      %c0_318 = arith.constant 0 : index
      %c13_319 = arith.constant 13 : index
      %c0_320 = arith.constant 0 : index
      %190 = vector.load %arg2[%c0_317, %c0_318, %c13_319, %c0_320] : memref<1x3x16x16xf32, #tpu.memory_space<vmem>>, vector<1x3x1x15xf32>
      %191 = vector.shape_cast %190 : vector<1x3x1x15xf32> to vector<3x15xf32>
      %c9_321 = arith.constant 9 : index
      %c209_322 = arith.constant 209 : index
      %192 = vector.load %arg6[%c9_321, %c209_322] : memref<27x256xf32, #tpu.memory_space<vmem>>, vector<3x15xf32>
      tpu.vector_store %arg6[%c9_321, %c209_322], %191 {strides = array<i32>} : memref<27x256xf32, #tpu.memory_space<vmem>>, vector<3x15xf32>,
      %c0_323 = arith.constant 0 : index
      %c0_324 = arith.constant 0 : index
      %c14_325 = arith.constant 14 : index
      %c0_326 = arith.constant 0 : index
      %193 = vector.load %arg2[%c0_323, %c0_324, %c14_325, %c0_326] : memref<1x3x16x16xf32, #tpu.memory_space<vmem>>, vector<1x3x1x15xf32>
      %194 = vector.shape_cast %193 : vector<1x3x1x15xf32> to vector<3x15xf32>
      %c9_327 = arith.constant 9 : index
      %c225_328 = arith.constant 225 : index
      %195 = vector.load %arg6[%c9_327, %c225_328] : memref<27x256xf32, #tpu.memory_space<vmem>>, vector<3x15xf32>
      tpu.vector_store %arg6[%c9_327, %c225_328], %194 {strides = array<i32>} : memref<27x256xf32, #tpu.memory_space<vmem>>, vector<3x15xf32>,
      %c0_329 = arith.constant 0 : index
      %c0_330 = arith.constant 0 : index
      %c15 = arith.constant 15 : index
      %c0_331 = arith.constant 0 : index
      %196 = vector.load %arg2[%c0_329, %c0_330, %c15, %c0_331] : memref<1x3x16x16xf32, #tpu.memory_space<vmem>>, vector<1x3x1x15xf32>
      %197 = vector.shape_cast %196 : vector<1x3x1x15xf32> to vector<3x15xf32>
      %c9_332 = arith.constant 9 : index
      %c241_333 = arith.constant 241 : index
      %198 = vector.load %arg6[%c9_332, %c241_333] : memref<27x256xf32, #tpu.memory_space<vmem>>, vector<3x15xf32>
      tpu.vector_store %arg6[%c9_332, %c241_333], %197 {strides = array<i32>} : memref<27x256xf32, #tpu.memory_space<vmem>>, vector<3x15xf32>,
      %c0_334 = arith.constant 0 : index
      %c0_335 = arith.constant 0 : index
      %c0_336 = arith.constant 0 : index
      %c0_337 = arith.constant 0 : index
      %199 = vector.load %arg2[%c0_334, %c0_335, %c0_336, %c0_337] : memref<1x3x16x16xf32, #tpu.memory_space<vmem>>, vector<1x3x1x16xf32>
      %200 = vector.shape_cast %199 : vector<1x3x1x16xf32> to vector<3x16xf32>
      %c12_338 = arith.constant 12 : index
      %c0_339 = arith.constant 0 : index
      %201 = vector.load %arg6[%c12_338, %c0_339] : memref<27x256xf32, #tpu.memory_space<vmem>>, vector<3x16xf32>
      tpu.vector_store %arg6[%c12_338, %c0_339], %200 {strides = array<i32>} : memref<27x256xf32, #tpu.memory_space<vmem>>, vector<3x16xf32>,
      %c0_340 = arith.constant 0 : index
      %c0_341 = arith.constant 0 : index
      %c1_342 = arith.constant 1 : index
      %c0_343 = arith.constant 0 : index
      %202 = vector.load %arg2[%c0_340, %c0_341, %c1_342, %c0_343] : memref<1x3x16x16xf32, #tpu.memory_space<vmem>>, vector<1x3x1x16xf32>
      %203 = vector.shape_cast %202 : vector<1x3x1x16xf32> to vector<3x16xf32>
      %c12_344 = arith.constant 12 : index
      %c16_345 = arith.constant 16 : index
      %204 = vector.load %arg6[%c12_344, %c16_345] : memref<27x256xf32, #tpu.memory_space<vmem>>, vector<3x16xf32>
      tpu.vector_store %arg6[%c12_344, %c16_345], %203 {strides = array<i32>} : memref<27x256xf32, #tpu.memory_space<vmem>>, vector<3x16xf32>,
      %c0_346 = arith.constant 0 : index
      %c0_347 = arith.constant 0 : index
      %c2_348 = arith.constant 2 : index
      %c0_349 = arith.constant 0 : index
      %205 = vector.load %arg2[%c0_346, %c0_347, %c2_348, %c0_349] : memref<1x3x16x16xf32, #tpu.memory_space<vmem>>, vector<1x3x1x16xf32>
      %206 = vector.shape_cast %205 : vector<1x3x1x16xf32> to vector<3x16xf32>
      %c12_350 = arith.constant 12 : index
      %c32_351 = arith.constant 32 : index
      %207 = vector.load %arg6[%c12_350, %c32_351] : memref<27x256xf32, #tpu.memory_space<vmem>>, vector<3x16xf32>
      tpu.vector_store %arg6[%c12_350, %c32_351], %206 {strides = array<i32>} : memref<27x256xf32, #tpu.memory_space<vmem>>, vector<3x16xf32>,
      %c0_352 = arith.constant 0 : index
      %c0_353 = arith.constant 0 : index
      %c3_354 = arith.constant 3 : index
      %c0_355 = arith.constant 0 : index
      %208 = vector.load %arg2[%c0_352, %c0_353, %c3_354, %c0_355] : memref<1x3x16x16xf32, #tpu.memory_space<vmem>>, vector<1x3x1x16xf32>
      %209 = vector.shape_cast %208 : vector<1x3x1x16xf32> to vector<3x16xf32>
      %c12_356 = arith.constant 12 : index
      %c48_357 = arith.constant 48 : index
      %210 = vector.load %arg6[%c12_356, %c48_357] : memref<27x256xf32, #tpu.memory_space<vmem>>, vector<3x16xf32>
      tpu.vector_store %arg6[%c12_356, %c48_357], %209 {strides = array<i32>} : memref<27x256xf32, #tpu.memory_space<vmem>>, vector<3x16xf32>,
      %c0_358 = arith.constant 0 : index
      %c0_359 = arith.constant 0 : index
      %c4_360 = arith.constant 4 : index
      %c0_361 = arith.constant 0 : index
      %211 = vector.load %arg2[%c0_358, %c0_359, %c4_360, %c0_361] : memref<1x3x16x16xf32, #tpu.memory_space<vmem>>, vector<1x3x1x16xf32>
      %212 = vector.shape_cast %211 : vector<1x3x1x16xf32> to vector<3x16xf32>
      %c12_362 = arith.constant 12 : index
      %c64_363 = arith.constant 64 : index
      %213 = vector.load %arg6[%c12_362, %c64_363] : memref<27x256xf32, #tpu.memory_space<vmem>>, vector<3x16xf32>
      tpu.vector_store %arg6[%c12_362, %c64_363], %212 {strides = array<i32>} : memref<27x256xf32, #tpu.memory_space<vmem>>, vector<3x16xf32>,
      %c0_364 = arith.constant 0 : index
      %c0_365 = arith.constant 0 : index
      %c5_366 = arith.constant 5 : index
      %c0_367 = arith.constant 0 : index
      %214 = vector.load %arg2[%c0_364, %c0_365, %c5_366, %c0_367] : memref<1x3x16x16xf32, #tpu.memory_space<vmem>>, vector<1x3x1x16xf32>
      %215 = vector.shape_cast %214 : vector<1x3x1x16xf32> to vector<3x16xf32>
      %c12_368 = arith.constant 12 : index
      %c80_369 = arith.constant 80 : index
      %216 = vector.load %arg6[%c12_368, %c80_369] : memref<27x256xf32, #tpu.memory_space<vmem>>, vector<3x16xf32>
      tpu.vector_store %arg6[%c12_368, %c80_369], %215 {strides = array<i32>} : memref<27x256xf32, #tpu.memory_space<vmem>>, vector<3x16xf32>,
      %c0_370 = arith.constant 0 : index
      %c0_371 = arith.constant 0 : index
      %c6_372 = arith.constant 6 : index
      %c0_373 = arith.constant 0 : index
      %217 = vector.load %arg2[%c0_370, %c0_371, %c6_372, %c0_373] : memref<1x3x16x16xf32, #tpu.memory_space<vmem>>, vector<1x3x1x16xf32>
      %218 = vector.shape_cast %217 : vector<1x3x1x16xf32> to vector<3x16xf32>
      %c12_374 = arith.constant 12 : index
      %c96_375 = arith.constant 96 : index
      %219 = vector.load %arg6[%c12_374, %c96_375] : memref<27x256xf32, #tpu.memory_space<vmem>>, vector<3x16xf32>
      tpu.vector_store %arg6[%c12_374, %c96_375], %218 {strides = array<i32>} : memref<27x256xf32, #tpu.memory_space<vmem>>, vector<3x16xf32>,
      %c0_376 = arith.constant 0 : index
      %c0_377 = arith.constant 0 : index
      %c7_378 = arith.constant 7 : index
      %c0_379 = arith.constant 0 : index
      %220 = vector.load %arg2[%c0_376, %c0_377, %c7_378, %c0_379] : memref<1x3x16x16xf32, #tpu.memory_space<vmem>>, vector<1x3x1x16xf32>
      %221 = vector.shape_cast %220 : vector<1x3x1x16xf32> to vector<3x16xf32>
      %c12_380 = arith.constant 12 : index
      %c112_381 = arith.constant 112 : index
      %222 = vector.load %arg6[%c12_380, %c112_381] : memref<27x256xf32, #tpu.memory_space<vmem>>, vector<3x16xf32>
      tpu.vector_store %arg6[%c12_380, %c112_381], %221 {strides = array<i32>} : memref<27x256xf32, #tpu.memory_space<vmem>>, vector<3x16xf32>,
      %c0_382 = arith.constant 0 : index
      %c0_383 = arith.constant 0 : index
      %c8_384 = arith.constant 8 : index
      %c0_385 = arith.constant 0 : index
      %223 = vector.load %arg2[%c0_382, %c0_383, %c8_384, %c0_385] : memref<1x3x16x16xf32, #tpu.memory_space<vmem>>, vector<1x3x1x16xf32>
      %224 = vector.shape_cast %223 : vector<1x3x1x16xf32> to vector<3x16xf32>
      %c12_386 = arith.constant 12 : index
      %c128_387 = arith.constant 128 : index
      %225 = vector.load %arg6[%c12_386, %c128_387] : memref<27x256xf32, #tpu.memory_space<vmem>>, vector<3x16xf32>
      tpu.vector_store %arg6[%c12_386, %c128_387], %224 {strides = array<i32>} : memref<27x256xf32, #tpu.memory_space<vmem>>, vector<3x16xf32>,
      %c0_388 = arith.constant 0 : index
      %c0_389 = arith.constant 0 : index
      %c9_390 = arith.constant 9 : index
      %c0_391 = arith.constant 0 : index
      %226 = vector.load %arg2[%c0_388, %c0_389, %c9_390, %c0_391] : memref<1x3x16x16xf32, #tpu.memory_space<vmem>>, vector<1x3x1x16xf32>
      %227 = vector.shape_cast %226 : vector<1x3x1x16xf32> to vector<3x16xf32>
      %c12_392 = arith.constant 12 : index
      %c144_393 = arith.constant 144 : index
      %228 = vector.load %arg6[%c12_392, %c144_393] : memref<27x256xf32, #tpu.memory_space<vmem>>, vector<3x16xf32>
      tpu.vector_store %arg6[%c12_392, %c144_393], %227 {strides = array<i32>} : memref<27x256xf32, #tpu.memory_space<vmem>>, vector<3x16xf32>,
      %c0_394 = arith.constant 0 : index
      %c0_395 = arith.constant 0 : index
      %c10_396 = arith.constant 10 : index
      %c0_397 = arith.constant 0 : index
      %229 = vector.load %arg2[%c0_394, %c0_395, %c10_396, %c0_397] : memref<1x3x16x16xf32, #tpu.memory_space<vmem>>, vector<1x3x1x16xf32>
      %230 = vector.shape_cast %229 : vector<1x3x1x16xf32> to vector<3x16xf32>
      %c12_398 = arith.constant 12 : index
      %c160_399 = arith.constant 160 : index
      %231 = vector.load %arg6[%c12_398, %c160_399] : memref<27x256xf32, #tpu.memory_space<vmem>>, vector<3x16xf32>
      tpu.vector_store %arg6[%c12_398, %c160_399], %230 {strides = array<i32>} : memref<27x256xf32, #tpu.memory_space<vmem>>, vector<3x16xf32>,
      %c0_400 = arith.constant 0 : index
      %c0_401 = arith.constant 0 : index
      %c11_402 = arith.constant 11 : index
      %c0_403 = arith.constant 0 : index
      %232 = vector.load %arg2[%c0_400, %c0_401, %c11_402, %c0_403] : memref<1x3x16x16xf32, #tpu.memory_space<vmem>>, vector<1x3x1x16xf32>
      %233 = vector.shape_cast %232 : vector<1x3x1x16xf32> to vector<3x16xf32>
      %c12_404 = arith.constant 12 : index
      %c176_405 = arith.constant 176 : index
      %234 = vector.load %arg6[%c12_404, %c176_405] : memref<27x256xf32, #tpu.memory_space<vmem>>, vector<3x16xf32>
      tpu.vector_store %arg6[%c12_404, %c176_405], %233 {strides = array<i32>} : memref<27x256xf32, #tpu.memory_space<vmem>>, vector<3x16xf32>,
      %c0_406 = arith.constant 0 : index
      %c0_407 = arith.constant 0 : index
      %c12_408 = arith.constant 12 : index
      %c0_409 = arith.constant 0 : index
      %235 = vector.load %arg2[%c0_406, %c0_407, %c12_408, %c0_409] : memref<1x3x16x16xf32, #tpu.memory_space<vmem>>, vector<1x3x1x16xf32>
      %236 = vector.shape_cast %235 : vector<1x3x1x16xf32> to vector<3x16xf32>
      %c12_410 = arith.constant 12 : index
      %c192_411 = arith.constant 192 : index
      %237 = vector.load %arg6[%c12_410, %c192_411] : memref<27x256xf32, #tpu.memory_space<vmem>>, vector<3x16xf32>
      tpu.vector_store %arg6[%c12_410, %c192_411], %236 {strides = array<i32>} : memref<27x256xf32, #tpu.memory_space<vmem>>, vector<3x16xf32>,
      %c0_412 = arith.constant 0 : index
      %c0_413 = arith.constant 0 : index
      %c13_414 = arith.constant 13 : index
      %c0_415 = arith.constant 0 : index
      %238 = vector.load %arg2[%c0_412, %c0_413, %c13_414, %c0_415] : memref<1x3x16x16xf32, #tpu.memory_space<vmem>>, vector<1x3x1x16xf32>
      %239 = vector.shape_cast %238 : vector<1x3x1x16xf32> to vector<3x16xf32>
      %c12_416 = arith.constant 12 : index
      %c208_417 = arith.constant 208 : index
      %240 = vector.load %arg6[%c12_416, %c208_417] : memref<27x256xf32, #tpu.memory_space<vmem>>, vector<3x16xf32>
      tpu.vector_store %arg6[%c12_416, %c208_417], %239 {strides = array<i32>} : memref<27x256xf32, #tpu.memory_space<vmem>>, vector<3x16xf32>,
      %c0_418 = arith.constant 0 : index
      %c0_419 = arith.constant 0 : index
      %c14_420 = arith.constant 14 : index
      %c0_421 = arith.constant 0 : index
      %241 = vector.load %arg2[%c0_418, %c0_419, %c14_420, %c0_421] : memref<1x3x16x16xf32, #tpu.memory_space<vmem>>, vector<1x3x1x16xf32>
      %242 = vector.shape_cast %241 : vector<1x3x1x16xf32> to vector<3x16xf32>
      %c12_422 = arith.constant 12 : index
      %c224_423 = arith.constant 224 : index
      %243 = vector.load %arg6[%c12_422, %c224_423] : memref<27x256xf32, #tpu.memory_space<vmem>>, vector<3x16xf32>
      tpu.vector_store %arg6[%c12_422, %c224_423], %242 {strides = array<i32>} : memref<27x256xf32, #tpu.memory_space<vmem>>, vector<3x16xf32>,
      %c0_424 = arith.constant 0 : index
      %c0_425 = arith.constant 0 : index
      %c15_426 = arith.constant 15 : index
      %c0_427 = arith.constant 0 : index
      %244 = vector.load %arg2[%c0_424, %c0_425, %c15_426, %c0_427] : memref<1x3x16x16xf32, #tpu.memory_space<vmem>>, vector<1x3x1x16xf32>
      %245 = vector.shape_cast %244 : vector<1x3x1x16xf32> to vector<3x16xf32>
      %c12_428 = arith.constant 12 : index
      %c240_429 = arith.constant 240 : index
      %246 = vector.load %arg6[%c12_428, %c240_429] : memref<27x256xf32, #tpu.memory_space<vmem>>, vector<3x16xf32>
      tpu.vector_store %arg6[%c12_428, %c240_429], %245 {strides = array<i32>} : memref<27x256xf32, #tpu.memory_space<vmem>>, vector<3x16xf32>,
      %c0_430 = arith.constant 0 : index
      %c0_431 = arith.constant 0 : index
      %c0_432 = arith.constant 0 : index
      %c1_433 = arith.constant 1 : index
      %247 = vector.load %arg2[%c0_430, %c0_431, %c0_432, %c1_433] : memref<1x3x16x16xf32, #tpu.memory_space<vmem>>, vector<1x3x1x15xf32>
      %248 = vector.shape_cast %247 : vector<1x3x1x15xf32> to vector<3x15xf32>
      %c15_434 = arith.constant 15 : index
      %c0_435 = arith.constant 0 : index
      %249 = vector.load %arg6[%c15_434, %c0_435] : memref<27x256xf32, #tpu.memory_space<vmem>>, vector<3x15xf32>
      tpu.vector_store %arg6[%c15_434, %c0_435], %248 {strides = array<i32>} : memref<27x256xf32, #tpu.memory_space<vmem>>, vector<3x15xf32>,
      %c0_436 = arith.constant 0 : index
      %c0_437 = arith.constant 0 : index
      %c1_438 = arith.constant 1 : index
      %c1_439 = arith.constant 1 : index
      %250 = vector.load %arg2[%c0_436, %c0_437, %c1_438, %c1_439] : memref<1x3x16x16xf32, #tpu.memory_space<vmem>>, vector<1x3x1x15xf32>
      %251 = vector.shape_cast %250 : vector<1x3x1x15xf32> to vector<3x15xf32>
      %c15_440 = arith.constant 15 : index
      %c16_441 = arith.constant 16 : index
      %252 = vector.load %arg6[%c15_440, %c16_441] : memref<27x256xf32, #tpu.memory_space<vmem>>, vector<3x15xf32>
      tpu.vector_store %arg6[%c15_440, %c16_441], %251 {strides = array<i32>} : memref<27x256xf32, #tpu.memory_space<vmem>>, vector<3x15xf32>,
      %c0_442 = arith.constant 0 : index
      %c0_443 = arith.constant 0 : index
      %c2_444 = arith.constant 2 : index
      %c1_445 = arith.constant 1 : index
      %253 = vector.load %arg2[%c0_442, %c0_443, %c2_444, %c1_445] : memref<1x3x16x16xf32, #tpu.memory_space<vmem>>, vector<1x3x1x15xf32>
      %254 = vector.shape_cast %253 : vector<1x3x1x15xf32> to vector<3x15xf32>
      %c15_446 = arith.constant 15 : index
      %c32_447 = arith.constant 32 : index
      %255 = vector.load %arg6[%c15_446, %c32_447] : memref<27x256xf32, #tpu.memory_space<vmem>>, vector<3x15xf32>
      tpu.vector_store %arg6[%c15_446, %c32_447], %254 {strides = array<i32>} : memref<27x256xf32, #tpu.memory_space<vmem>>, vector<3x15xf32>,
      %c0_448 = arith.constant 0 : index
      %c0_449 = arith.constant 0 : index
      %c3_450 = arith.constant 3 : index
      %c1_451 = arith.constant 1 : index
      %256 = vector.load %arg2[%c0_448, %c0_449, %c3_450, %c1_451] : memref<1x3x16x16xf32, #tpu.memory_space<vmem>>, vector<1x3x1x15xf32>
      %257 = vector.shape_cast %256 : vector<1x3x1x15xf32> to vector<3x15xf32>
      %c15_452 = arith.constant 15 : index
      %c48_453 = arith.constant 48 : index
      %258 = vector.load %arg6[%c15_452, %c48_453] : memref<27x256xf32, #tpu.memory_space<vmem>>, vector<3x15xf32>
      tpu.vector_store %arg6[%c15_452, %c48_453], %257 {strides = array<i32>} : memref<27x256xf32, #tpu.memory_space<vmem>>, vector<3x15xf32>,
      %c0_454 = arith.constant 0 : index
      %c0_455 = arith.constant 0 : index
      %c4_456 = arith.constant 4 : index
      %c1_457 = arith.constant 1 : index
      %259 = vector.load %arg2[%c0_454, %c0_455, %c4_456, %c1_457] : memref<1x3x16x16xf32, #tpu.memory_space<vmem>>, vector<1x3x1x15xf32>
      %260 = vector.shape_cast %259 : vector<1x3x1x15xf32> to vector<3x15xf32>
      %c15_458 = arith.constant 15 : index
      %c64_459 = arith.constant 64 : index
      %261 = vector.load %arg6[%c15_458, %c64_459] : memref<27x256xf32, #tpu.memory_space<vmem>>, vector<3x15xf32>
      tpu.vector_store %arg6[%c15_458, %c64_459], %260 {strides = array<i32>} : memref<27x256xf32, #tpu.memory_space<vmem>>, vector<3x15xf32>,
      %c0_460 = arith.constant 0 : index
      %c0_461 = arith.constant 0 : index
      %c5_462 = arith.constant 5 : index
      %c1_463 = arith.constant 1 : index
      %262 = vector.load %arg2[%c0_460, %c0_461, %c5_462, %c1_463] : memref<1x3x16x16xf32, #tpu.memory_space<vmem>>, vector<1x3x1x15xf32>
      %263 = vector.shape_cast %262 : vector<1x3x1x15xf32> to vector<3x15xf32>
      %c15_464 = arith.constant 15 : index
      %c80_465 = arith.constant 80 : index
      %264 = vector.load %arg6[%c15_464, %c80_465] : memref<27x256xf32, #tpu.memory_space<vmem>>, vector<3x15xf32>
      tpu.vector_store %arg6[%c15_464, %c80_465], %263 {strides = array<i32>} : memref<27x256xf32, #tpu.memory_space<vmem>>, vector<3x15xf32>,
      %c0_466 = arith.constant 0 : index
      %c0_467 = arith.constant 0 : index
      %c6_468 = arith.constant 6 : index
      %c1_469 = arith.constant 1 : index
      %265 = vector.load %arg2[%c0_466, %c0_467, %c6_468, %c1_469] : memref<1x3x16x16xf32, #tpu.memory_space<vmem>>, vector<1x3x1x15xf32>
      %266 = vector.shape_cast %265 : vector<1x3x1x15xf32> to vector<3x15xf32>
      %c15_470 = arith.constant 15 : index
      %c96_471 = arith.constant 96 : index
      %267 = vector.load %arg6[%c15_470, %c96_471] : memref<27x256xf32, #tpu.memory_space<vmem>>, vector<3x15xf32>
      tpu.vector_store %arg6[%c15_470, %c96_471], %266 {strides = array<i32>} : memref<27x256xf32, #tpu.memory_space<vmem>>, vector<3x15xf32>,
      %c0_472 = arith.constant 0 : index
      %c0_473 = arith.constant 0 : index
      %c7_474 = arith.constant 7 : index
      %c1_475 = arith.constant 1 : index
      %268 = vector.load %arg2[%c0_472, %c0_473, %c7_474, %c1_475] : memref<1x3x16x16xf32, #tpu.memory_space<vmem>>, vector<1x3x1x15xf32>
      %269 = vector.shape_cast %268 : vector<1x3x1x15xf32> to vector<3x15xf32>
      %c15_476 = arith.constant 15 : index
      %c112_477 = arith.constant 112 : index
      %270 = vector.load %arg6[%c15_476, %c112_477] : memref<27x256xf32, #tpu.memory_space<vmem>>, vector<3x15xf32>
      tpu.vector_store %arg6[%c15_476, %c112_477], %269 {strides = array<i32>} : memref<27x256xf32, #tpu.memory_space<vmem>>, vector<3x15xf32>,
      %c0_478 = arith.constant 0 : index
      %c0_479 = arith.constant 0 : index
      %c8_480 = arith.constant 8 : index
      %c1_481 = arith.constant 1 : index
      %271 = vector.load %arg2[%c0_478, %c0_479, %c8_480, %c1_481] : memref<1x3x16x16xf32, #tpu.memory_space<vmem>>, vector<1x3x1x15xf32>
      %272 = vector.shape_cast %271 : vector<1x3x1x15xf32> to vector<3x15xf32>
      %c15_482 = arith.constant 15 : index
      %c128_483 = arith.constant 128 : index
      %273 = vector.load %arg6[%c15_482, %c128_483] : memref<27x256xf32, #tpu.memory_space<vmem>>, vector<3x15xf32>
      tpu.vector_store %arg6[%c15_482, %c128_483], %272 {strides = array<i32>} : memref<27x256xf32, #tpu.memory_space<vmem>>, vector<3x15xf32>,
      %c0_484 = arith.constant 0 : index
      %c0_485 = arith.constant 0 : index
      %c9_486 = arith.constant 9 : index
      %c1_487 = arith.constant 1 : index
      %274 = vector.load %arg2[%c0_484, %c0_485, %c9_486, %c1_487] : memref<1x3x16x16xf32, #tpu.memory_space<vmem>>, vector<1x3x1x15xf32>
      %275 = vector.shape_cast %274 : vector<1x3x1x15xf32> to vector<3x15xf32>
      %c15_488 = arith.constant 15 : index
      %c144_489 = arith.constant 144 : index
      %276 = vector.load %arg6[%c15_488, %c144_489] : memref<27x256xf32, #tpu.memory_space<vmem>>, vector<3x15xf32>
      tpu.vector_store %arg6[%c15_488, %c144_489], %275 {strides = array<i32>} : memref<27x256xf32, #tpu.memory_space<vmem>>, vector<3x15xf32>,
      %c0_490 = arith.constant 0 : index
      %c0_491 = arith.constant 0 : index
      %c10_492 = arith.constant 10 : index
      %c1_493 = arith.constant 1 : index
      %277 = vector.load %arg2[%c0_490, %c0_491, %c10_492, %c1_493] : memref<1x3x16x16xf32, #tpu.memory_space<vmem>>, vector<1x3x1x15xf32>
      %278 = vector.shape_cast %277 : vector<1x3x1x15xf32> to vector<3x15xf32>
      %c15_494 = arith.constant 15 : index
      %c160_495 = arith.constant 160 : index
      %279 = vector.load %arg6[%c15_494, %c160_495] : memref<27x256xf32, #tpu.memory_space<vmem>>, vector<3x15xf32>
      tpu.vector_store %arg6[%c15_494, %c160_495], %278 {strides = array<i32>} : memref<27x256xf32, #tpu.memory_space<vmem>>, vector<3x15xf32>,
      %c0_496 = arith.constant 0 : index
      %c0_497 = arith.constant 0 : index
      %c11_498 = arith.constant 11 : index
      %c1_499 = arith.constant 1 : index
      %280 = vector.load %arg2[%c0_496, %c0_497, %c11_498, %c1_499] : memref<1x3x16x16xf32, #tpu.memory_space<vmem>>, vector<1x3x1x15xf32>
      %281 = vector.shape_cast %280 : vector<1x3x1x15xf32> to vector<3x15xf32>
      %c15_500 = arith.constant 15 : index
      %c176_501 = arith.constant 176 : index
      %282 = vector.load %arg6[%c15_500, %c176_501] : memref<27x256xf32, #tpu.memory_space<vmem>>, vector<3x15xf32>
      tpu.vector_store %arg6[%c15_500, %c176_501], %281 {strides = array<i32>} : memref<27x256xf32, #tpu.memory_space<vmem>>, vector<3x15xf32>,
      %c0_502 = arith.constant 0 : index
      %c0_503 = arith.constant 0 : index
      %c12_504 = arith.constant 12 : index
      %c1_505 = arith.constant 1 : index
      %283 = vector.load %arg2[%c0_502, %c0_503, %c12_504, %c1_505] : memref<1x3x16x16xf32, #tpu.memory_space<vmem>>, vector<1x3x1x15xf32>
      %284 = vector.shape_cast %283 : vector<1x3x1x15xf32> to vector<3x15xf32>
      %c15_506 = arith.constant 15 : index
      %c192_507 = arith.constant 192 : index
      %285 = vector.load %arg6[%c15_506, %c192_507] : memref<27x256xf32, #tpu.memory_space<vmem>>, vector<3x15xf32>
      tpu.vector_store %arg6[%c15_506, %c192_507], %284 {strides = array<i32>} : memref<27x256xf32, #tpu.memory_space<vmem>>, vector<3x15xf32>,
      %c0_508 = arith.constant 0 : index
      %c0_509 = arith.constant 0 : index
      %c13_510 = arith.constant 13 : index
      %c1_511 = arith.constant 1 : index
      %286 = vector.load %arg2[%c0_508, %c0_509, %c13_510, %c1_511] : memref<1x3x16x16xf32, #tpu.memory_space<vmem>>, vector<1x3x1x15xf32>
      %287 = vector.shape_cast %286 : vector<1x3x1x15xf32> to vector<3x15xf32>
      %c15_512 = arith.constant 15 : index
      %c208_513 = arith.constant 208 : index
      %288 = vector.load %arg6[%c15_512, %c208_513] : memref<27x256xf32, #tpu.memory_space<vmem>>, vector<3x15xf32>
      tpu.vector_store %arg6[%c15_512, %c208_513], %287 {strides = array<i32>} : memref<27x256xf32, #tpu.memory_space<vmem>>, vector<3x15xf32>,
      %c0_514 = arith.constant 0 : index
      %c0_515 = arith.constant 0 : index
      %c14_516 = arith.constant 14 : index
      %c1_517 = arith.constant 1 : index
      %289 = vector.load %arg2[%c0_514, %c0_515, %c14_516, %c1_517] : memref<1x3x16x16xf32, #tpu.memory_space<vmem>>, vector<1x3x1x15xf32>
      %290 = vector.shape_cast %289 : vector<1x3x1x15xf32> to vector<3x15xf32>
      %c15_518 = arith.constant 15 : index
      %c224_519 = arith.constant 224 : index
      %291 = vector.load %arg6[%c15_518, %c224_519] : memref<27x256xf32, #tpu.memory_space<vmem>>, vector<3x15xf32>
      tpu.vector_store %arg6[%c15_518, %c224_519], %290 {strides = array<i32>} : memref<27x256xf32, #tpu.memory_space<vmem>>, vector<3x15xf32>,
      %c0_520 = arith.constant 0 : index
      %c0_521 = arith.constant 0 : index
      %c15_522 = arith.constant 15 : index
      %c1_523 = arith.constant 1 : index
      %292 = vector.load %arg2[%c0_520, %c0_521, %c15_522, %c1_523] : memref<1x3x16x16xf32, #tpu.memory_space<vmem>>, vector<1x3x1x15xf32>
      %293 = vector.shape_cast %292 : vector<1x3x1x15xf32> to vector<3x15xf32>
      %c15_524 = arith.constant 15 : index
      %c240_525 = arith.constant 240 : index
      %294 = vector.load %arg6[%c15_524, %c240_525] : memref<27x256xf32, #tpu.memory_space<vmem>>, vector<3x15xf32>
      tpu.vector_store %arg6[%c15_524, %c240_525], %293 {strides = array<i32>} : memref<27x256xf32, #tpu.memory_space<vmem>>, vector<3x15xf32>,
      %c0_526 = arith.constant 0 : index
      %c0_527 = arith.constant 0 : index
      %c1_528 = arith.constant 1 : index
      %c0_529 = arith.constant 0 : index
      %295 = vector.load %arg2[%c0_526, %c0_527, %c1_528, %c0_529] : memref<1x3x16x16xf32, #tpu.memory_space<vmem>>, vector<1x3x1x15xf32>
      %296 = vector.shape_cast %295 : vector<1x3x1x15xf32> to vector<3x15xf32>
      %c18 = arith.constant 18 : index
      %c1_530 = arith.constant 1 : index
      %297 = vector.load %arg6[%c18, %c1_530] : memref<27x256xf32, #tpu.memory_space<vmem>>, vector<3x15xf32>
      tpu.vector_store %arg6[%c18, %c1_530], %296 {strides = array<i32>} : memref<27x256xf32, #tpu.memory_space<vmem>>, vector<3x15xf32>,
      %c0_531 = arith.constant 0 : index
      %c0_532 = arith.constant 0 : index
      %c2_533 = arith.constant 2 : index
      %c0_534 = arith.constant 0 : index
      %298 = vector.load %arg2[%c0_531, %c0_532, %c2_533, %c0_534] : memref<1x3x16x16xf32, #tpu.memory_space<vmem>>, vector<1x3x1x15xf32>
      %299 = vector.shape_cast %298 : vector<1x3x1x15xf32> to vector<3x15xf32>
      %c18_535 = arith.constant 18 : index
      %c17_536 = arith.constant 17 : index
      %300 = vector.load %arg6[%c18_535, %c17_536] : memref<27x256xf32, #tpu.memory_space<vmem>>, vector<3x15xf32>
      tpu.vector_store %arg6[%c18_535, %c17_536], %299 {strides = array<i32>} : memref<27x256xf32, #tpu.memory_space<vmem>>, vector<3x15xf32>,
      %c0_537 = arith.constant 0 : index
      %c0_538 = arith.constant 0 : index
      %c3_539 = arith.constant 3 : index
      %c0_540 = arith.constant 0 : index
      %301 = vector.load %arg2[%c0_537, %c0_538, %c3_539, %c0_540] : memref<1x3x16x16xf32, #tpu.memory_space<vmem>>, vector<1x3x1x15xf32>
      %302 = vector.shape_cast %301 : vector<1x3x1x15xf32> to vector<3x15xf32>
      %c18_541 = arith.constant 18 : index
      %c33_542 = arith.constant 33 : index
      %303 = vector.load %arg6[%c18_541, %c33_542] : memref<27x256xf32, #tpu.memory_space<vmem>>, vector<3x15xf32>
      tpu.vector_store %arg6[%c18_541, %c33_542], %302 {strides = array<i32>} : memref<27x256xf32, #tpu.memory_space<vmem>>, vector<3x15xf32>,
      %c0_543 = arith.constant 0 : index
      %c0_544 = arith.constant 0 : index
      %c4_545 = arith.constant 4 : index
      %c0_546 = arith.constant 0 : index
      %304 = vector.load %arg2[%c0_543, %c0_544, %c4_545, %c0_546] : memref<1x3x16x16xf32, #tpu.memory_space<vmem>>, vector<1x3x1x15xf32>
      %305 = vector.shape_cast %304 : vector<1x3x1x15xf32> to vector<3x15xf32>
      %c18_547 = arith.constant 18 : index
      %c49_548 = arith.constant 49 : index
      %306 = vector.load %arg6[%c18_547, %c49_548] : memref<27x256xf32, #tpu.memory_space<vmem>>, vector<3x15xf32>
      tpu.vector_store %arg6[%c18_547, %c49_548], %305 {strides = array<i32>} : memref<27x256xf32, #tpu.memory_space<vmem>>, vector<3x15xf32>,
      %c0_549 = arith.constant 0 : index
      %c0_550 = arith.constant 0 : index
      %c5_551 = arith.constant 5 : index
      %c0_552 = arith.constant 0 : index
      %307 = vector.load %arg2[%c0_549, %c0_550, %c5_551, %c0_552] : memref<1x3x16x16xf32, #tpu.memory_space<vmem>>, vector<1x3x1x15xf32>
      %308 = vector.shape_cast %307 : vector<1x3x1x15xf32> to vector<3x15xf32>
      %c18_553 = arith.constant 18 : index
      %c65_554 = arith.constant 65 : index
      %309 = vector.load %arg6[%c18_553, %c65_554] : memref<27x256xf32, #tpu.memory_space<vmem>>, vector<3x15xf32>
      tpu.vector_store %arg6[%c18_553, %c65_554], %308 {strides = array<i32>} : memref<27x256xf32, #tpu.memory_space<vmem>>, vector<3x15xf32>,
      %c0_555 = arith.constant 0 : index
      %c0_556 = arith.constant 0 : index
      %c6_557 = arith.constant 6 : index
      %c0_558 = arith.constant 0 : index
      %310 = vector.load %arg2[%c0_555, %c0_556, %c6_557, %c0_558] : memref<1x3x16x16xf32, #tpu.memory_space<vmem>>, vector<1x3x1x15xf32>
      %311 = vector.shape_cast %310 : vector<1x3x1x15xf32> to vector<3x15xf32>
      %c18_559 = arith.constant 18 : index
      %c81_560 = arith.constant 81 : index
      %312 = vector.load %arg6[%c18_559, %c81_560] : memref<27x256xf32, #tpu.memory_space<vmem>>, vector<3x15xf32>
      tpu.vector_store %arg6[%c18_559, %c81_560], %311 {strides = array<i32>} : memref<27x256xf32, #tpu.memory_space<vmem>>, vector<3x15xf32>,
      %c0_561 = arith.constant 0 : index
      %c0_562 = arith.constant 0 : index
      %c7_563 = arith.constant 7 : index
      %c0_564 = arith.constant 0 : index
      %313 = vector.load %arg2[%c0_561, %c0_562, %c7_563, %c0_564] : memref<1x3x16x16xf32, #tpu.memory_space<vmem>>, vector<1x3x1x15xf32>
      %314 = vector.shape_cast %313 : vector<1x3x1x15xf32> to vector<3x15xf32>
      %c18_565 = arith.constant 18 : index
      %c97_566 = arith.constant 97 : index
      %315 = vector.load %arg6[%c18_565, %c97_566] : memref<27x256xf32, #tpu.memory_space<vmem>>, vector<3x15xf32>
      tpu.vector_store %arg6[%c18_565, %c97_566], %314 {strides = array<i32>} : memref<27x256xf32, #tpu.memory_space<vmem>>, vector<3x15xf32>,
      %c0_567 = arith.constant 0 : index
      %c0_568 = arith.constant 0 : index
      %c8_569 = arith.constant 8 : index
      %c0_570 = arith.constant 0 : index
      %316 = vector.load %arg2[%c0_567, %c0_568, %c8_569, %c0_570] : memref<1x3x16x16xf32, #tpu.memory_space<vmem>>, vector<1x3x1x15xf32>
      %317 = vector.shape_cast %316 : vector<1x3x1x15xf32> to vector<3x15xf32>
      %c18_571 = arith.constant 18 : index
      %c113_572 = arith.constant 113 : index
      %318 = vector.load %arg6[%c18_571, %c113_572] : memref<27x256xf32, #tpu.memory_space<vmem>>, vector<3x15xf32>
      tpu.vector_store %arg6[%c18_571, %c113_572], %317 {strides = array<i32>} : memref<27x256xf32, #tpu.memory_space<vmem>>, vector<3x15xf32>,
      %c0_573 = arith.constant 0 : index
      %c0_574 = arith.constant 0 : index
      %c9_575 = arith.constant 9 : index
      %c0_576 = arith.constant 0 : index
      %319 = vector.load %arg2[%c0_573, %c0_574, %c9_575, %c0_576] : memref<1x3x16x16xf32, #tpu.memory_space<vmem>>, vector<1x3x1x15xf32>
      %320 = vector.shape_cast %319 : vector<1x3x1x15xf32> to vector<3x15xf32>
      %c18_577 = arith.constant 18 : index
      %c129_578 = arith.constant 129 : index
      %321 = vector.load %arg6[%c18_577, %c129_578] : memref<27x256xf32, #tpu.memory_space<vmem>>, vector<3x15xf32>
      tpu.vector_store %arg6[%c18_577, %c129_578], %320 {strides = array<i32>} : memref<27x256xf32, #tpu.memory_space<vmem>>, vector<3x15xf32>,
      %c0_579 = arith.constant 0 : index
      %c0_580 = arith.constant 0 : index
      %c10_581 = arith.constant 10 : index
      %c0_582 = arith.constant 0 : index
      %322 = vector.load %arg2[%c0_579, %c0_580, %c10_581, %c0_582] : memref<1x3x16x16xf32, #tpu.memory_space<vmem>>, vector<1x3x1x15xf32>
      %323 = vector.shape_cast %322 : vector<1x3x1x15xf32> to vector<3x15xf32>
      %c18_583 = arith.constant 18 : index
      %c145_584 = arith.constant 145 : index
      %324 = vector.load %arg6[%c18_583, %c145_584] : memref<27x256xf32, #tpu.memory_space<vmem>>, vector<3x15xf32>
      tpu.vector_store %arg6[%c18_583, %c145_584], %323 {strides = array<i32>} : memref<27x256xf32, #tpu.memory_space<vmem>>, vector<3x15xf32>,
      %c0_585 = arith.constant 0 : index
      %c0_586 = arith.constant 0 : index
      %c11_587 = arith.constant 11 : index
      %c0_588 = arith.constant 0 : index
      %325 = vector.load %arg2[%c0_585, %c0_586, %c11_587, %c0_588] : memref<1x3x16x16xf32, #tpu.memory_space<vmem>>, vector<1x3x1x15xf32>
      %326 = vector.shape_cast %325 : vector<1x3x1x15xf32> to vector<3x15xf32>
      %c18_589 = arith.constant 18 : index
      %c161_590 = arith.constant 161 : index
      %327 = vector.load %arg6[%c18_589, %c161_590] : memref<27x256xf32, #tpu.memory_space<vmem>>, vector<3x15xf32>
      tpu.vector_store %arg6[%c18_589, %c161_590], %326 {strides = array<i32>} : memref<27x256xf32, #tpu.memory_space<vmem>>, vector<3x15xf32>,
      %c0_591 = arith.constant 0 : index
      %c0_592 = arith.constant 0 : index
      %c12_593 = arith.constant 12 : index
      %c0_594 = arith.constant 0 : index
      %328 = vector.load %arg2[%c0_591, %c0_592, %c12_593, %c0_594] : memref<1x3x16x16xf32, #tpu.memory_space<vmem>>, vector<1x3x1x15xf32>
      %329 = vector.shape_cast %328 : vector<1x3x1x15xf32> to vector<3x15xf32>
      %c18_595 = arith.constant 18 : index
      %c177_596 = arith.constant 177 : index
      %330 = vector.load %arg6[%c18_595, %c177_596] : memref<27x256xf32, #tpu.memory_space<vmem>>, vector<3x15xf32>
      tpu.vector_store %arg6[%c18_595, %c177_596], %329 {strides = array<i32>} : memref<27x256xf32, #tpu.memory_space<vmem>>, vector<3x15xf32>,
      %c0_597 = arith.constant 0 : index
      %c0_598 = arith.constant 0 : index
      %c13_599 = arith.constant 13 : index
      %c0_600 = arith.constant 0 : index
      %331 = vector.load %arg2[%c0_597, %c0_598, %c13_599, %c0_600] : memref<1x3x16x16xf32, #tpu.memory_space<vmem>>, vector<1x3x1x15xf32>
      %332 = vector.shape_cast %331 : vector<1x3x1x15xf32> to vector<3x15xf32>
      %c18_601 = arith.constant 18 : index
      %c193_602 = arith.constant 193 : index
      %333 = vector.load %arg6[%c18_601, %c193_602] : memref<27x256xf32, #tpu.memory_space<vmem>>, vector<3x15xf32>
      tpu.vector_store %arg6[%c18_601, %c193_602], %332 {strides = array<i32>} : memref<27x256xf32, #tpu.memory_space<vmem>>, vector<3x15xf32>,
      %c0_603 = arith.constant 0 : index
      %c0_604 = arith.constant 0 : index
      %c14_605 = arith.constant 14 : index
      %c0_606 = arith.constant 0 : index
      %334 = vector.load %arg2[%c0_603, %c0_604, %c14_605, %c0_606] : memref<1x3x16x16xf32, #tpu.memory_space<vmem>>, vector<1x3x1x15xf32>
      %335 = vector.shape_cast %334 : vector<1x3x1x15xf32> to vector<3x15xf32>
      %c18_607 = arith.constant 18 : index
      %c209_608 = arith.constant 209 : index
      %336 = vector.load %arg6[%c18_607, %c209_608] : memref<27x256xf32, #tpu.memory_space<vmem>>, vector<3x15xf32>
      tpu.vector_store %arg6[%c18_607, %c209_608], %335 {strides = array<i32>} : memref<27x256xf32, #tpu.memory_space<vmem>>, vector<3x15xf32>,
      %c0_609 = arith.constant 0 : index
      %c0_610 = arith.constant 0 : index
      %c15_611 = arith.constant 15 : index
      %c0_612 = arith.constant 0 : index
      %337 = vector.load %arg2[%c0_609, %c0_610, %c15_611, %c0_612] : memref<1x3x16x16xf32, #tpu.memory_space<vmem>>, vector<1x3x1x15xf32>
      %338 = vector.shape_cast %337 : vector<1x3x1x15xf32> to vector<3x15xf32>
      %c18_613 = arith.constant 18 : index
      %c225_614 = arith.constant 225 : index
      %339 = vector.load %arg6[%c18_613, %c225_614] : memref<27x256xf32, #tpu.memory_space<vmem>>, vector<3x15xf32>
      tpu.vector_store %arg6[%c18_613, %c225_614], %338 {strides = array<i32>} : memref<27x256xf32, #tpu.memory_space<vmem>>, vector<3x15xf32>,
      %c0_615 = arith.constant 0 : index
      %c0_616 = arith.constant 0 : index
      %c1_617 = arith.constant 1 : index
      %c0_618 = arith.constant 0 : index
      %340 = vector.load %arg2[%c0_615, %c0_616, %c1_617, %c0_618] : memref<1x3x16x16xf32, #tpu.memory_space<vmem>>, vector<1x3x1x16xf32>
      %341 = vector.shape_cast %340 : vector<1x3x1x16xf32> to vector<3x16xf32>
      %c21 = arith.constant 21 : index
      %c0_619 = arith.constant 0 : index
      %342 = vector.load %arg6[%c21, %c0_619] : memref<27x256xf32, #tpu.memory_space<vmem>>, vector<3x16xf32>
      tpu.vector_store %arg6[%c21, %c0_619], %341 {strides = array<i32>} : memref<27x256xf32, #tpu.memory_space<vmem>>, vector<3x16xf32>,
      %c0_620 = arith.constant 0 : index
      %c0_621 = arith.constant 0 : index
      %c2_622 = arith.constant 2 : index
      %c0_623 = arith.constant 0 : index
      %343 = vector.load %arg2[%c0_620, %c0_621, %c2_622, %c0_623] : memref<1x3x16x16xf32, #tpu.memory_space<vmem>>, vector<1x3x1x16xf32>
      %344 = vector.shape_cast %343 : vector<1x3x1x16xf32> to vector<3x16xf32>
      %c21_624 = arith.constant 21 : index
      %c16_625 = arith.constant 16 : index
      %345 = vector.load %arg6[%c21_624, %c16_625] : memref<27x256xf32, #tpu.memory_space<vmem>>, vector<3x16xf32>
      tpu.vector_store %arg6[%c21_624, %c16_625], %344 {strides = array<i32>} : memref<27x256xf32, #tpu.memory_space<vmem>>, vector<3x16xf32>,
      %c0_626 = arith.constant 0 : index
      %c0_627 = arith.constant 0 : index
      %c3_628 = arith.constant 3 : index
      %c0_629 = arith.constant 0 : index
      %346 = vector.load %arg2[%c0_626, %c0_627, %c3_628, %c0_629] : memref<1x3x16x16xf32, #tpu.memory_space<vmem>>, vector<1x3x1x16xf32>
      %347 = vector.shape_cast %346 : vector<1x3x1x16xf32> to vector<3x16xf32>
      %c21_630 = arith.constant 21 : index
      %c32_631 = arith.constant 32 : index
      %348 = vector.load %arg6[%c21_630, %c32_631] : memref<27x256xf32, #tpu.memory_space<vmem>>, vector<3x16xf32>
      tpu.vector_store %arg6[%c21_630, %c32_631], %347 {strides = array<i32>} : memref<27x256xf32, #tpu.memory_space<vmem>>, vector<3x16xf32>,
      %c0_632 = arith.constant 0 : index
      %c0_633 = arith.constant 0 : index
      %c4_634 = arith.constant 4 : index
      %c0_635 = arith.constant 0 : index
      %349 = vector.load %arg2[%c0_632, %c0_633, %c4_634, %c0_635] : memref<1x3x16x16xf32, #tpu.memory_space<vmem>>, vector<1x3x1x16xf32>
      %350 = vector.shape_cast %349 : vector<1x3x1x16xf32> to vector<3x16xf32>
      %c21_636 = arith.constant 21 : index
      %c48_637 = arith.constant 48 : index
      %351 = vector.load %arg6[%c21_636, %c48_637] : memref<27x256xf32, #tpu.memory_space<vmem>>, vector<3x16xf32>
      tpu.vector_store %arg6[%c21_636, %c48_637], %350 {strides = array<i32>} : memref<27x256xf32, #tpu.memory_space<vmem>>, vector<3x16xf32>,
      %c0_638 = arith.constant 0 : index
      %c0_639 = arith.constant 0 : index
      %c5_640 = arith.constant 5 : index
      %c0_641 = arith.constant 0 : index
      %352 = vector.load %arg2[%c0_638, %c0_639, %c5_640, %c0_641] : memref<1x3x16x16xf32, #tpu.memory_space<vmem>>, vector<1x3x1x16xf32>
      %353 = vector.shape_cast %352 : vector<1x3x1x16xf32> to vector<3x16xf32>
      %c21_642 = arith.constant 21 : index
      %c64_643 = arith.constant 64 : index
      %354 = vector.load %arg6[%c21_642, %c64_643] : memref<27x256xf32, #tpu.memory_space<vmem>>, vector<3x16xf32>
      tpu.vector_store %arg6[%c21_642, %c64_643], %353 {strides = array<i32>} : memref<27x256xf32, #tpu.memory_space<vmem>>, vector<3x16xf32>,
      %c0_644 = arith.constant 0 : index
      %c0_645 = arith.constant 0 : index
      %c6_646 = arith.constant 6 : index
      %c0_647 = arith.constant 0 : index
      %355 = vector.load %arg2[%c0_644, %c0_645, %c6_646, %c0_647] : memref<1x3x16x16xf32, #tpu.memory_space<vmem>>, vector<1x3x1x16xf32>
      %356 = vector.shape_cast %355 : vector<1x3x1x16xf32> to vector<3x16xf32>
      %c21_648 = arith.constant 21 : index
      %c80_649 = arith.constant 80 : index
      %357 = vector.load %arg6[%c21_648, %c80_649] : memref<27x256xf32, #tpu.memory_space<vmem>>, vector<3x16xf32>
      tpu.vector_store %arg6[%c21_648, %c80_649], %356 {strides = array<i32>} : memref<27x256xf32, #tpu.memory_space<vmem>>, vector<3x16xf32>,
      %c0_650 = arith.constant 0 : index
      %c0_651 = arith.constant 0 : index
      %c7_652 = arith.constant 7 : index
      %c0_653 = arith.constant 0 : index
      %358 = vector.load %arg2[%c0_650, %c0_651, %c7_652, %c0_653] : memref<1x3x16x16xf32, #tpu.memory_space<vmem>>, vector<1x3x1x16xf32>
      %359 = vector.shape_cast %358 : vector<1x3x1x16xf32> to vector<3x16xf32>
      %c21_654 = arith.constant 21 : index
      %c96_655 = arith.constant 96 : index
      %360 = vector.load %arg6[%c21_654, %c96_655] : memref<27x256xf32, #tpu.memory_space<vmem>>, vector<3x16xf32>
      tpu.vector_store %arg6[%c21_654, %c96_655], %359 {strides = array<i32>} : memref<27x256xf32, #tpu.memory_space<vmem>>, vector<3x16xf32>,
      %c0_656 = arith.constant 0 : index
      %c0_657 = arith.constant 0 : index
      %c8_658 = arith.constant 8 : index
      %c0_659 = arith.constant 0 : index
      %361 = vector.load %arg2[%c0_656, %c0_657, %c8_658, %c0_659] : memref<1x3x16x16xf32, #tpu.memory_space<vmem>>, vector<1x3x1x16xf32>
      %362 = vector.shape_cast %361 : vector<1x3x1x16xf32> to vector<3x16xf32>
      %c21_660 = arith.constant 21 : index
      %c112_661 = arith.constant 112 : index
      %363 = vector.load %arg6[%c21_660, %c112_661] : memref<27x256xf32, #tpu.memory_space<vmem>>, vector<3x16xf32>
      tpu.vector_store %arg6[%c21_660, %c112_661], %362 {strides = array<i32>} : memref<27x256xf32, #tpu.memory_space<vmem>>, vector<3x16xf32>,
      %c0_662 = arith.constant 0 : index
      %c0_663 = arith.constant 0 : index
      %c9_664 = arith.constant 9 : index
      %c0_665 = arith.constant 0 : index
      %364 = vector.load %arg2[%c0_662, %c0_663, %c9_664, %c0_665] : memref<1x3x16x16xf32, #tpu.memory_space<vmem>>, vector<1x3x1x16xf32>
      %365 = vector.shape_cast %364 : vector<1x3x1x16xf32> to vector<3x16xf32>
      %c21_666 = arith.constant 21 : index
      %c128_667 = arith.constant 128 : index
      %366 = vector.load %arg6[%c21_666, %c128_667] : memref<27x256xf32, #tpu.memory_space<vmem>>, vector<3x16xf32>
      tpu.vector_store %arg6[%c21_666, %c128_667], %365 {strides = array<i32>} : memref<27x256xf32, #tpu.memory_space<vmem>>, vector<3x16xf32>,
      %c0_668 = arith.constant 0 : index
      %c0_669 = arith.constant 0 : index
      %c10_670 = arith.constant 10 : index
      %c0_671 = arith.constant 0 : index
      %367 = vector.load %arg2[%c0_668, %c0_669, %c10_670, %c0_671] : memref<1x3x16x16xf32, #tpu.memory_space<vmem>>, vector<1x3x1x16xf32>
      %368 = vector.shape_cast %367 : vector<1x3x1x16xf32> to vector<3x16xf32>
      %c21_672 = arith.constant 21 : index
      %c144_673 = arith.constant 144 : index
      %369 = vector.load %arg6[%c21_672, %c144_673] : memref<27x256xf32, #tpu.memory_space<vmem>>, vector<3x16xf32>
      tpu.vector_store %arg6[%c21_672, %c144_673], %368 {strides = array<i32>} : memref<27x256xf32, #tpu.memory_space<vmem>>, vector<3x16xf32>,
      %c0_674 = arith.constant 0 : index
      %c0_675 = arith.constant 0 : index
      %c11_676 = arith.constant 11 : index
      %c0_677 = arith.constant 0 : index
      %370 = vector.load %arg2[%c0_674, %c0_675, %c11_676, %c0_677] : memref<1x3x16x16xf32, #tpu.memory_space<vmem>>, vector<1x3x1x16xf32>
      %371 = vector.shape_cast %370 : vector<1x3x1x16xf32> to vector<3x16xf32>
      %c21_678 = arith.constant 21 : index
      %c160_679 = arith.constant 160 : index
      %372 = vector.load %arg6[%c21_678, %c160_679] : memref<27x256xf32, #tpu.memory_space<vmem>>, vector<3x16xf32>
      tpu.vector_store %arg6[%c21_678, %c160_679], %371 {strides = array<i32>} : memref<27x256xf32, #tpu.memory_space<vmem>>, vector<3x16xf32>,
      %c0_680 = arith.constant 0 : index
      %c0_681 = arith.constant 0 : index
      %c12_682 = arith.constant 12 : index
      %c0_683 = arith.constant 0 : index
      %373 = vector.load %arg2[%c0_680, %c0_681, %c12_682, %c0_683] : memref<1x3x16x16xf32, #tpu.memory_space<vmem>>, vector<1x3x1x16xf32>
      %374 = vector.shape_cast %373 : vector<1x3x1x16xf32> to vector<3x16xf32>
      %c21_684 = arith.constant 21 : index
      %c176_685 = arith.constant 176 : index
      %375 = vector.load %arg6[%c21_684, %c176_685] : memref<27x256xf32, #tpu.memory_space<vmem>>, vector<3x16xf32>
      tpu.vector_store %arg6[%c21_684, %c176_685], %374 {strides = array<i32>} : memref<27x256xf32, #tpu.memory_space<vmem>>, vector<3x16xf32>,
      %c0_686 = arith.constant 0 : index
      %c0_687 = arith.constant 0 : index
      %c13_688 = arith.constant 13 : index
      %c0_689 = arith.constant 0 : index
      %376 = vector.load %arg2[%c0_686, %c0_687, %c13_688, %c0_689] : memref<1x3x16x16xf32, #tpu.memory_space<vmem>>, vector<1x3x1x16xf32>
      %377 = vector.shape_cast %376 : vector<1x3x1x16xf32> to vector<3x16xf32>
      %c21_690 = arith.constant 21 : index
      %c192_691 = arith.constant 192 : index
      %378 = vector.load %arg6[%c21_690, %c192_691] : memref<27x256xf32, #tpu.memory_space<vmem>>, vector<3x16xf32>
      tpu.vector_store %arg6[%c21_690, %c192_691], %377 {strides = array<i32>} : memref<27x256xf32, #tpu.memory_space<vmem>>, vector<3x16xf32>,
      %c0_692 = arith.constant 0 : index
      %c0_693 = arith.constant 0 : index
      %c14_694 = arith.constant 14 : index
      %c0_695 = arith.constant 0 : index
      %379 = vector.load %arg2[%c0_692, %c0_693, %c14_694, %c0_695] : memref<1x3x16x16xf32, #tpu.memory_space<vmem>>, vector<1x3x1x16xf32>
      %380 = vector.shape_cast %379 : vector<1x3x1x16xf32> to vector<3x16xf32>
      %c21_696 = arith.constant 21 : index
      %c208_697 = arith.constant 208 : index
      %381 = vector.load %arg6[%c21_696, %c208_697] : memref<27x256xf32, #tpu.memory_space<vmem>>, vector<3x16xf32>
      tpu.vector_store %arg6[%c21_696, %c208_697], %380 {strides = array<i32>} : memref<27x256xf32, #tpu.memory_space<vmem>>, vector<3x16xf32>,
      %c0_698 = arith.constant 0 : index
      %c0_699 = arith.constant 0 : index
      %c15_700 = arith.constant 15 : index
      %c0_701 = arith.constant 0 : index
      %382 = vector.load %arg2[%c0_698, %c0_699, %c15_700, %c0_701] : memref<1x3x16x16xf32, #tpu.memory_space<vmem>>, vector<1x3x1x16xf32>
      %383 = vector.shape_cast %382 : vector<1x3x1x16xf32> to vector<3x16xf32>
      %c21_702 = arith.constant 21 : index
      %c224_703 = arith.constant 224 : index
      %384 = vector.load %arg6[%c21_702, %c224_703] : memref<27x256xf32, #tpu.memory_space<vmem>>, vector<3x16xf32>
      tpu.vector_store %arg6[%c21_702, %c224_703], %383 {strides = array<i32>} : memref<27x256xf32, #tpu.memory_space<vmem>>, vector<3x16xf32>,
      %c0_704 = arith.constant 0 : index
      %c0_705 = arith.constant 0 : index
      %c1_706 = arith.constant 1 : index
      %c1_707 = arith.constant 1 : index
      %385 = vector.load %arg2[%c0_704, %c0_705, %c1_706, %c1_707] : memref<1x3x16x16xf32, #tpu.memory_space<vmem>>, vector<1x3x1x15xf32>
      %386 = vector.shape_cast %385 : vector<1x3x1x15xf32> to vector<3x15xf32>
      %c24 = arith.constant 24 : index
      %c0_708 = arith.constant 0 : index
      %387 = vector.load %arg6[%c24, %c0_708] : memref<27x256xf32, #tpu.memory_space<vmem>>, vector<3x15xf32>
      tpu.vector_store %arg6[%c24, %c0_708], %386 {strides = array<i32>} : memref<27x256xf32, #tpu.memory_space<vmem>>, vector<3x15xf32>,
      %c0_709 = arith.constant 0 : index
      %c0_710 = arith.constant 0 : index
      %c2_711 = arith.constant 2 : index
      %c1_712 = arith.constant 1 : index
      %388 = vector.load %arg2[%c0_709, %c0_710, %c2_711, %c1_712] : memref<1x3x16x16xf32, #tpu.memory_space<vmem>>, vector<1x3x1x15xf32>
      %389 = vector.shape_cast %388 : vector<1x3x1x15xf32> to vector<3x15xf32>
      %c24_713 = arith.constant 24 : index
      %c16_714 = arith.constant 16 : index
      %390 = vector.load %arg6[%c24_713, %c16_714] : memref<27x256xf32, #tpu.memory_space<vmem>>, vector<3x15xf32>
      tpu.vector_store %arg6[%c24_713, %c16_714], %389 {strides = array<i32>} : memref<27x256xf32, #tpu.memory_space<vmem>>, vector<3x15xf32>,
      %c0_715 = arith.constant 0 : index
      %c0_716 = arith.constant 0 : index
      %c3_717 = arith.constant 3 : index
      %c1_718 = arith.constant 1 : index
      %391 = vector.load %arg2[%c0_715, %c0_716, %c3_717, %c1_718] : memref<1x3x16x16xf32, #tpu.memory_space<vmem>>, vector<1x3x1x15xf32>
      %392 = vector.shape_cast %391 : vector<1x3x1x15xf32> to vector<3x15xf32>
      %c24_719 = arith.constant 24 : index
      %c32_720 = arith.constant 32 : index
      %393 = vector.load %arg6[%c24_719, %c32_720] : memref<27x256xf32, #tpu.memory_space<vmem>>, vector<3x15xf32>
      tpu.vector_store %arg6[%c24_719, %c32_720], %392 {strides = array<i32>} : memref<27x256xf32, #tpu.memory_space<vmem>>, vector<3x15xf32>,
      %c0_721 = arith.constant 0 : index
      %c0_722 = arith.constant 0 : index
      %c4_723 = arith.constant 4 : index
      %c1_724 = arith.constant 1 : index
      %394 = vector.load %arg2[%c0_721, %c0_722, %c4_723, %c1_724] : memref<1x3x16x16xf32, #tpu.memory_space<vmem>>, vector<1x3x1x15xf32>
      %395 = vector.shape_cast %394 : vector<1x3x1x15xf32> to vector<3x15xf32>
      %c24_725 = arith.constant 24 : index
      %c48_726 = arith.constant 48 : index
      %396 = vector.load %arg6[%c24_725, %c48_726] : memref<27x256xf32, #tpu.memory_space<vmem>>, vector<3x15xf32>
      tpu.vector_store %arg6[%c24_725, %c48_726], %395 {strides = array<i32>} : memref<27x256xf32, #tpu.memory_space<vmem>>, vector<3x15xf32>,
      %c0_727 = arith.constant 0 : index
      %c0_728 = arith.constant 0 : index
      %c5_729 = arith.constant 5 : index
      %c1_730 = arith.constant 1 : index
      %397 = vector.load %arg2[%c0_727, %c0_728, %c5_729, %c1_730] : memref<1x3x16x16xf32, #tpu.memory_space<vmem>>, vector<1x3x1x15xf32>
      %398 = vector.shape_cast %397 : vector<1x3x1x15xf32> to vector<3x15xf32>
      %c24_731 = arith.constant 24 : index
      %c64_732 = arith.constant 64 : index
      %399 = vector.load %arg6[%c24_731, %c64_732] : memref<27x256xf32, #tpu.memory_space<vmem>>, vector<3x15xf32>
      tpu.vector_store %arg6[%c24_731, %c64_732], %398 {strides = array<i32>} : memref<27x256xf32, #tpu.memory_space<vmem>>, vector<3x15xf32>,
      %c0_733 = arith.constant 0 : index
      %c0_734 = arith.constant 0 : index
      %c6_735 = arith.constant 6 : index
      %c1_736 = arith.constant 1 : index
      %400 = vector.load %arg2[%c0_733, %c0_734, %c6_735, %c1_736] : memref<1x3x16x16xf32, #tpu.memory_space<vmem>>, vector<1x3x1x15xf32>
      %401 = vector.shape_cast %400 : vector<1x3x1x15xf32> to vector<3x15xf32>
      %c24_737 = arith.constant 24 : index
      %c80_738 = arith.constant 80 : index
      %402 = vector.load %arg6[%c24_737, %c80_738] : memref<27x256xf32, #tpu.memory_space<vmem>>, vector<3x15xf32>
      tpu.vector_store %arg6[%c24_737, %c80_738], %401 {strides = array<i32>} : memref<27x256xf32, #tpu.memory_space<vmem>>, vector<3x15xf32>,
      %c0_739 = arith.constant 0 : index
      %c0_740 = arith.constant 0 : index
      %c7_741 = arith.constant 7 : index
      %c1_742 = arith.constant 1 : index
      %403 = vector.load %arg2[%c0_739, %c0_740, %c7_741, %c1_742] : memref<1x3x16x16xf32, #tpu.memory_space<vmem>>, vector<1x3x1x15xf32>
      %404 = vector.shape_cast %403 : vector<1x3x1x15xf32> to vector<3x15xf32>
      %c24_743 = arith.constant 24 : index
      %c96_744 = arith.constant 96 : index
      %405 = vector.load %arg6[%c24_743, %c96_744] : memref<27x256xf32, #tpu.memory_space<vmem>>, vector<3x15xf32>
      tpu.vector_store %arg6[%c24_743, %c96_744], %404 {strides = array<i32>} : memref<27x256xf32, #tpu.memory_space<vmem>>, vector<3x15xf32>,
      %c0_745 = arith.constant 0 : index
      %c0_746 = arith.constant 0 : index
      %c8_747 = arith.constant 8 : index
      %c1_748 = arith.constant 1 : index
      %406 = vector.load %arg2[%c0_745, %c0_746, %c8_747, %c1_748] : memref<1x3x16x16xf32, #tpu.memory_space<vmem>>, vector<1x3x1x15xf32>
      %407 = vector.shape_cast %406 : vector<1x3x1x15xf32> to vector<3x15xf32>
      %c24_749 = arith.constant 24 : index
      %c112_750 = arith.constant 112 : index
      %408 = vector.load %arg6[%c24_749, %c112_750] : memref<27x256xf32, #tpu.memory_space<vmem>>, vector<3x15xf32>
      tpu.vector_store %arg6[%c24_749, %c112_750], %407 {strides = array<i32>} : memref<27x256xf32, #tpu.memory_space<vmem>>, vector<3x15xf32>,
      %c0_751 = arith.constant 0 : index
      %c0_752 = arith.constant 0 : index
      %c9_753 = arith.constant 9 : index
      %c1_754 = arith.constant 1 : index
      %409 = vector.load %arg2[%c0_751, %c0_752, %c9_753, %c1_754] : memref<1x3x16x16xf32, #tpu.memory_space<vmem>>, vector<1x3x1x15xf32>
      %410 = vector.shape_cast %409 : vector<1x3x1x15xf32> to vector<3x15xf32>
      %c24_755 = arith.constant 24 : index
      %c128_756 = arith.constant 128 : index
      %411 = vector.load %arg6[%c24_755, %c128_756] : memref<27x256xf32, #tpu.memory_space<vmem>>, vector<3x15xf32>
      tpu.vector_store %arg6[%c24_755, %c128_756], %410 {strides = array<i32>} : memref<27x256xf32, #tpu.memory_space<vmem>>, vector<3x15xf32>,
      %c0_757 = arith.constant 0 : index
      %c0_758 = arith.constant 0 : index
      %c10_759 = arith.constant 10 : index
      %c1_760 = arith.constant 1 : index
      %412 = vector.load %arg2[%c0_757, %c0_758, %c10_759, %c1_760] : memref<1x3x16x16xf32, #tpu.memory_space<vmem>>, vector<1x3x1x15xf32>
      %413 = vector.shape_cast %412 : vector<1x3x1x15xf32> to vector<3x15xf32>
      %c24_761 = arith.constant 24 : index
      %c144_762 = arith.constant 144 : index
      %414 = vector.load %arg6[%c24_761, %c144_762] : memref<27x256xf32, #tpu.memory_space<vmem>>, vector<3x15xf32>
      tpu.vector_store %arg6[%c24_761, %c144_762], %413 {strides = array<i32>} : memref<27x256xf32, #tpu.memory_space<vmem>>, vector<3x15xf32>,
      %c0_763 = arith.constant 0 : index
      %c0_764 = arith.constant 0 : index
      %c11_765 = arith.constant 11 : index
      %c1_766 = arith.constant 1 : index
      %415 = vector.load %arg2[%c0_763, %c0_764, %c11_765, %c1_766] : memref<1x3x16x16xf32, #tpu.memory_space<vmem>>, vector<1x3x1x15xf32>
      %416 = vector.shape_cast %415 : vector<1x3x1x15xf32> to vector<3x15xf32>
      %c24_767 = arith.constant 24 : index
      %c160_768 = arith.constant 160 : index
      %417 = vector.load %arg6[%c24_767, %c160_768] : memref<27x256xf32, #tpu.memory_space<vmem>>, vector<3x15xf32>
      tpu.vector_store %arg6[%c24_767, %c160_768], %416 {strides = array<i32>} : memref<27x256xf32, #tpu.memory_space<vmem>>, vector<3x15xf32>,
      %c0_769 = arith.constant 0 : index
      %c0_770 = arith.constant 0 : index
      %c12_771 = arith.constant 12 : index
      %c1_772 = arith.constant 1 : index
      %418 = vector.load %arg2[%c0_769, %c0_770, %c12_771, %c1_772] : memref<1x3x16x16xf32, #tpu.memory_space<vmem>>, vector<1x3x1x15xf32>
      %419 = vector.shape_cast %418 : vector<1x3x1x15xf32> to vector<3x15xf32>
      %c24_773 = arith.constant 24 : index
      %c176_774 = arith.constant 176 : index
      %420 = vector.load %arg6[%c24_773, %c176_774] : memref<27x256xf32, #tpu.memory_space<vmem>>, vector<3x15xf32>
      tpu.vector_store %arg6[%c24_773, %c176_774], %419 {strides = array<i32>} : memref<27x256xf32, #tpu.memory_space<vmem>>, vector<3x15xf32>,
      %c0_775 = arith.constant 0 : index
      %c0_776 = arith.constant 0 : index
      %c13_777 = arith.constant 13 : index
      %c1_778 = arith.constant 1 : index
      %421 = vector.load %arg2[%c0_775, %c0_776, %c13_777, %c1_778] : memref<1x3x16x16xf32, #tpu.memory_space<vmem>>, vector<1x3x1x15xf32>
      %422 = vector.shape_cast %421 : vector<1x3x1x15xf32> to vector<3x15xf32>
      %c24_779 = arith.constant 24 : index
      %c192_780 = arith.constant 192 : index
      %423 = vector.load %arg6[%c24_779, %c192_780] : memref<27x256xf32, #tpu.memory_space<vmem>>, vector<3x15xf32>
      tpu.vector_store %arg6[%c24_779, %c192_780], %422 {strides = array<i32>} : memref<27x256xf32, #tpu.memory_space<vmem>>, vector<3x15xf32>,
      %c0_781 = arith.constant 0 : index
      %c0_782 = arith.constant 0 : index
      %c14_783 = arith.constant 14 : index
      %c1_784 = arith.constant 1 : index
      %424 = vector.load %arg2[%c0_781, %c0_782, %c14_783, %c1_784] : memref<1x3x16x16xf32, #tpu.memory_space<vmem>>, vector<1x3x1x15xf32>
      %425 = vector.shape_cast %424 : vector<1x3x1x15xf32> to vector<3x15xf32>
      %c24_785 = arith.constant 24 : index
      %c208_786 = arith.constant 208 : index
      %426 = vector.load %arg6[%c24_785, %c208_786] : memref<27x256xf32, #tpu.memory_space<vmem>>, vector<3x15xf32>
      tpu.vector_store %arg6[%c24_785, %c208_786], %425 {strides = array<i32>} : memref<27x256xf32, #tpu.memory_space<vmem>>, vector<3x15xf32>,
      %c0_787 = arith.constant 0 : index
      %c0_788 = arith.constant 0 : index
      %c15_789 = arith.constant 15 : index
      %c1_790 = arith.constant 1 : index
      %427 = vector.load %arg2[%c0_787, %c0_788, %c15_789, %c1_790] : memref<1x3x16x16xf32, #tpu.memory_space<vmem>>, vector<1x3x1x15xf32>
      %428 = vector.shape_cast %427 : vector<1x3x1x15xf32> to vector<3x15xf32>
      %c24_791 = arith.constant 24 : index
      %c224_792 = arith.constant 224 : index
      %429 = vector.load %arg6[%c24_791, %c224_792] : memref<27x256xf32, #tpu.memory_space<vmem>>, vector<3x15xf32>
      tpu.vector_store %arg6[%c24_791, %c224_792], %428 {strides = array<i32>} : memref<27x256xf32, #tpu.memory_space<vmem>>, vector<3x15xf32>,
    } else {
    }
    %c0 = arith.constant 0 : index
    %c0_1 = arith.constant 0 : index
    %3 = vector.load %arg3[%c0, %c0_1] : memref<64x27xf32, #tpu.memory_space<vmem>>, vector<64x27xf32>
    %c0_2 = arith.constant 0 : index
    %c0_3 = arith.constant 0 : index
    %4 = vector.load %arg6[%c0_2, %c0_3] : memref<27x256xf32, #tpu.memory_space<vmem>>, vector<27x256xf32>
    %cst = arith.constant dense<0.000000e+00> : vector<64x256xf32>
    %5 = tpu.matmul %3, %4, %cst {dimension_numbers = #tpu.dot_dimension_numbers<[1], [0], [0], [1], [0, 0, 1, 1], [], []>} : vector<64x27xf32>, vector<27x256xf32>, vector<64x256xf32> -> vector<64x256xf32>
    %c0_4 = arith.constant 0 : index
    %c0_5 = arith.constant 0 : index
    %6 = vector.load %arg4[%c0_4, %c0_5] : memref<64x1xf32, #tpu.memory_space<vmem>>, vector<64x1xf32>
    %7 = vector.broadcast %6 : vector<64x1xf32> to vector<64x256xf32>
    %8 = arith.addf %5, %7 : vector<64x256xf32>
    %cst_6 = arith.constant 0.000000e+00 : f32
    %9 = vector.broadcast %cst_6 : f32 to vector<64x256xf32>
    %10 = arith.maximumf %8, %9 : vector<64x256xf32>
    %c0_7 = arith.constant 0 : index
    %c0_8 = arith.constant 0 : index
    %c0_9 = arith.constant 0 : index
    %11 = vector.load %arg5[%c0_7, %c0_8, %c0_9] : memref<1x64x256xf32, #tpu.memory_space<vmem>>, vector<1x64x256xf32>
    %12 = vector.shape_cast %11 : vector<1x64x256xf32> to vector<64x256xf32>
    %13 = vector.shape_cast %10 : vector<64x256xf32> to vector<1x64x256xf32>
    tpu.vector_store %arg5[%c0_7, %c0_8, %c0_9], %13 {strides = array<i32>} : memref<1x64x256xf32, #tpu.memory_space<vmem>>, vector<1x64x256xf32>,
    return
  }
  func.func @transform_0(%arg0: i32, %arg1: i32) -> (i32, i32, i32, i32) {
    %c0_i32 = arith.constant 0 : i32
    %c0_i32_0 = arith.constant 0 : i32
    %c0_i32_1 = arith.constant 0 : i32
    %c0_i32_2 = arith.constant 0 : i32
    return %arg0, %c0_i32, %c0_i32_0, %c0_i32_1 : i32, i32, i32, i32
  }
  func.func @transform_1(%arg0: i32, %arg1: i32) -> (i32, i32) {
    %c0_i32 = arith.constant 0 : i32
    %c0_i32_0 = arith.constant 0 : i32
    return %arg1, %c0_i32 : i32, i32
  }
  func.func @transform_2(%arg0: i32, %arg1: i32) -> (i32, i32) {
    %c0_i32 = arith.constant 0 : i32
    %c0_i32_0 = arith.constant 0 : i32
    return %arg1, %c0_i32 : i32, i32
  }
  func.func @transform_3(%arg0: i32, %arg1: i32) -> (i32, i32, i32) {
    %c0_i32 = arith.constant 0 : i32
    %c0_i32_0 = arith.constant 0 : i32
    return %arg0, %arg1, %c0_i32 : i32, i32, i32
  }
}

</mosaic_0001>

<bundles_post_ra>
// kernel: tpu_custom_call.1
= control target key start
LH: loop header
LB: loop body
LE: loop exit
PB: predicated region body
PF: predicated region fallthrough
CT: control target
= control target key end

     0   :  { %8 = vsyncpa [#allocation4], 0  ;;  %s4217_s0 = inlined_call_operand.vmem [shape: f32[2,3,16,16], index: 0, kind: input, shape index: {}]   ;;  %s4218_s1 = inlined_call_operand.vmem [shape: f32[64,27], index: 1, kind: input, shape index: {}]   ;;  %s4219_s2 = inlined_call_operand.vmem [shape: f32[64,1], index: 2, kind: input, shape index: {}]   ;;  %s4220_s3 = inlined_call_operand.hbm [shape: f32[2,64,256], index: 3, kind: output, shape index: {}]  }
   0x1   :  { %10 = vsyncpa [#allocation4 + $0x1], 0  ;;  %s3030_s12 = smov 0   ;;  %s3032_s13 = smov 0  }
   0x2   :  { %s3034_s14 = smov 0   ;;  %s3036_s15 = smov 0  }
   0x3   :  { %s3038_s16 = smov 0   ;;  %s3040_s17 = smov 0  }
   0x4 LB: > { %s2788_s18 = sadd.s32 4294967295, %s2981_s17   ;;  %s2789_s19 = sadd.s32 4294967294, %s2981_s17   ;;  %s2981_s17 = sphi %s3040_s17, %s16_s17   ;;  %s2977_s16 = sphi %s3038_s16, %s4238_s16   ;;  %s2973_s15 = sphi %s3036_s15, %s4237_s15   ;;  %s2969_s14 = sphi %s3034_s14, %s4236_s14   ;;  %s2965_s13 = sphi %s3032_s13, %s4235_s13   ;;  %s2961_s12 = sphi %s3030_s12, %s4234_s12  }
   0x5   : > { %s28_s20 = sadd.s32 1, %s2977_s16  ;;  %s115_s21 = sadd.s32 1, %s2969_s14 }
   0x6   : > { %p30_p0 = scmp.ge.s32.totalorder %s28_s20, 2  ;;  %p125_p1 = scmp.ne.s32.totalorder %s2969_s14, %s2965_s13 }
   0x7   : > { %p126_p2 = scmp.eq.s32.totalorder %s2788_s18, 1  ;;  %p131_p3 = scmp.ne.s32.totalorder %s2965_s13, %s2961_s12 }
   0x8   : > { %s4240_s20 = smov (%p30_p0, %s28_s20), 0  ;;  %p132_p5 = scmp.eq.s32.totalorder %s2789_s19, 1 }
   0x9   : > { %p3070_p4 = por %p126_p2, %p125_p1  ;;  %s110_s23 = ssub.s32 %s2977_s16, %s4240_s20 }
   0xa   : > { %p2794_p6 = scmp.ge.s32.totalorder %s2981_s17, 1  ;;  %p113_p7 = scmp.eq.s32.totalorder %s110_s23, 0 }
   0xb   : > { %p3077_p8 = por %p132_p5, %p131_p3  ;;  %p176_p9 = scmp.lt.s32.totalorder %s2981_s17, 3 }
   0xc   : > { %s3083_s25 = scalar_select %p113_p7, %s2969_s14, %s115_s21  }
   0xd   : > { %p177_p10 = pnand %p2794_p6, %p176_p9 }
   0xe   : > { %p210_p11 = scmp.lt.s32.totalorder (!%p177_p10), %s2973_s15, 1  ;;  %s2984_s4 = smov (!%p177_p10), 49  }
   0xf   : > { %180 = sbr.rel (%p177_p10) target bundleno = 705 (0x2c1), region = 32  ;;  %s2985_s5 = smov (!%p177_p10), 17  }
  0x10   : > { %s2986_s6 = smov (!%p177_p10), 65   ;;  %s2987_s7 = smov (!%p177_p10), 33  }
  0x11   : > { %s2988_s8 = smov (!%p177_p10), 97   ;;  %s2989_s9 = smov (!%p177_p10), 81  }
  0x12   : > { %s2990_s10 = smov (!%p177_p10), 1   ;;  %s4221_s11 = smov (!%p177_p10), 113  }
  0x13   : > { %s2992_s18 = smov (!%p177_p10), 16   ;;  %s2993_s19 = smov (!%p177_p10), 48  }
  0x14   : > { %s211_s26 = scalar_select %p210_p11, %s2973_s15, 1  ;;  %v2983_v0 = vmov 0.0   ;;  %vm247_vm0 = vcmask 1041409   ;;  %vm250_vm1 = vcmask 1042434   ;;  %vm468_vm2 = vcmask 1044484  }
  0x15   : > { %232 = vst [vmem:[#allocation2] sm:$0xff] %v2983_v0  ;;  %233 = vst [vmem:[#allocation2 + $0x8] sm:$0xff] %v2983_v0  ;;  %2587 = vmatprep.mubr.f32.mxu0 %v2983_v0  ;;  %2611 = vmatprep.mubr.f32.mxu1 %v2983_v0  ;;  %vm471_vm3 = vcmask 1045509   ;;  %s2994_s21 = smov 32   ;;  %s2995_s23 = smov 80   ;;  %vm701_vm4 = vcmask 1047559  }
  0x16   : > { %234 = vst [vmem:[#allocation2 + $0x10] sm:$0xff] %v2983_v0  ;;  %235 = vst [vmem:[#allocation2 + $0x18] sm:$0xff] %v2983_v0  ;;  %s2821_s27 = smul.u32 48, %s211_s26  ;;  %s2996_s26 = smov 64   ;;  %vm975_vm5 = vcmask 1043459   ;;  %vm1224_vm6 = vcmask 1046534  }
  0x17   : > { %236 = vst [vmem:[#allocation2 + $0x20] sm:$0xff] %v2983_v0  ;;  %237 = vst [vmem:[#allocation2 + $0x28] sm:$0xff] %v2983_v0  ;;  %s4225_s28 = smov 96   ;;  %s2999_s29 = smov 15   ;;  %vm586_vm7 = vcmask 128003   ;;  %vm255_vm8 = vcmask 256136  }
  0x18   : > { %238 = vst [vmem:[#allocation2 + $0x30] sm:$0x7] %v2983_v0  ;;  %239 = vst [vmem:[#allocation2 + $0x38] sm:$0x7] %v2983_v0  ;;  %s3100_s30 = scalar_lea.vmem %s4217_s0, %s2821_s27  ;;  %s4223_s27 = smov 112   ;;  %vm270_vm9 = vcmask 387336  }
  0x19   : > { %v272_v1 = vld [vmem:[%s3100_s30 + $0x2] sm:$0x1]  ;;  %v273_v2 = vld [vmem:[%s3100_s30 + $0x12] sm:$0x1]  ;;  %v240_v6 = vld [vmem:[%s3100_s30] sm:$0x1] }
  0x1a   : > { %v274_v3 = vld [vmem:[%s3100_s30 + $0x22] sm:$0x1]  ;;  %v278_v4 = vrot.slane %v273_v2, 7  ;;  %v241_v7 = vld [vmem:[%s3100_s30 + $0x10] sm:$0x1]  ;;  %vm285_vm10 = vcmask 518536  }
  0x1b   : > { %v280_v5 = vrot.slane %v274_v3, 6  ;;  %v242_v8 = vld [vmem:[%s3100_s30 + $0x20] sm:$0x1]  ;;  %v246_v9 = vrot.slane %v241_v7, 7  ;;  %v287_v10 = vld [vmem:[%s3100_s30 + $0x3] sm:$0x1] }
  0x1c   : > { %v279_v11 = vsel %vm247_vm0, %v278_v4, %v272_v1  ;;  %v249_v12 = vrot.slane %v242_v8, 6  ;;  %v288_v13 = vld [vmem:[%s3100_s30 + $0x13] sm:$0x1]  ;;  %v289_v14 = vld [vmem:[%s3100_s30 + $0x23] sm:$0x1]  ;;  %vm300_vm11 = vcmask 649736  }
  0x1d   : > { %v281_v15 = vsel %vm250_vm1, %v280_v5, %v279_v11  ;;  %v248_v16 = vsel %vm247_vm0, %v246_v9, %v240_v6  ;;  %v293_v17 = vrot.slane %v288_v13, 7  ;;  %v295_v18 = vrot.slane %v289_v14, 6  ;;  %v257_v19 = vld [vmem:[%s3100_s30 + $0x1] sm:$0x1]  ;;  %v258_v20 = vld [vmem:[%s3100_s30 + $0x11] sm:$0x1] }
  0x1e   : > { %282 = vrot.lane.b32.xlu1 %v281_v15, %s2984_s4  ;;  %v251_v21 = vsel %vm250_vm1, %v249_v12, %v248_v16  ;;  %v259_v22 = vld [vmem:[%s3100_s30 + $0x21] sm:$0x1]  ;;  %v263_v23 = vrot.slane %v258_v20, 7  ;;  %v317_v24 = vld [vmem:[%s3100_s30 + $0x5] sm:$0x1]  ;;  %vm315_vm12 = vcmask 780936  }
  0x1f   : > { %252 = vrot.lane.b32.xlu0 %v251_v21, %s2985_s5  ;;  %v294_v25 = vsel %vm247_vm0, %v293_v17, %v287_v10  ;;  %v265_v26 = vrot.slane %v259_v22, 6  ;;  %v318_v27 = vld [vmem:[%s3100_s30 + $0x15] sm:$0x1]  ;;  %v319_v28 = vld [vmem:[%s3100_s30 + $0x25] sm:$0x1]  ;;  %vm330_vm13 = vcmask 912136  }
  0x20   : > { %v296_v29 = vsel %vm250_vm1, %v295_v18, %v294_v25  ;;  %v264_v30 = vsel %vm247_vm0, %v263_v23, %v257_v19  ;;  %v323_v31 = vrot.slane %v318_v27, 7  ;;  %v325_v32 = vrot.slane %v319_v28, 6  ;;  %v302_v33 = vld [vmem:[%s3100_s30 + $0x4] sm:$0x1]  ;;  %v303_v34 = vld [vmem:[%s3100_s30 + $0x14] sm:$0x1] }
  0x21   : > { %v266_v35 = vsel %vm250_vm1, %v265_v26, %v264_v30  ;;  %v304_v36 = vld [vmem:[%s3100_s30 + $0x24] sm:$0x1]  ;;  %v308_v37 = vrot.slane %v303_v34, 7  ;;  %v347_v38 = vld [vmem:[%s3100_s30 + $0x7] sm:$0x1]  ;;  %vm360_vm14 = vcmask 124936  }
  0x22   : > { %297 = vrot.lane.b32.xlu1 %v296_v29, %s2986_s6  ;;  %v324_v39 = vsel %vm247_vm0, %v323_v31, %v317_v24  ;;  %v310_v40 = vrot.slane %v304_v36, 6  ;;  %v348_v41 = vld [vmem:[%s3100_s30 + $0x17] sm:$0x1]  ;;  %v349_v42 = vld [vmem:[%s3100_s30 + $0x27] sm:$0x1]  ;;  %vm345_vm15 = vcmask 1043336  }
  0x23   : > { %267 = vrot.lane.b32.xlu0 %v266_v35, %s2987_s7  ;;  %v326_v43 = vsel %vm250_vm1, %v325_v32, %v324_v39  ;;  %v309_v44 = vsel %vm247_vm0, %v308_v37, %v302_v33  ;;  %v353_v45 = vrot.slane %v348_v41, 7  ;;  %v355_v46 = vrot.slane %v349_v42, 6  ;;  %v332_v47 = vld [vmem:[%s3100_s30 + $0x6] sm:$0x1]  ;;  %v333_v48 = vld [vmem:[%s3100_s30 + $0x16] sm:$0x1] }
  0x24   : > { %v311_v49 = vsel %vm250_vm1, %v310_v40, %v309_v44  ;;  %v334_v50 = vld [vmem:[%s3100_s30 + $0x26] sm:$0x1]  ;;  %v338_v51 = vrot.slane %v333_v48, 7  ;;  %v376_v52 = vld [vmem:[%s3100_s30 + $0x9] sm:$0x1] }
  0x25   : > { %v354_v53 = vsel %vm247_vm0, %v353_v45, %v347_v38  ;;  %v340_v54 = vrot.slane %v334_v50, 6  ;;  %v377_v55 = vld [vmem:[%s3100_s30 + $0x19] sm:$0x1]  ;;  %v378_v56 = vld [vmem:[%s3100_s30 + $0x29] sm:$0x1] }
  0x26   : > { %327 = vrot.lane.b32.xlu1 %v326_v43, %s2988_s8  ;;  %v339_v57 = vsel %vm247_vm0, %v338_v51, %v332_v47  ;;  %v382_v58 = vrot.slane %v377_v55, 7  ;;  %v362_v59 = vld [vmem:[%s3100_s30 + $0x8] sm:$0x1]  ;;  %v363_v60 = vld [vmem:[%s3100_s30 + $0x18] sm:$0x1]  ;;  %v356_v61 = vsel %vm250_vm1, %v355_v46, %v354_v53  ;;  %v384_v62 = vrot.slane %v378_v56, 6 }
  0x27   : > { %312 = vrot.lane.b32.xlu0 %v311_v49, %s2989_s9  ;;  %v364_v63 = vld [vmem:[%s3100_s30 + $0x28] sm:$0x1]  ;;  %v368_v1 = vrot.slane %v363_v60, 7  ;;  %v404_v2 = vld [vmem:[%s3100_s30 + $0xb] sm:$0x1]  ;;  %v341_v3 = vsel %vm250_vm1, %v340_v54, %v339_v57 }
  0x28   : > { %v383_v4 = vsel %vm247_vm0, %v382_v58, %v376_v52  ;;  %v370_v5 = vrot.slane %v364_v63, 6  ;;  %v405_v6 = vld [vmem:[%s3100_s30 + $0x1b] sm:$0x1]  ;;  %v406_v7 = vld [vmem:[%s3100_s30 + $0x2b] sm:$0x1] }
  0x29   : > { %v369_v8 = vsel %vm247_vm0, %v368_v1, %v362_v59  ;;  %v410_v9 = vrot.slane %v405_v6, 7  ;;  %v390_v10 = vld [vmem:[%s3100_s30 + $0xa] sm:$0x1]  ;;  %v391_v11 = vld [vmem:[%s3100_s30 + $0x1a] sm:$0x1]  ;;  %v385_v14 = vsel %vm250_vm1, %v384_v62, %v383_v4  ;;  %v412_v15 = vrot.slane %v406_v7, 6 }
  0x2a   : > { %357 = vrot.lane.b32.xlu1 %v356_v61, %s2990_s10  ;;  %v392_v12 = vld [vmem:[%s3100_s30 + $0x2a] sm:$0x1]  ;;  %v396_v13 = vrot.slane %v391_v11, 7  ;;  %v432_v17 = vld [vmem:[%s3100_s30 + $0xd] sm:$0x1]  ;;  %v371_v19 = vsel %vm250_vm1, %v370_v5, %v369_v8 }
  0x2b   : > { %342 = vrot.lane.b32.xlu0 %v341_v3, %s4221_s11  ;;  %v398_v16 = vrot.slane %v392_v12, 6  ;;  %v433_v18 = vld [vmem:[%s3100_s30 + $0x1d] sm:$0x1]  ;;  %v411_v20 = vsel %vm247_vm0, %v410_v9, %v404_v2  ;;  %v434_v22 = vld [vmem:[%s3100_s30 + $0x2d] sm:$0x1] }
  0x2c   : > { %v397_v21 = vsel %vm247_vm0, %v396_v13, %v390_v10  ;;  %v438_v23 = vrot.slane %v433_v18, 7  ;;  %v419_v24 = vld [vmem:[%s3100_s30 + $0x1c] sm:$0x1]  ;;  %v420_v25 = vld [vmem:[%s3100_s30 + $0x2c] sm:$0x1]  ;;  %v413_v31 = vsel %vm250_vm1, %v412_v15, %v411_v20  ;;  %v440_v33 = vrot.slane %v434_v22, 6 }
  0x2d   : > { %v424_v26 = vrot.slane %v419_v24, 7  ;;  %v460_v27 = vld [vmem:[%s3100_s30] sm:$0x1]  ;;  %v418_v28 = vld [vmem:[%s3100_s30 + $0xc] sm:$0x1]  ;;  %v399_v32 = vsel %vm250_vm1, %v398_v16, %v397_v21  ;;  %v426_v36 = vrot.slane %v420_v25, 6 }
  0x2e   : > { %386 = vrot.lane.b32.xlu1 %v385_v14, %s2987_s7  ;;  %v461_v29 = vld [vmem:[%s3100_s30 + $0x10] sm:$0x1]  ;;  %v462_v30 = vld [vmem:[%s3100_s30 + $0x20] sm:$0x1]  ;;  %v447_v34 = vld [vmem:[%s3100_s30 + $0x1e] sm:$0x1]  ;;  %v439_v35 = vsel %vm247_vm0, %v438_v23, %v432_v17 }
  0x2f   : > { %372 = vrot.lane.b32.xlu0 %v371_v19, %s2985_s5  ;;  %v466_v37 = vrot.slane %v460_v27, 5  ;;  %v467_v38 = vrot.slane %v461_v29, 4  ;;  %v494_v39 = vld [vmem:[%s3100_s30 + $0x2] sm:$0x1]  ;;  %v425_v40 = vsel %vm247_vm0, %v424_v26, %v418_v28  ;;  %v470_v41 = vrot.slane %v462_v30, 3 }
  0x30   : > { %v448_v42 = vld [vmem:[%s3100_s30 + $0x2e] sm:$0x1]  ;;  %v452_v43 = vrot.slane %v447_v34, 7  ;;  %v495_v44 = vld [vmem:[%s3100_s30 + $0x12] sm:$0x1]  ;;  %v441_v48 = vsel %vm250_vm1, %v440_v33, %v439_v35  ;;  %v500_v50 = vrot.slane %v494_v39, 5  ;;  %v427_v53 = vsel %vm250_vm1, %v426_v36, %v425_v40 }
  0x31   : > { %v446_v45 = vld [vmem:[%s3100_s30 + $0xe] sm:$0x1]  ;;  %v478_v46 = vld [vmem:[%s3100_s30 + $0x1] sm:$0x1]  ;;  %v479_v47 = vld [vmem:[%s3100_s30 + $0x11] sm:$0x1]  ;;  %v469_v54 = vsel %vm468_vm2, %v467_v38, %v466_v37 }
  0x32   : > { %414 = vrot.lane.b32.xlu1 %v413_v31, %s2986_s6  ;;  %v496_v49 = vld [vmem:[%s3100_s30 + $0x22] sm:$0x1]  ;;  %v501_v51 = vrot.slane %v495_v44, 4  ;;  %v480_v52 = vld [vmem:[%s3100_s30 + $0x21] sm:$0x1]  ;;  %v454_v55 = vrot.slane %v448_v42, 6  ;;  %v453_v58 = vsel %vm247_vm0, %v452_v43, %v446_v45  ;;  %v472_v2 = vsel %vm471_vm3, %v470_v41, %v469_v54 }
  0x33   : > { %400 = vrot.lane.b32.xlu0 %v399_v32, %s2984_s4  ;;  %v526_v56 = vld [vmem:[%s3100_s30 + $0x4] sm:$0x1]  ;;  %v527_v57 = vld [vmem:[%s3100_s30 + $0x14] sm:$0x1]  ;;  %v484_v59 = vrot.slane %v478_v46, 5  ;;  %v485_v60 = vrot.slane %v479_v47, 4 }
  0x34   : > { %v510_v61 = vld [vmem:[%s3100_s30 + $0x3] sm:$0x1]  ;;  %v511_v62 = vld [vmem:[%s3100_s30 + $0x13] sm:$0x1]  ;;  %v503_v63 = vrot.slane %v496_v49, 3  ;;  %v487_v1 = vrot.slane %v480_v52, 3  ;;  %v502_v3 = vsel %vm468_vm2, %v501_v51, %v500_v50  ;;  %v455_v8 = vsel %vm250_vm1, %v454_v55, %v453_v58 }
  0x35   : > { %v528_v4 = vld [vmem:[%s3100_s30 + $0x24] sm:$0x1]  ;;  %v532_v5 = vrot.slane %v526_v56, 5  ;;  %v533_v6 = vrot.slane %v527_v57, 4  ;;  %v512_v7 = vld [vmem:[%s3100_s30 + $0x23] sm:$0x1]  ;;  %v486_v13 = vsel %vm468_vm2, %v485_v60, %v484_v59 }
  0x36   : > { %442 = vrot.lane.b32.xlu1 %v441_v48, %s2988_s8  ;;  %v516_v9 = vrot.slane %v510_v61, 5  ;;  %v517_v10 = vrot.slane %v511_v62, 4  ;;  %v558_v11 = vld [vmem:[%s3100_s30 + $0x6] sm:$0x1]  ;;  %v559_v12 = vld [vmem:[%s3100_s30 + $0x16] sm:$0x1]  ;;  %v504_v16 = vsel %vm471_vm3, %v503_v63, %v502_v3  ;;  %v488_v23 = vsel %vm471_vm3, %v487_v1, %v486_v13 }
  0x37   : > { %428 = vrot.lane.b32.xlu0 %v427_v53, %s2989_s9  ;;  %v542_v14 = vld [vmem:[%s3100_s30 + $0x5] sm:$0x1]  ;;  %v543_v15 = vld [vmem:[%s3100_s30 + $0x15] sm:$0x1]  ;;  %v535_v17 = vrot.slane %v528_v4, 3  ;;  %v534_v18 = vsel %vm468_vm2, %v533_v6, %v532_v5  ;;  %v519_v19 = vrot.slane %v512_v7, 3 }
  0x38   : > { %v560_v20 = vld [vmem:[%s3100_s30 + $0x26] sm:$0x1]  ;;  %v564_v21 = vrot.slane %v558_v11, 5  ;;  %v565_v22 = vrot.slane %v559_v12, 4  ;;  %v518_v24 = vsel %vm468_vm2, %v517_v10, %v516_v9  ;;  %v544_v25 = vld [vmem:[%s3100_s30 + $0x25] sm:$0x1] }
  0x39   : > { %v548_v26 = vrot.slane %v542_v14, 5  ;;  %v549_v27 = vrot.slane %v543_v15, 4  ;;  %v603_v28 = vld [vmem:[%s3100_s30 + $0x9] sm:$0x1]  ;;  %v604_v29 = vld [vmem:[%s3100_s30 + $0x19] sm:$0x1]  ;;  %v536_v32 = vsel %vm471_vm3, %v535_v17, %v534_v18  ;;  %v520_v34 = vsel %vm471_vm3, %v519_v19, %v518_v24 }
  0x3a   : > { %473 = vrot.lane.b32.xlu1 %v472_v2, %s2992_s18  ;;  %v588_v30 = vld [vmem:[%s3100_s30 + $0x8] sm:$0x1]  ;;  %v589_v31 = vld [vmem:[%s3100_s30 + $0x18] sm:$0x1]  ;;  %v567_v33 = vrot.slane %v560_v20, 3  ;;  %v566_v35 = vsel %vm468_vm2, %v565_v22, %v564_v21  ;;  %v551_v36 = vrot.slane %v544_v25, 3 }
  0x3b   : > { %456 = vrot.lane.b32.xlu0 %v455_v8, %s4221_s11  ;;  %v605_v37 = vld [vmem:[%s3100_s30 + $0x29] sm:$0x1]  ;;  %v609_v38 = vrot.slane %v603_v28, 5  ;;  %v550_v39 = vsel %vm468_vm2, %v549_v27, %v548_v26  ;;  %v610_v40 = vrot.slane %v604_v29, 4  ;;  %v590_v41 = vld [vmem:[%s3100_s30 + $0x28] sm:$0x1] }
  0x3c   : > { %v594_v42 = vrot.slane %v588_v30, 5  ;;  %v595_v43 = vrot.slane %v589_v31, 4  ;;  %v633_v44 = vld [vmem:[%s3100_s30 + $0xb] sm:$0x1]  ;;  %v634_v45 = vld [vmem:[%s3100_s30 + $0x1b] sm:$0x1]  ;;  %v568_v48 = vsel %vm471_vm3, %v567_v33, %v566_v35  ;;  %v552_v49 = vsel %vm471_vm3, %v551_v36, %v550_v39 }
  0x3d   : > { %v618_v46 = vld [vmem:[%s3100_s30 + $0xa] sm:$0x1]  ;;  %v619_v47 = vld [vmem:[%s3100_s30 + $0x1a] sm:$0x1]  ;;  %v612_v50 = vrot.slane %v605_v37, 3  ;;  %v597_v51 = vrot.slane %v590_v41, 3  ;;  %v611_v52 = vsel %vm468_vm2, %v610_v40, %v609_v38 }
  0x3e   : > { %505 = vrot.lane.b32.xlu1 %v504_v16, %s2993_s19  ;;  %v596_v53 = vsel %vm468_vm2, %v595_v43, %v594_v42  ;;  %v635_v54 = vld [vmem:[%s3100_s30 + $0x2b] sm:$0x1]  ;;  %v639_v55 = vrot.slane %v633_v44, 5  ;;  %v640_v56 = vrot.slane %v634_v45, 4  ;;  %v620_v57 = vld [vmem:[%s3100_s30 + $0x2a] sm:$0x1] }
  0x3f   : > { %489 = vrot.lane.b32.xlu0 %v488_v23, %s2994_s21  ;;  %v624_v58 = vrot.slane %v618_v46, 5  ;;  %v625_v59 = vrot.slane %v619_v47, 4  ;;  %v663_v60 = vld [vmem:[%s3100_s30 + $0xd] sm:$0x1]  ;;  %v664_v61 = vld [vmem:[%s3100_s30 + $0x1d] sm:$0x1]  ;;  %v613_v1 = vsel %vm471_vm3, %v612_v50, %v611_v52  ;;  %v598_v2 = vsel %vm471_vm3, %v597_v51, %v596_v53 }
  0x40   : > { %v648_v62 = vld [vmem:[%s3100_s30 + $0xc] sm:$0x1]  ;;  %v649_v63 = vld [vmem:[%s3100_s30 + $0x1c] sm:$0x1]  ;;  %v642_v3 = vrot.slane %v635_v54, 3  ;;  %v641_v4 = vsel %vm468_vm2, %v640_v56, %v639_v55  ;;  %v627_v5 = vrot.slane %v620_v57, 3 }
  0x41   : > { %v665_v6 = vld [vmem:[%s3100_s30 + $0x2d] sm:$0x1]  ;;  %v669_v7 = vrot.slane %v663_v60, 5  ;;  %v670_v8 = vrot.slane %v664_v61, 4  ;;  %v626_v9 = vsel %vm468_vm2, %v625_v59, %v624_v58  ;;  %v650_v10 = vld [vmem:[%s3100_s30 + $0x2c] sm:$0x1] }
  0x42   : > { %537 = vrot.lane.b32.xlu1 %v536_v32, %s2995_s23  ;;  %v654_v11 = vrot.slane %v648_v62, 5  ;;  %v655_v12 = vrot.slane %v649_v63, 4  ;;  %v678_v13 = vld [vmem:[%s3100_s30 + $0xe] sm:$0x1]  ;;  %v679_v14 = vld [vmem:[%s3100_s30 + $0x1e] sm:$0x1]  ;;  %v643_v15 = vsel %vm471_vm3, %v642_v3, %v641_v4  ;;  %v628_v17 = vsel %vm471_vm3, %v627_v5, %v626_v9 }
  0x43   : > { %521 = vrot.lane.b32.xlu0 %v520_v34, %s2996_s26  ;;  %v672_v16 = vrot.slane %v665_v6, 3  ;;  %v671_v18 = vsel %vm468_vm2, %v670_v8, %v669_v7  ;;  %v657_v19 = vrot.slane %v650_v10, 3  ;;  %v693_v20 = vld [vmem:[%s3100_s30] sm:$0x1]  ;;  %v694_v21 = vld [vmem:[%s3100_s30 + $0x10] sm:$0x1] }
  0x44   : > { %v656_v22 = vsel %vm468_vm2, %v655_v12, %v654_v11  ;;  %v680_v23 = vld [vmem:[%s3100_s30 + $0x2e] sm:$0x1]  ;;  %v684_v24 = vrot.slane %v678_v13, 5  ;;  %v685_v25 = vrot.slane %v679_v14, 4  ;;  %v699_v27 = vrot.slane %v693_v20, 2  ;;  %s3000_s11 = smov 31  }
  0x45   : > { %v673_v26 = vsel %vm471_vm3, %v672_v16, %v671_v18  ;;  %v700_v28 = vrot.slane %v694_v21, 1  ;;  %v658_v29 = vsel %vm471_vm3, %v657_v19, %v656_v22  ;;  %v687_v30 = vrot.slane %v680_v23, 3  ;;  %v713_v31 = vld [vmem:[%s3100_s30 + $0x1] sm:$0x1]  ;;  %v714_v32 = vld [vmem:[%s3100_s30 + $0x11] sm:$0x1] }
  0x46   : > { %569 = vrot.lane.b32.xlu1 %v568_v48, %s4223_s27  ;;  %v686_v33 = vsel %vm468_vm2, %v685_v25, %v684_v24  ;;  %v719_v35 = vrot.slane %v713_v31, 2  ;;  %v720_v36 = vrot.slane %v714_v32, 1  ;;  %v732_v38 = vld [vmem:[%s3100_s30 + $0x2] sm:$0x1]  ;;  %v733_v39 = vld [vmem:[%s3100_s30 + $0x12] sm:$0x1] }
  0x47   : > { %553 = vrot.lane.b32.xlu0 %v552_v49, %s4225_s28  ;;  %v702_v34 = vsel %vm701_vm4, %v700_v28, %v699_v27  ;;  %v688_v37 = vsel %vm471_vm3, %v687_v30, %v686_v33  ;;  %v2330_v40 = vld [vmem:[%s3100_s30 + $0x19] sm:$0x1]  ;;  %v2210_v41 = vld [vmem:[%s3100_s30 + $0x11] sm:$0x1]  ;;  %v695_v43 = vld [vmem:[%s3100_s30 + $0x20] sm:$0x1] }
  0x48   : > { %v721_v42 = vsel %vm701_vm4, %v720_v36, %v719_v35  ;;  %v738_v44 = vrot.slane %v732_v38, 2  ;;  %v739_v45 = vrot.slane %v733_v39, 1  ;;  %v2329_v46 = vld [vmem:[%s3100_s30 + $0x9] sm:$0x1]  ;;  %v2335_v48 = vrot.slane %v2330_v40, 7 }
  0x49   : > { %v2331_v47 = vld [vmem:[%s3100_s30 + $0x29] sm:$0x1]  ;;  %v2211_v49 = vld [vmem:[%s3100_s30 + $0x21] sm:$0x1]  ;;  %v2215_v50 = vrot.slane %v2210_v41, 7 }
  0x4a   : > { %614 = vrot.lane.b32.xlu1 %v613_v1, %s2994_s21  ;;  %v2225_v51 = vld [vmem:[%s3100_s30 + $0x12] sm:$0x1]  ;;  %v2209_v52 = vld [vmem:[%s3100_s30 + $0x1] sm:$0x1]  ;;  %v740_v53 = vsel %vm701_vm4, %v739_v45, %v738_v44  ;;  %v2337_v54 = vrot.slane %v2331_v47, 6  ;;  %v2336_v56 = vsel %vm247_vm0, %v2335_v48, %v2329_v46  ;;  %v2217_v57 = vrot.slane %v2211_v49, 6 }
  0x4b   : > { %599 = vrot.lane.b32.xlu0 %v598_v2, %s2992_s18  ;;  %v715_v55 = vld [vmem:[%s3100_s30 + $0x21] sm:$0x1]  ;;  %v2226_v58 = vld [vmem:[%s3100_s30 + $0x22] sm:$0x1]  ;;  %v2230_v59 = vrot.slane %v2225_v51, 7  ;;  %v2216_v60 = vsel %vm247_vm0, %v2215_v50, %v2209_v52 }
  0x4c   : > { %v2224_v61 = vld [vmem:[%s3100_s30 + $0x2] sm:$0x1]  ;;  %v1613_v62 = vld [vmem:[%s3100_s30 + $0x28] sm:$0x1]  ;;  %v2344_v63 = vld [vmem:[%s3100_s30 + $0x1a] sm:$0x1]  ;;  %v2338_v1 = vsel %vm250_vm1, %v2337_v54, %v2336_v56  ;;  %v2218_v4 = vsel %vm250_vm1, %v2217_v57, %v2216_v60 }
  0x4d   : > { %v2232_v2 = vrot.slane %v2226_v58, 6  ;;  %v1612_v3 = vld [vmem:[%s3100_s30 + $0x18] sm:$0x1]  ;;  %v2231_v5 = vsel %vm247_vm0, %v2230_v59, %v2224_v61  ;;  %v1618_v6 = vrot.slane %v1613_v62, 7  ;;  %v1461_v7 = vld [vmem:[%s3100_s30 + $0x20] sm:$0x1] }
  0x4e   : > { %644 = vrot.lane.b32.xlu1 %v643_v15, %s2996_s26  ;;  %v2345_v8 = vld [vmem:[%s3100_s30 + $0x2a] sm:$0x1]  ;;  %v2349_v9 = vrot.slane %v2344_v63, 7  ;;  %v1747_v10 = vld [vmem:[%s3100_s30 + $0x1] sm:$0x1]  ;;  %v1466_v15 = vrot.slane %v1461_v7, 7 }
  0x4f   : > { %629 = vrot.lane.b32.xlu0 %v628_v17, %s2993_s19  ;;  %v1748_v11 = vld [vmem:[%s3100_s30 + $0x11] sm:$0x1]  ;;  %v2343_v12 = vld [vmem:[%s3100_s30 + $0xa] sm:$0x1]  ;;  %v2233_v13 = vsel %vm250_vm1, %v2232_v2, %v2231_v5  ;;  %v1460_v14 = vld [vmem:[%s3100_s30 + $0x10] sm:$0x1]  ;;  %v1619_v16 = vsel %vm247_vm0, %v1618_v6, %v1612_v3 }
  0x50   : > { %v2351_v17 = vrot.slane %v2345_v8, 6  ;;  %v1749_v18 = vld [vmem:[%s3100_s30 + $0x21] sm:$0x1]  ;;  %v1753_v19 = vrot.slane %v1747_v10, 6  ;;  %v1754_v20 = vrot.slane %v1748_v11, 5  ;;  %v2350_v21 = vsel %vm247_vm0, %v2349_v9, %v2343_v12 }
  0x51   : > { %v1630_v22 = vld [vmem:[%s3100_s30 + $0x29] sm:$0x1]  ;;  %v2240_v23 = vld [vmem:[%s3100_s30 + $0x13] sm:$0x1]  ;;  %v1876_v25 = vld [vmem:[%s3100_s30 + $0x19] sm:$0x1] }
  0x52   : > { %674 = vrot.lane.b32.xlu1 %v673_v26, %s4225_s28  ;;  %s3002_s28 = smov 127   ;;  %v1875_v24 = vld [vmem:[%s3100_s30 + $0x9] sm:$0x1]  ;;  %v1467_v26 = vsel %vm247_vm0, %v1466_v15, %v1460_v14  ;;  %v1756_v27 = vrot.slane %v1749_v18, 4  ;;  %v2352_v28 = vsel %vm250_vm1, %v2351_v17, %v2350_v21  ;;  %v1629_v30 = vld [vmem:[%s3100_s30 + $0x19] sm:$0x1] }
  0x53   : > { %659 = vrot.lane.b32.xlu0 %v658_v29, %s2995_s23  ;;  %v1755_v29 = vsel %vm975_vm5, %v1754_v20, %v1753_v19  ;;  %v1635_v31 = vrot.slane %v1630_v22, 7  ;;  %v2241_v32 = vld [vmem:[%s3100_s30 + $0x23] sm:$0x1]  ;;  %v2245_v33 = vrot.slane %v2240_v23, 7  ;;  %v1877_v35 = vld [vmem:[%s3100_s30 + $0x29] sm:$0x1] }
  0x54   : > { %v1881_v36 = vrot.slane %v1875_v24, 6  ;;  %v2358_v38 = vld [vmem:[%s3100_s30 + $0x1b] sm:$0x1]  ;;  %v1757_v39 = vsel %vm468_vm2, %v1756_v27, %v1755_v29  ;;  %v2247_v40 = vrot.slane %v2241_v32, 6  ;;  %v2359_v45 = vld [vmem:[%s3100_s30 + $0x2b] sm:$0x1] }
  0x55   : > { %v1636_v41 = vsel %vm247_vm0, %v1635_v31, %v1629_v30  ;;  %v2363_v46 = vrot.slane %v2358_v38, 7  ;;  %v2357_v47 = vld [vmem:[%s3100_s30 + $0xb] sm:$0x1]  ;;  %v1094_v48 = vld [vmem:[%s3100_s30 + $0x8] sm:$0x1]  ;;  %v2365_v52 = vrot.slane %v2359_v45, 6 }
  0x56   : > { %703 = vrot.lane.b32.xlu1 %v702_v34, %s2999_s29  ;;  %v2239_v34 = vld [vmem:[%s3100_s30 + $0x3] sm:$0x1]  ;;  %v1095_v49 = vld [vmem:[%s3100_s30 + $0x18] sm:$0x1]  ;;  %v1100_v56 = vrot.slane %v1094_v48, 7 }
  0x57   : > { %689 = vrot.lane.b32.xlu0 %v688_v37, %s4223_s27  ;;  %s3001_s27 = smov 47   ;;  %v1882_v37 = vrot.slane %v1876_v25, 5  ;;  %v2364_v54 = vsel %vm247_vm0, %v2363_v46, %v2357_v47  ;;  %v1101_v57 = vrot.slane %v1095_v49, 6  ;;  %v829_v58 = vld [vmem:[%s3100_s30 + $0x27] sm:$0x1] }
  0x58   : > { %v1647_v60 = vld [vmem:[%s3100_s30 + $0x2a] sm:$0x1]  ;;  %v2366_v61 = vsel %vm250_vm1, %v2365_v52, %v2364_v54  ;;  %v1479_v62 = vld [vmem:[%s3100_s30 + $0x11] sm:$0x1]  ;;  %v1891_v3 = vld [vmem:[%s3100_s30 + $0x1a] sm:$0x1] }
  0x59   : > { %v1883_v44 = vsel %vm975_vm5, %v1882_v37, %v1881_v36  ;;  %v1890_v2 = vld [vmem:[%s3100_s30 + $0xa] sm:$0x1]  ;;  %v1652_v5 = vrot.slane %v1647_v60, 7  ;;  %v1763_v6 = vld [vmem:[%s3100_s30 + $0x2] sm:$0x1]  ;;  %v1897_v14 = vrot.slane %v1891_v3, 5 }
  0x5a   : > { %722 = vrot.lane.b32.xlu1 %v721_v42, %s3000_s11  ;;  %v2246_v42 = vsel %vm247_vm0, %v2245_v33, %v2239_v34  ;;  %v1764_v7 = vld [vmem:[%s3100_s30 + $0x12] sm:$0x1]  ;;  %v1611_v9 = vld [vmem:[%s3100_s30 + $0x8] sm:$0x1]  ;;  %v1892_v10 = vld [vmem:[%s3100_s30 + $0x2a] sm:$0x1] }
  0x5b   : > { %705 = vrot.lane.b32.xlu0 %v695_v43, %s2999_s29  ;;  %v1884_v43 = vrot.slane %v1877_v35, 4  ;;  %v2248_v50 = vsel %vm250_vm1, %v2247_v40, %v2246_v42  ;;  %v1765_v11 = vld [vmem:[%s3100_s30 + $0x22] sm:$0x1]  ;;  %v2119_v15 = vld [vmem:[%s3100_s30 + $0xa] sm:$0x1]  ;;  %v1769_v17 = vrot.slane %v1763_v6, 6 }
  0x5c   : > { %v1770_v18 = vrot.slane %v1764_v7, 5  ;;  %v1994_v19 = vld [vmem:[%s3100_s30 + $0x2] sm:$0x1]  ;;  %v1995_v20 = vld [vmem:[%s3100_s30 + $0x12] sm:$0x1]  ;;  %v1617_v21 = vrot.slane %v1611_v9, 1 }
  0x5d   : > { %v1885_v51 = vsel %vm468_vm2, %v1884_v43, %v1883_v44  ;;  %v1899_v22 = vrot.slane %v1892_v10, 4  ;;  %v1772_v23 = vrot.slane %v1765_v11, 4  ;;  %v2121_v25 = vld [vmem:[%s3100_s30 + $0x2a] sm:$0x1]  ;;  %v2000_v30 = vrot.slane %v1994_v19, 3 }
  0x5e   : > { %741 = vrot.lane.b32.xlu1 %v740_v53, %s3001_s27  ;;  %v1480_v53 = vld [vmem:[%s3100_s30 + $0x21] sm:$0x1]  ;;  %v2001_v31 = vrot.slane %v1995_v20, 2  ;;  %v2372_v32 = vld [vmem:[%s3100_s30 + $0x1c] sm:$0x1]  ;;  %v1771_v34 = vsel %vm975_vm5, %v1770_v18, %v1769_v17  ;;  %v2128_v35 = vrot.slane %v2121_v25, 1 }
  0x5f   : > { %724 = vrot.lane.b32.xlu0 %v715_v55, %s3000_s11  ;;  %v1096_v55 = vld [vmem:[%s3100_s30 + $0x28] sm:$0x1]  ;;  %v1485_v59 = vrot.slane %v1480_v53, 7  ;;  %v2255_v33 = vld [vmem:[%s3100_s30 + $0x14] sm:$0x1]  ;;  %v1773_v44 = vsel %vm468_vm2, %v1772_v23, %v1771_v34 }
  0x60   : > { %v1103_v63 = vrot.slane %v1096_v55, 5  ;;  %v2371_v37 = vld [vmem:[%s3100_s30 + $0xc] sm:$0x1]  ;;  %v2256_v42 = vld [vmem:[%s3100_s30 + $0x24] sm:$0x1]  ;;  %v2260_v43 = vrot.slane %v2255_v33, 7  ;;  %v2002_v45 = vsel %vm1224_vm6, %v2001_v31, %v2000_v30 }
  0x61   : > { %v1486_v8 = vsel %vm247_vm0, %v1485_v59, %v1479_v62  ;;  %v2373_v40 = vld [vmem:[%s3100_s30 + $0x2c] sm:$0x1]  ;;  %v965_v46 = vld [vmem:[%s3100_s30] sm:$0x1]  ;;  %v574_v47 = vld [vmem:[%s3100_s30 + $0x7] sm:$0x1] }
  0x62   : > { %2339 = vrot.lane.b32.xlu1 %v2338_v1, %s3002_s28  ;;  %v1102_v1 = vsel %vm250_vm1, %v1101_v57, %v1100_v56  ;;  %v575_v48 = vld [vmem:[%s3100_s30 + $0x17] sm:$0x1]  ;;  %v966_v49 = vld [vmem:[%s3100_s30 + $0x10] sm:$0x1]  ;;  %v2254_v54 = vld [vmem:[%s3100_s30 + $0x4] sm:$0x1] }
  0x63   : > { %2219 = vrot.lane.b32.xlu0 %v2218_v4, %s3002_s28  ;;  %v1646_v4 = vld [vmem:[%s3100_s30 + $0x1a] sm:$0x1]  ;;  %v1104_v12 = vsel %vm975_vm5, %v1103_v63, %v1102_v1  ;;  %v581_v52 = vrot.slane %v575_v48, 4  ;;  %v2262_v60 = vrot.slane %v2256_v42, 6  ;;  %v971_v62 = vrot.slane %v965_v46, 7 }
  0x64   : > { %v1653_v24 = vsel %vm247_vm0, %v1652_v5, %v1646_v4  ;;  %v972_v63 = vrot.slane %v966_v49, 6  ;;  %v1354_v3 = vld [vmem:[%s3100_s30 + $0x9] sm:$0x1]  ;;  %v1355_v4 = vld [vmem:[%s3100_s30 + $0x19] sm:$0x1] }
  0x65   : > { %v1109_v5 = vld [vmem:[%s3100_s30 + $0x9] sm:$0x1]  ;;  %v1110_v6 = vld [vmem:[%s3100_s30 + $0x19] sm:$0x1]  ;;  %v848_v19 = vld [vmem:[%s3100_s30 + $0x28] sm:$0x1] }
  0x66   : > { %2234 = vrot.lane.b32.xlu1 %v2233_v13, %s2999_s29  ;;  %v1896_v13 = vrot.slane %v1890_v2, 6  ;;  %v2261_v2 = vsel %vm247_vm0, %v2260_v43, %v2254_v54  ;;  %v973_v10 = vsel %vm250_vm1, %v972_v63, %v971_v62  ;;  %v1356_v11 = vld [vmem:[%s3100_s30 + $0x29] sm:$0x1]  ;;  %v1664_v30 = vld [vmem:[%s3100_s30 + $0x2b] sm:$0x1] }
  0x67   : > { %1622 = vrot.lane.b32.xlu0 %v1619_v16, %s3002_s28  ;;  %v2120_v16 = vld [vmem:[%s3100_s30 + $0x1a] sm:$0x1]  ;;  %v2263_v9 = vsel %vm250_vm1, %v2262_v60, %v2261_v2  ;;  %v1363_v18 = vrot.slane %v1356_v11, 2  ;;  %v1906_v33 = vld [vmem:[%s3100_s30 + $0x1b] sm:$0x1] }
  0x68   : > { %v2126_v27 = vrot.slane %v2120_v16, 2  ;;  %v1898_v29 = vsel %vm975_vm5, %v1897_v14, %v1896_v13  ;;  %v1361_v13 = vrot.slane %v1355_v4, 3  ;;  %v1111_v14 = vld [vmem:[%s3100_s30 + $0x29] sm:$0x1]  ;;  %v1116_v16 = vrot.slane %v1110_v6, 6 }
  0x69   : > { %v1900_v38 = vsel %vm468_vm2, %v1899_v22, %v1898_v29  ;;  %v1499_v22 = vld [vmem:[%s3100_s30 + $0x22] sm:$0x1]  ;;  %v1459_v29 = vld [vmem:[%s3100_s30] sm:$0x1]  ;;  %v1779_v34 = vld [vmem:[%s3100_s30 + $0x3] sm:$0x1] }
  0x6a   : > { %1470 = vrot.lane.b32.xlu1 %v1467_v26, %s3002_s28  ;;  %v2125_v26 = vrot.slane %v2119_v15, 3  ;;  %v1115_v15 = vrot.slane %v1109_v5, 7  ;;  %v1504_v25 = vrot.slane %v1499_v22, 7  ;;  %v1907_v42 = vld [vmem:[%s3100_s30 + $0x2b] sm:$0x1] }
  0x6b   : > { %2353 = vrot.lane.b32.xlu0 %v2352_v28, %s2999_s29  ;;  %v1996_v28 = vld [vmem:[%s3100_s30 + $0x22] sm:$0x1]  ;;  %v2134_v49 = vld [vmem:[%s3100_s30 + $0xb] sm:$0x1]  ;;  %v2012_v62 = vld [vmem:[%s3100_s30 + $0x23] sm:$0x1] }
  0x6c   : > { %v2003_v36 = vrot.slane %v1996_v28, 1  ;;  %v1117_v23 = vsel %vm250_vm1, %v1116_v16, %v1115_v15  ;;  %v1498_v28 = vld [vmem:[%s3100_s30 + $0x12] sm:$0x1]  ;;  %v2140_v60 = vrot.slane %v2134_v49, 3  ;;  %v2386_v4 = vld [vmem:[%s3100_s30 + $0x1d] sm:$0x1] }
  0x6d   : > { %v2270_v5 = vld [vmem:[%s3100_s30 + $0x15] sm:$0x1]  ;;  %v865_v49 = vld [vmem:[%s3100_s30 + $0x29] sm:$0x1] }
  0x6e   : > { %1758 = vrot.lane.b32.xlu1 %v1757_v39, %s2990_s10  ;;  %v2127_v39 = vsel %vm1224_vm6, %v2126_v27, %v2125_v26  ;;  %v2004_v56 = vsel %vm701_vm4, %v2003_v36, %v2002_v45  ;;  %v1505_v36 = vsel %vm247_vm0, %v1504_v25, %v1498_v28  ;;  %v1781_v45 = vld [vmem:[%s3100_s30 + $0x23] sm:$0x1]  ;;  %v2275_v15 = vrot.slane %v2270_v5, 7  ;;  %v828_v28 = vld [vmem:[%s3100_s30 + $0x17] sm:$0x1] }
  0x6f   : > { %1639 = vrot.lane.b32.xlu0 %v1636_v41, %s2999_s29  ;;  %v2377_v41 = vrot.slane %v2372_v32, 7  ;;  %v2129_v53 = vsel %vm701_vm4, %v2128_v35, %v2127_v39  ;;  %v1905_v32 = vld [vmem:[%s3100_s30 + $0xb] sm:$0x1]  ;;  %v1780_v35 = vld [vmem:[%s3100_s30 + $0x13] sm:$0x1]  ;;  %v1669_v39 = vrot.slane %v1664_v30, 7 }
  0x70   : > { %v1911_v43 = vrot.slane %v1905_v32, 6  ;;  %v1786_v48 = vrot.slane %v1780_v35, 5  ;;  %v982_v32 = vld [vmem:[%s3100_s30 + $0x1] sm:$0x1] }
  0x71   : > { %v2378_v57 = vsel %vm247_vm0, %v2377_v41, %v2371_v37  ;;  %v1465_v37 = vrot.slane %v1459_v29, 1  ;;  %v1124_v29 = vld [vmem:[%s3100_s30 + $0xa] sm:$0x1]  ;;  %v984_v35 = vld [vmem:[%s3100_s30 + $0x21] sm:$0x1] }
  0x72   : > { %2249 = vrot.lane.b32.xlu1 %v2248_v50, %s3000_s11  ;;  %v576_v50 = vld [vmem:[%s3100_s30 + $0x27] sm:$0x1]  ;;  %v1980_v5 = vld [vmem:[%s3100_s30 + $0x1] sm:$0x1] }
  0x73   : > { %1886 = vrot.lane.b32.xlu0 %v1885_v51, %s2990_s10  ;;  %v580_v51 = vrot.slane %v574_v47, 5  ;;  %v583_v55 = vrot.slane %v576_v50, 3  ;;  %v1785_v47 = vrot.slane %v1779_v34, 6  ;;  %v2135_v50 = vld [vmem:[%s3100_s30 + $0x1b] sm:$0x1] }
  0x74   : > { %v1126_v34 = vld [vmem:[%s3100_s30 + $0x2a] sm:$0x1] }
  0x75   : > { %v582_v59 = vsel %vm468_vm2, %v581_v52, %v580_v51  ;;  %v2010_v51 = vld [vmem:[%s3100_s30 + $0x3] sm:$0x1]  ;;  %v2011_v52 = vld [vmem:[%s3100_s30 + $0x13] sm:$0x1] }
  0x76   : > { %838 = vrot.lane.b32.xlu1 %v829_v58, %s3002_s28  ;;  %v2379_v58 = vrot.slane %v2373_v40, 6  ;;  %v584_v1 = vsel %vm471_vm3, %v583_v55, %v582_v59  ;;  %v1628_v40 = vld [vmem:[%s3100_s30 + $0x9] sm:$0x1]  ;;  %v1914_v55 = vrot.slane %v1907_v42, 4  ;;  %v2136_v59 = vld [vmem:[%s3100_s30 + $0x2b] sm:$0x1] }
  0x77   : > { %2367 = vrot.lane.b32.xlu0 %v2366_v61, %s3000_s11  ;;  %v967_v61 = vld [vmem:[%s3100_s30 + $0x20] sm:$0x1]  ;;  %587 = vst.msk [vmem:[#allocation2 + $0x8] sm:$0x38] %vm586_vm7, %v584_v1  ;;  %v1634_v54 = vrot.slane %v1628_v40, 1  ;;  %v1787_v1 = vsel %vm975_vm5, %v1786_v48, %v1785_v47  ;;  %v2016_v2 = vrot.slane %v2010_v51, 3 }
  0x78   : > { %v2380_v7 = vsel %vm250_vm1, %v2379_v58, %v2378_v57  ;;  %v1369_v40 = vld [vmem:[%s3100_s30 + $0xa] sm:$0x1]  ;;  %v1229_v47 = vld [vmem:[%s3100_s30 + $0x1] sm:$0x1]  ;;  %v991_v51 = vrot.slane %v984_v35, 5  ;;  %vm1992_vm7 = vcmask 130053  }
  0x79   : > { %v1341_v35 = vld [vmem:[%s3100_s30 + $0x8] sm:$0x1] }
  0x7a   : > { %1489 = vrot.lane.b32.xlu1 %v1486_v8, %s2999_s29  ;;  %v974_v8 = vrot.slane %v967_v61, 5  ;;  %v2141_v61 = vrot.slane %v2135_v50, 2  ;;  %v1133_v50 = vrot.slane %v1126_v34, 5  ;;  %v1921_v34 = vld [vmem:[%s3100_s30 + $0x1c] sm:$0x1] }
  0x7b   : > { %1105 = vrot.lane.b32.xlu0 %v1104_v12, %s2990_s10  ;;  %v1360_v12 = vrot.slane %v1354_v3, 4  ;;  %v2017_v3 = vrot.slane %v2011_v52, 2  ;;  %v1371_v52 = vld [vmem:[%s3100_s30 + $0x2a] sm:$0x1] }
  0x7c   : > { %v976_v17 = vsel %vm975_vm5, %v974_v8, %v973_v10  ;;  %v2019_v8 = vrot.slane %v2012_v62, 1  ;;  %v2142_v11 = vsel %vm1224_vm6, %v2141_v61, %v2140_v60  ;;  %v2107_v60 = vld [vmem:[%s3100_s30 + $0x19] sm:$0x1]  ;;  %v2108_v61 = vld [vmem:[%s3100_s30 + $0x29] sm:$0x1] }
  0x7d   : > { %v1362_v20 = vsel %vm471_vm3, %v1361_v13, %v1360_v12  ;;  %v2387_v12 = vld [vmem:[%s3100_s30 + $0x2d] sm:$0x1]  ;;  %v2391_v13 = vrot.slane %v2386_v4, 7  ;;  %v2115_v4 = vrot.slane %v2108_v61, 1  ;;  %v2026_v61 = vld [vmem:[%s3100_s30 + $0x4] sm:$0x1] }
  0x7e   : > { %1656 = vrot.lane.b32.xlu1 %v1653_v24, %s3000_s11  ;;  %v1364_v24 = vsel %vm1224_vm6, %v1363_v18, %v1362_v20  ;;  %v2385_v18 = vld [vmem:[%s3100_s30 + $0xd] sm:$0x1] }
  0x7f   : > { %1620 = vrot.lane.b32.xlu0 %v1617_v21, %s3002_s28  ;;  %v1118_v21 = vrot.slane %v1111_v14, 5  ;;  %v2271_v14 = vld [vmem:[%s3100_s30 + $0x25] sm:$0x1]  ;;  %v2392_v25 = vsel %vm247_vm0, %v2391_v13, %v2385_v18 }
  0x80   : > { %v2277_v22 = vrot.slane %v2271_v14, 6 }
  0x81   : > { %v1119_v27 = vsel %vm975_vm5, %v1118_v21, %v1117_v23  ;;  %v2393_v21 = vrot.slane %v2387_v12, 6 }
  0x82   : > { %1901 = vrot.lane.b32.xlu1 %v1900_v38, %s2985_s5  ;;  %v1663_v38 = vld [vmem:[%s3100_s30 + $0x1b] sm:$0x1] }
  0x83   : > { %1774 = vrot.lane.b32.xlu0 %v1773_v44, %s2985_s5  ;;  %v1912_v44 = vrot.slane %v1906_v33, 5  ;;  %v983_v33 = vld [vmem:[%s3100_s30 + $0x11] sm:$0x1] }
  0x85   : > { %v1913_v58 = vsel %vm975_vm5, %v1912_v44, %v1911_v43  ;;  %v1130_v43 = vrot.slane %v1124_v29, 7  ;;  %v1478_v29 = vld [vmem:[%s3100_s30 + $0x1] sm:$0x1] }
  0x86   : > { %2130 = vrot.lane.b32.xlu1 %v2129_v53, %s2992_s18  ;;  %v1670_v53 = vsel %vm247_vm0, %v1669_v39, %v1663_v38  ;;  %v1915_v6 = vsel %vm468_vm2, %v1914_v55, %v1913_v58  ;;  %v834_v39 = vrot.slane %v828_v28, 1  ;;  %v1230_v55 = vld [vmem:[%s3100_s30 + $0x11] sm:$0x1]  ;;  %v1231_v58 = vld [vmem:[%s3100_s30 + $0x21] sm:$0x1] }
  0x87   : > { %2005 = vrot.lane.b32.xlu0 %v2004_v56, %s2992_s18  ;;  %v1788_v56 = vrot.slane %v1781_v45, 4  ;;  %v988_v45 = vrot.slane %v982_v32, 7 }
  0x89   : > { %v1789_v10 = vsel %vm468_vm2, %v1788_v56, %v1787_v1  ;;  %v2106_v56 = vld [vmem:[%s3100_s30 + $0x9] sm:$0x1] }
  0x8a   : > { %2381 = vrot.lane.b32.xlu1 %v2380_v7, %s3001_s27  ;;  %v2143_v7 = vrot.slane %v2136_v59, 1  ;;  %v1235_v59 = vrot.slane %v1229_v47, 4  ;;  %v2112_v62 = vrot.slane %v2106_v56, 3 }
  0x8b   : > { %2264 = vrot.lane.b32.xlu0 %v2263_v9, %s3001_s27 }
  0x8c   : > { %v2144_v20 = vsel %vm701_vm4, %v2143_v7, %v2142_v11 }
  0x8e   : > { %977 = vrot.lane.b32.xlu1 %v976_v17, %s2990_s10  ;;  %v2018_v17 = vsel %vm1224_vm6, %v2017_v3, %v2016_v2  ;;  %s3003_s10 = smov 63   ;;  %v2113_v3 = vrot.slane %v2107_v60, 2 }
  0x8f   : > { %857 = vrot.lane.b32.xlu0 %v848_v19, %s2999_s29  ;;  %v2269_v19 = vld [vmem:[%s3100_s30 + $0x5] sm:$0x1] }
  0x90   : > { %v283_v26 = vpop.permute.xlu1 %282  ;;  %v2114_v12 = vsel %vm1224_vm6, %v2113_v3, %v2112_v62  ;;  %v2027_v62 = vld [vmem:[%s3100_s30 + $0x14] sm:$0x1] }
  0x91   : > { %v253_v31 = vpop.permute.xlu0 %252 }
  0x92   : > { %256 = vst.msk [vmem:[#allocation2] sm:$0x7] %vm255_vm8, %v253_v31  ;;  %1365 = vrot.lane.b32.xlu1 %v1364_v24, %s2992_s18  ;;  %v2020_v24 = vsel %vm701_vm4, %v2019_v8, %v2018_v17  ;;  %v1125_v31 = vld [vmem:[%s3100_s30 + $0x1a] sm:$0x1]  ;;  %v1236_v8 = vrot.slane %v1230_v55, 3 }
  0x93   : > { %1120 = vrot.lane.b32.xlu0 %v1119_v27, %s2985_s5  ;;  %v827_v27 = vld [vmem:[%s3100_s30 + $0x7] sm:$0x1]  ;;  %v1131_v44 = vrot.slane %v1125_v31, 6 }
  0x94   : > { %v298_v41 = vpop.permute.xlu1 %297  ;;  %v833_v38 = vrot.slane %v827_v27, 2 }
  0x95   : > { %v268_v46 = vpop.permute.xlu0 %267  ;;  %v1132_v1 = vsel %vm250_vm1, %v1131_v44, %v1130_v43 }
  0x96   : > { %271 = vst.msk [vmem:[#allocation2] sm:$0x7] %vm270_vm9, %v268_v46  ;;  %1508 = vrot.lane.b32.xlu1 %v1505_v36, %s3000_s11  ;;  %v2394_v36 = vsel %vm250_vm1, %v2393_v21, %v2392_v25  ;;  %v989_v46 = vrot.slane %v983_v33, 6  ;;  %v1134_v14 = vsel %vm975_vm5, %v1133_v50, %v1132_v1  ;;  %v1238_v21 = vrot.slane %v1231_v58, 2  ;;  %v1920_v33 = vld [vmem:[%s3100_s30 + $0xc] sm:$0x1] }
  0x97   : > { %286 = vst.msk [vmem:[#allocation2] sm:$0x7] %vm285_vm10, %v283_v26  ;;  %1468 = vrot.lane.b32.xlu0 %v1465_v37, %s3002_s28  ;;  %v2276_v26 = vsel %vm247_vm0, %v2275_v15, %v2269_v19  ;;  %v1378_v15 = vrot.slane %v1371_v52, 2  ;;  %v1237_v25 = vsel %vm471_vm3, %v1236_v8, %v1235_v59  ;;  %v1922_v50 = vld [vmem:[%s3100_s30 + $0x2c] sm:$0x1]  ;;  %v1927_v52 = vrot.slane %v1921_v34, 5 }
  0x98   : > { %v328_v57 = vpop.permute.xlu1 %327  ;;  %301 = vst.msk [vmem:[#allocation2] sm:$0x7] %vm300_vm11, %v298_v41  ;;  %v2278_v37 = vsel %vm250_vm1, %v2277_v22, %v2276_v26  ;;  %v1370_v41 = vld [vmem:[%s3100_s30 + $0x1a] sm:$0x1]  ;;  %v990_v2 = vsel %vm250_vm1, %v989_v46, %v988_v45  ;;  %v1518_v22 = vld [vmem:[%s3100_s30 + $0x23] sm:$0x1]  ;;  %v1239_v32 = vsel %vm1224_vm6, %v1238_v21, %v1237_v25 }
  0x99   : > { %v313_v63 = vpop.permute.xlu0 %312  ;;  %v992_v19 = vsel %vm975_vm5, %v991_v51, %v990_v2  ;;  %v1517_v26 = vld [vmem:[%s3100_s30 + $0x13] sm:$0x1]  ;;  %v1523_v28 = vrot.slane %v1518_v22, 7  ;;  %v1484_v46 = vrot.slane %v1478_v29, 1  ;;  %v1926_v51 = vrot.slane %v1920_v33, 6 }
  0x9a   : > { %316 = vst.msk [vmem:[#allocation2] sm:$0x7] %vm315_vm12, %v313_v63  ;;  %1673 = vrot.lane.b32.xlu1 %v1670_v53, %s3001_s27  ;;  %v1375_v53 = vrot.slane %v1369_v40, 4  ;;  %v1680_v40 = vld [vmem:[%s3100_s30 + $0x1c] sm:$0x1]  ;;  %v1929_v2 = vrot.slane %v1922_v50, 4 }
  0x9b   : > { %1637 = vrot.lane.b32.xlu0 %v1634_v54, %s2999_s29  ;;  %331 = vst.msk [vmem:[#allocation2] sm:$0x7] %vm330_vm13, %v328_v57  ;;  %v1376_v54 = vrot.slane %v1370_v41, 3  ;;  %v835_v57 = vsel %vm701_vm4, %v834_v39, %v833_v38  ;;  %v1343_v38 = vld [vmem:[%s3100_s30 + $0x28] sm:$0x1]  ;;  %v1347_v39 = vrot.slane %v1341_v35, 4  ;;  %v1524_v45 = vsel %vm247_vm0, %v1523_v28, %v1517_v26 }
  0x9c   : > { %v358_v9 = vpop.permute.xlu1 %357  ;;  %v1795_v41 = vld [vmem:[%s3100_s30 + $0x4] sm:$0x1]  ;;  %v1350_v44 = vrot.slane %v1343_v38, 2  ;;  %v2149_v58 = vld [vmem:[%s3100_s30 + $0xc] sm:$0x1] }
  0x9d   : > { %361 = vst.msk [vmem:[#allocation2 + $0x8] sm:$0x7] %vm360_vm14, %v358_v9  ;;  %v343_v16 = vpop.permute.xlu0 %342  ;;  %v1982_v9 = vld [vmem:[%s3100_s30 + $0x21] sm:$0x1]  ;;  %v1801_v56 = vrot.slane %v1795_v41, 6  ;;  %vm556_vm14 = vcmask 915203  }
  0x9e   : > { %346 = vst.msk [vmem:[#allocation2] sm:$0x7] %vm345_vm15, %v343_v16  ;;  %1916 = vrot.lane.b32.xlu1 %v1915_v6, %s2987_s7  ;;  %v1981_v6 = vld [vmem:[%s3100_s30 + $0x11] sm:$0x1]  ;;  %v1989_v13 = vrot.slane %v1982_v9, 1  ;;  %v2116_v16 = vsel %vm701_vm4, %v2115_v4, %v2114_v12  ;;  %v1928_v4 = vsel %vm975_vm5, %v1927_v52, %v1926_v51  ;;  %v2032_v12 = vrot.slane %v2026_v61, 3 }
  0x9f   : > { %1790 = vrot.lane.b32.xlu0 %v1789_v10, %s2987_s7  ;;  %v1986_v10 = vrot.slane %v1980_v5, 3  ;;  %v1987_v11 = vrot.slane %v1981_v6, 2  ;;  %2118 = vst.msk [vmem:[#allocation2 + $0x28] sm:$0xe0] %vm1992_vm7, %v2116_v16  ;;  %v2150_v59 = vld [vmem:[%s3100_s30 + $0x1c] sm:$0x1]  ;;  %v1930_v16 = vsel %vm468_vm2, %v1929_v2, %v1928_v4 }
  0xa0   : > { %v387_v23 = vpop.permute.xlu1 %386  ;;  %v2151_v6 = vld [vmem:[%s3100_s30 + $0x2c] sm:$0x1]  ;;  %v2156_v8 = vrot.slane %v2150_v59, 2  ;;  %v2401_v22 = vld [vmem:[%s3100_s30 + $0x2e] sm:$0x1] }
  0xa1   : > { %v373_v30 = vpop.permute.xlu0 %372  ;;  %v1988_v17 = vsel %vm1224_vm6, %v1987_v11, %v1986_v10  ;;  %v2028_v11 = vld [vmem:[%s3100_s30 + $0x24] sm:$0x1]  ;;  %v2399_v26 = vld [vmem:[%s3100_s30 + $0xe] sm:$0x1]  ;;  %v2284_v29 = vld [vmem:[%s3100_s30 + $0x6] sm:$0x1] }
  0xa2   : > { %375 = vst.msk [vmem:[#allocation2 + $0x8] sm:$0x7] %vm255_vm8, %v373_v30  ;;  %2145 = vrot.lane.b32.xlu1 %v2144_v20, %s2994_s21  ;;  %vm476_vm8 = vcmask 259203   ;;  %v1377_v20 = vsel %vm471_vm3, %v1376_v54, %v1375_v53  ;;  %v1681_v30 = vld [vmem:[%s3100_s30 + $0x2c] sm:$0x1]  ;;  %v2035_v21 = vrot.slane %v2028_v11, 1 }
  0xa3   : > { %389 = vst.msk [vmem:[#allocation2 + $0x8] sm:$0x7] %vm270_vm9, %v387_v23  ;;  %2021 = vrot.lane.b32.xlu0 %v2020_v24, %s2994_s21  ;;  %v1990_v23 = vsel %vm701_vm4, %v1989_v13, %v1988_v17  ;;  %vm492_vm9 = vcmask 390403   ;;  %v1379_v27 = vsel %vm1224_vm6, %v1378_v15, %v1377_v20  ;;  %v1686_v47 = vrot.slane %v1681_v30, 7  ;;  %v1797_v53 = vld [vmem:[%s3100_s30 + $0x24] sm:$0x1] }
  0xa4   : > { %v415_v42 = vpop.permute.xlu1 %414  ;;  %1993 = vst.msk [vmem:[#allocation2 + $0x20] sm:$0xe0] %vm1992_vm7, %v1990_v23  ;;  %v1804_v5 = vrot.slane %v1797_v53, 4  ;;  %v2033_v13 = vrot.slane %v2027_v62, 2  ;;  %v2285_v15 = vld [vmem:[%s3100_s30 + $0x16] sm:$0x1] }
  0xa5   : > { %v401_v48 = vpop.permute.xlu0 %400  ;;  %v2158_v17 = vrot.slane %v2151_v6, 1  ;;  %v2290_v28 = vrot.slane %v2285_v15, 7  ;;  %v847_v33 = vld [vmem:[%s3100_s30 + $0x18] sm:$0x1]  ;;  %v1139_v38 = vld [vmem:[%s3100_s30 + $0xb] sm:$0x1] }
  0xa6   : > { %403 = vst.msk [vmem:[#allocation2 + $0x8] sm:$0x7] %vm285_vm10, %v401_v48  ;;  %2395 = vrot.lane.b32.xlu1 %v2394_v36, %s3003_s10  ;;  %vm508_vm10 = vcmask 521603   ;;  %v1645_v48 = vld [vmem:[%s3100_s30 + $0xa] sm:$0x1]  ;;  %v2034_v25 = vsel %vm1224_vm6, %v2033_v13, %v2032_v12  ;;  %vm709_vm7 = vcmask 253062  }
  0xa7   : > { %417 = vst.msk [vmem:[#allocation2 + $0x8] sm:$0x7] %vm300_vm11, %v415_v42  ;;  %2279 = vrot.lane.b32.xlu0 %v2278_v37, %s3003_s10  ;;  %vm524_vm11 = vcmask 652803   ;;  %v1342_v37 = vld [vmem:[%s3100_s30 + $0x18] sm:$0x1]  ;;  %v1651_v1 = vrot.slane %v1645_v48, 1  ;;  %v2036_v35 = vsel %vm701_vm4, %v2035_v21, %v2034_v25  ;;  %v2291_v41 = vsel %vm247_vm0, %v2290_v28, %v2284_v29 }
  0xa8   : > { %v443_v63 = vpop.permute.xlu1 %442  ;;  %v1796_v42 = vld [vmem:[%s3100_s30 + $0x14] sm:$0x1]  ;;  %v1348_v43 = vrot.slane %v1342_v37, 3  ;;  %v1145_v48 = vrot.slane %v1139_v38, 7  ;;  %v1000_v50 = vld [vmem:[%s3100_s30 + $0x22] sm:$0x1] }
  0xa9   : > { %v429_v7 = vpop.permute.xlu0 %428  ;;  %v1214_v59 = vld [vmem:[%s3100_s30] sm:$0x1]  ;;  %v1246_v61 = vld [vmem:[%s3100_s30 + $0x12] sm:$0x1]  ;;  %v882_v2 = vld [vmem:[%s3100_s30 + $0x2a] sm:$0x1] }
  0xaa   : > { %431 = vst.msk [vmem:[#allocation2 + $0x8] sm:$0x7] %vm315_vm12, %v429_v7  ;;  %874 = vrot.lane.b32.xlu1 %v865_v49, %s3000_s11  ;;  %vm540_vm12 = vcmask 784003   ;;  %v1349_v54 = vsel %vm471_vm3, %v1348_v43, %v1347_v39  ;;  %v2155_v7 = vrot.slane %v2149_v58, 3  ;;  %v1140_v39 = vld [vmem:[%s3100_s30 + $0x1b] sm:$0x1] }
  0xab   : > { %445 = vst.msk [vmem:[#allocation2 + $0x8] sm:$0x7] %vm330_vm13, %v443_v63  ;;  %836 = vrot.lane.b32.xlu0 %v835_v57, %s3002_s28  ;;  %vm1227_vm13 = vcmask 129028   ;;  %v1802_v57 = vrot.slane %v1796_v42, 5  ;;  %v1351_v60 = vsel %vm1224_vm6, %v1350_v44, %v1349_v54  ;;  %v1687_v63 = vsel %vm247_vm0, %v1686_v47, %v1680_v40  ;;  %v998_v42 = vld [vmem:[%s3100_s30 + $0x2] sm:$0x1] }
  0xac   : > { %v474_v18 = vpop.permute.xlu1 %473  ;;  %1353 = vst.msk [vmem:[#allocation2 + $0x18] sm:$0x70] %vm1227_vm13, %v1351_v60  ;;  %v2157_v20 = vsel %vm1224_vm6, %v2156_v8, %v2155_v7  ;;  %v999_v43 = vld [vmem:[%s3100_s30 + $0x12] sm:$0x1]  ;;  %v1141_v47 = vld [vmem:[%s3100_s30 + $0x2b] sm:$0x1] }
  0xad   : > { %477 = vst.msk [vmem:[#allocation2] sm:$0x38] %vm476_vm8, %v474_v18  ;;  %v457_v24 = vpop.permute.xlu0 %456  ;;  %v1803_v10 = vsel %vm975_vm5, %v1802_v57, %v1801_v56  ;;  %v2159_v30 = vsel %vm701_vm4, %v2158_v17, %v2157_v20  ;;  %v1004_v53 = vrot.slane %v998_v42, 7  ;;  %v1005_v54 = vrot.slane %v999_v43, 6  ;;  %v1385_v56 = vld [vmem:[%s3100_s30 + $0x1b] sm:$0x1] }
  0xae   : > { %459 = vst.msk [vmem:[#allocation2 + $0x8] sm:$0x7] %vm345_vm15, %v457_v24  ;;  %1135 = vrot.lane.b32.xlu1 %v1134_v14, %s2987_s7  ;;  %vm572_vm15 = vcmask 1046403   ;;  %v2400_v14 = vld [vmem:[%s3100_s30 + $0x1e] sm:$0x1]  ;;  %v1007_v8 = vrot.slane %v1000_v50, 5 }
  0xaf   : > { %993 = vrot.lane.b32.xlu0 %v992_v19, %s2985_s5  ;;  %v1805_v19 = vsel %vm468_vm2, %v1804_v5, %v1803_v10  ;;  %v2405_v23 = vrot.slane %v2400_v14, 7  ;;  %v1245_v58 = vld [vmem:[%s3100_s30 + $0x2] sm:$0x1]  ;;  %v1215_v60 = vld [vmem:[%s3100_s30 + $0x10] sm:$0x1]  ;;  %s3004_s5 = smov 79   ;;  %v1006_v14 = vsel %vm250_vm1, %v1005_v54, %v1004_v53 }
  0xb0   : > { %v506_v31 = vpop.permute.xlu1 %505  ;;  %v1216_v62 = vld [vmem:[%s3100_s30 + $0x20] sm:$0x1]  ;;  %v1148_v5 = vrot.slane %v1141_v47, 5  ;;  %v1391_v11 = vrot.slane %v1385_v56, 3  ;;  %v1247_v15 = vld [vmem:[%s3100_s30 + $0x22] sm:$0x1] }
  0xb1   : > { %v490_v36 = vpop.permute.xlu0 %489  ;;  %v1223_v6 = vrot.slane %v1216_v62, 2  ;;  %v1252_v17 = vrot.slane %v1246_v61, 3  ;;  %v1537_v25 = vld [vmem:[%s3100_s30 + $0x24] sm:$0x1]  ;;  %v1811_v38 = vld [vmem:[%s3100_s30 + $0x5] sm:$0x1] }
  0xb2   : > { %493 = vst.msk [vmem:[#allocation2] sm:$0x38] %vm492_vm9, %v490_v36  ;;  %1380 = vrot.lane.b32.xlu1 %v1379_v27, %s2994_s21  ;;  %v2286_v27 = vld [vmem:[%s3100_s30 + $0x26] sm:$0x1]  ;;  %v2406_v36 = vsel %vm247_vm0, %v2405_v23, %v2399_v26  ;;  %v1542_v29 = vrot.slane %v1537_v25, 7 }
  0xb3   : > { %1240 = vrot.lane.b32.xlu0 %v1239_v32, %s2992_s18  ;;  %509 = vst.msk [vmem:[#allocation2] sm:$0x38] %vm508_vm10, %v506_v31  ;;  %v2407_v31 = vrot.slane %v2401_v22, 6  ;;  %v846_v32 = vld [vmem:[%s3100_s30 + $0x8] sm:$0x1]  ;;  %v2292_v37 = vrot.slane %v2286_v27, 6  ;;  %v1008_v22 = vsel %vm975_vm5, %v1007_v8, %v1006_v14 }
  0xb4   : > { %v538_v49 = vpop.permute.xlu1 %537  ;;  %v852_v44 = vrot.slane %v846_v32, 2  ;;  %v1536_v32 = vld [vmem:[%s3100_s30 + $0x14] sm:$0x1]  ;;  %v1697_v42 = vld [vmem:[%s3100_s30 + $0x1d] sm:$0x1] }
  0xb5   : > { %v522_v55 = vpop.permute.xlu0 %521  ;;  %v2293_v52 = vsel %vm250_vm1, %v2292_v37, %v2291_v41  ;;  %v1936_v37 = vld [vmem:[%s3100_s30 + $0x1d] sm:$0x1]  ;;  %v2164_v53 = vld [vmem:[%s3100_s30 + $0xd] sm:$0x1]  ;;  %v2043_v56 = vld [vmem:[%s3100_s30 + $0x15] sm:$0x1] }
  0xb6   : > { %525 = vst.msk [vmem:[#allocation2] sm:$0x38] %vm524_vm11, %v522_v55  ;;  %1527 = vrot.lane.b32.xlu1 %v1524_v45, %s3001_s27  ;;  %v853_v45 = vrot.slane %v847_v33, 1  ;;  %v1384_v55 = vld [vmem:[%s3100_s30 + $0xb] sm:$0x1] }
  0xb7   : > { %1487 = vrot.lane.b32.xlu0 %v1484_v46, %s2999_s29  ;;  %541 = vst.msk [vmem:[#allocation2] sm:$0x38] %vm540_vm12, %v538_v49  ;;  %v2408_v46 = vsel %vm250_vm1, %v2407_v31, %v2406_v36  ;;  %v1146_v49 = vrot.slane %v1140_v39, 6  ;;  %v1390_v10 = vrot.slane %v1384_v55, 4  ;;  %v1497_v33 = vld [vmem:[%s3100_s30 + $0x2] sm:$0x1] }
  0xb8   : > { %v570_v3 = vpop.permute.xlu1 %569  ;;  %v1935_v36 = vld [vmem:[%s3100_s30 + $0xd] sm:$0x1]  ;;  %v1812_v39 = vld [vmem:[%s3100_s30 + $0x15] sm:$0x1]  ;;  %v1503_v41 = vrot.slane %v1497_v33, 1 }
  0xb9   : > { %v554_v9 = vpop.permute.xlu0 %553  ;;  %v1147_v4 = vsel %vm250_vm1, %v1146_v49, %v1145_v48  ;;  %v1392_v23 = vsel %vm471_vm3, %v1391_v11, %v1390_v10  ;;  %v1941_v47 = vrot.slane %v1935_v36, 6  ;;  %v1942_v48 = vrot.slane %v1936_v37, 5  ;;  %v1813_v49 = vld [vmem:[%s3100_s30 + $0x25] sm:$0x1]  ;;  %v2165_v54 = vld [vmem:[%s3100_s30 + $0x1d] sm:$0x1] }
  0xba   : > { %557 = vst.msk [vmem:[#allocation2] sm:$0x38] %vm556_vm14, %v554_v9  ;;  %1690 = vrot.lane.b32.xlu1 %v1687_v63, %s3003_s10  ;;  %v1220_v63 = vrot.slane %v1214_v59, 4  ;;  %v1386_v9 = vld [vmem:[%s3100_s30 + $0x2b] sm:$0x1]  ;;  %v1820_v62 = vrot.slane %v1813_v49, 4 }
  0xbb   : > { %573 = vst.msk [vmem:[#allocation2] sm:$0x38] %vm572_vm15, %v570_v3  ;;  %1654 = vrot.lane.b32.xlu0 %v1651_v1, %s3000_s11  ;;  %v1221_v1 = vrot.slane %v1215_v60, 3  ;;  %v854_v3 = vsel %vm701_vm4, %v853_v45, %v852_v44  ;;  %v1393_v20 = vrot.slane %v1386_v9, 2  ;;  %v1662_v44 = vld [vmem:[%s3100_s30 + $0xb] sm:$0x1]  ;;  %v1943_v61 = vsel %vm975_vm5, %v1942_v48, %v1941_v47 }
  0xbc   : > { %v615_v18 = vpop.permute.xlu1 %614  ;;  %v2042_v55 = vld [vmem:[%s3100_s30 + $0x5] sm:$0x1]  ;;  %v2414_v8 = vld [vmem:[%s3100_s30 + $0x1f] sm:$0x1]  ;;  %v2300_v9 = vld [vmem:[%s3100_s30 + $0x17] sm:$0x1] }
  0xbd   : > { %v600_v24 = vpop.permute.xlu0 %599  ;;  %v1222_v12 = vsel %vm471_vm3, %v1221_v1, %v1220_v63  ;;  %v1394_v28 = vsel %vm1224_vm6, %v1393_v20, %v1392_v23  ;;  %v2166_v63 = vld [vmem:[%s3100_s30 + $0x2d] sm:$0x1]  ;;  %v2170_v1 = vrot.slane %v2164_v53, 3  ;;  %v2413_v20 = vld [vmem:[%s3100_s30 + $0xf] sm:$0x1] }
  0xbe   : > { %602 = vst.msk [vmem:[#allocation2 + $0x8] sm:$0x38] %vm476_vm8, %v600_v24  ;;  %1931 = vrot.lane.b32.xlu1 %v1930_v16, %s2984_s4  ;;  %v1251_v16 = vrot.slane %v1245_v58, 4  ;;  %vm728_vm8 = vcmask 384262   ;;  %v1254_v24 = vrot.slane %v1247_v15, 2  ;;  %v1668_v58 = vrot.slane %v1662_v44, 1 }
  0xbf   : > { %617 = vst.msk [vmem:[#allocation2 + $0x8] sm:$0x38] %vm492_vm9, %v615_v18  ;;  %1806 = vrot.lane.b32.xlu0 %v1805_v19, %s2984_s4  ;;  %v1225_v18 = vsel %vm1224_vm6, %v1223_v6, %v1222_v12  ;;  %vm711_vm9 = vcmask 245888   ;;  %v1149_v19 = vsel %vm975_vm5, %v1148_v5, %v1147_v4  ;;  %v2044_v5 = vld [vmem:[%s3100_s30 + $0x25] sm:$0x1]  ;;  %v2048_v6 = vrot.slane %v2042_v55, 3 }
  0xc0   : > { %v645_v34 = vpop.permute.xlu1 %644  ;;  %1228 = vst.msk [vmem:[#allocation2 + $0x10] sm:$0x70] %vm1227_vm13, %v1225_v18  ;;  %v1253_v27 = vsel %vm471_vm3, %v1252_v17, %v1251_v16  ;;  %vm2237_vm13 = vcmask 247936   ;;  %v2173_v11 = vrot.slane %v2166_v63, 1  ;;  %v2051_v15 = vrot.slane %v2044_v5, 1 }
  0xc1   : > { %v630_v40 = vpop.permute.xlu0 %629  ;;  %v1255_v31 = vsel %vm1224_vm6, %v1254_v24, %v1253_v27  ;;  %v2415_v16 = vld [vmem:[%s3100_s30 + $0x2f] sm:$0x1]  ;;  %v2419_v17 = vrot.slane %v2414_v8, 7  ;;  %v2299_v23 = vld [vmem:[%s3100_s30 + $0x7] sm:$0x1] }
  0xc2   : > { %632 = vst.msk [vmem:[#allocation2 + $0x8] sm:$0x38] %vm508_vm10, %v630_v40  ;;  %2160 = vrot.lane.b32.xlu1 %v2159_v30, %s2993_s19  ;;  %vm4227_vm10 = vcmask 515462   ;;  %v1543_v40 = vsel %vm247_vm0, %v1542_v29, %v1536_v32  ;;  %v2421_v25 = vrot.slane %v2415_v16, 6  ;;  %v1154_v47 = vld [vmem:[%s3100_s30 + $0xc] sm:$0x1] }
  0xc3   : > { %647 = vst.msk [vmem:[#allocation2 + $0x8] sm:$0x38] %vm524_vm11, %v645_v34  ;;  %2037 = vrot.lane.b32.xlu0 %v2036_v35, %s2993_s19  ;;  %vm730_vm11 = vcmask 377088   ;;  %v1698_v34 = vld [vmem:[%s3100_s30 + $0x2d] sm:$0x1] }
  0xc4   : > { %v675_v51 = vpop.permute.xlu1 %674  ;;  %v1703_v43 = vrot.slane %v1698_v34, 7  ;;  %v1014_v34 = vld [vmem:[%s3100_s30 + $0x3] sm:$0x1]  ;;  %v1155_v48 = vld [vmem:[%s3100_s30 + $0x1c] sm:$0x1] }
  0xc5   : > { %v660_v57 = vpop.permute.xlu0 %659  ;;  %v1401_v8 = vld [vmem:[%s3100_s30 + $0x2c] sm:$0x1]  ;;  %v1556_v16 = vld [vmem:[%s3100_s30 + $0x25] sm:$0x1] }
  0xc6   : > { %662 = vst.msk [vmem:[#allocation2 + $0x8] sm:$0x38] %vm540_vm12, %v660_v57  ;;  %2409 = vrot.lane.b32.xlu1 %v2408_v46, %s3004_s5  ;;  %vm2222_vm12 = vcmask 116736   ;;  %v1937_v46 = vld [vmem:[%s3100_s30 + $0x2d] sm:$0x1]  ;;  %v1704_v57 = vsel %vm247_vm0, %v1703_v43, %v1697_v42  ;;  %v1020_v42 = vrot.slane %v1014_v34, 7 }
  0xc7   : > { %677 = vst.msk [vmem:[#allocation2 + $0x8] sm:$0x38] %vm556_vm14, %v675_v51  ;;  %2294 = vrot.lane.b32.xlu0 %v2293_v52, %s3004_s5  ;;  %v1817_v51 = vrot.slane %v1811_v38, 6  ;;  %v1818_v52 = vrot.slane %v1812_v39, 5  ;;  %vm1476_vm14 = vcmask 115712   ;;  %v1944_v59 = vrot.slane %v1937_v46, 4 }
  0xc8   : > { %v704_v7 = vpop.permute.xlu1 %703  ;;  %v1262_v46 = vld [vmem:[%s3100_s30 + $0x13] sm:$0x1] }
  0xc9   : > { %710 = vst.msk [vmem:[#allocation2] sm:$0xc0] %vm709_vm7, %v704_v7  ;;  %v690_v13 = vpop.permute.xlu0 %689  ;;  %v1819_v4 = vsel %vm975_vm5, %v1818_v52, %v1817_v51  ;;  %v2049_v7 = vrot.slane %v2043_v56, 2  ;;  %v1945_v10 = vsel %vm468_vm2, %v1944_v59, %v1943_v61  ;;  %v734_v52 = vld [vmem:[%s3100_s30 + $0x22] sm:$0x1]  ;;  %v1268_v56 = vrot.slane %v1262_v46, 3 }
  0xca   : > { %692 = vst.msk [vmem:[#allocation2 + $0x8] sm:$0x38] %vm572_vm15, %v690_v13  ;;  %891 = vrot.lane.b32.xlu1 %v882_v2, %s3001_s27  ;;  %v2171_v2 = vrot.slane %v2165_v54, 2  ;;  %v1821_v13 = vsel %vm468_vm2, %v1820_v62, %v1819_v4  ;;  %vm1761_vm15 = vcmask 126986   ;;  %v1263_v54 = vld [vmem:[%s3100_s30 + $0x23] sm:$0x1] }
  0xcb   : > { %855 = vrot.lane.b32.xlu0 %v854_v3, %s2999_s29  ;;  %v1160_v59 = vrot.slane %v1154_v47, 7  ;;  %v1399_v61 = vld [vmem:[%s3100_s30 + $0xc] sm:$0x1]  ;;  %v1400_v62 = vld [vmem:[%s3100_s30 + $0x1c] sm:$0x1] }
  0xcc   : > { %v723_v21 = vpop.permute.xlu1 %722  ;;  %v2172_v14 = vsel %vm1224_vm6, %v2171_v2, %v2170_v1  ;;  %v1270_v1 = vrot.slane %v1263_v54, 2  ;;  %v1952_v47 = vld [vmem:[%s3100_s30 + $0x2e] sm:$0x1] }
  0xcd   : > { %729 = vst.msk [vmem:[#allocation2] sm:$0xc0] %vm728_vm8, %v723_v21  ;;  %v706_v26 = vpop.permute.xlu0 %705  ;;  %v2301_v21 = vld [vmem:[%s3100_s30 + $0x27] sm:$0x1]  ;;  %v2174_v24 = vsel %vm701_vm4, %v2173_v11, %v2172_v14 }
  0xce   : > { %712 = vst.msk [vmem:[#allocation2 + $0x10] sm:$0x1] %vm711_vm9, %v706_v26  ;;  %1150 = vrot.lane.b32.xlu1 %v1149_v19, %s2984_s4  ;;  %v2050_v19 = vsel %vm1224_vm6, %v2049_v7, %v2048_v6  ;;  %v2307_v29 = vrot.slane %v2301_v21, 6 }
  0xcf   : > { %1009 = vrot.lane.b32.xlu0 %v1008_v22, %s2987_s7  ;;  %v2305_v22 = vrot.slane %v2300_v9, 7  ;;  %v2052_v27 = vsel %vm701_vm4, %v2051_v15, %v2050_v19  ;;  %s3005_s7 = smov 95   ;;  %v1405_v9 = vrot.slane %v1399_v61, 4  ;;  %v1408_v15 = vrot.slane %v1401_v8, 2  ;;  %v1827_v19 = vld [vmem:[%s3100_s30 + $0x6] sm:$0x1] }
  0xd0   : > { %v742_v30 = vpop.permute.xlu1 %741 }
  0xd1   : > { %748 = vst.msk [vmem:[#allocation2] sm:$0xc0] %vm4227_vm10, %v742_v30  ;;  %v725_v35 = vpop.permute.xlu0 %724  ;;  %v863_v30 = vld [vmem:[%s3100_s30 + $0x9] sm:$0x1]  ;;  %v2306_v33 = vsel %vm247_vm0, %v2305_v22, %v2299_v23  ;;  %v1679_v22 = vld [vmem:[%s3100_s30 + $0xc] sm:$0x1] }
  0xd2   : > { %731 = vst.msk [vmem:[#allocation2 + $0x10] sm:$0x1] %vm730_vm11, %v725_v35  ;;  %1395 = vrot.lane.b32.xlu1 %v1394_v28, %s2993_s19  ;;  %v2420_v28 = vsel %vm247_vm0, %v2419_v17, %v2413_v20  ;;  %v1015_v35 = vld [vmem:[%s3100_s30 + $0x13] sm:$0x1]  ;;  %v869_v37 = vrot.slane %v863_v30, 2  ;;  %v1561_v23 = vrot.slane %v1556_v16, 7 }
  0xd3   : > { %1256 = vrot.lane.b32.xlu0 %v1255_v31, %s2994_s21  ;;  %v864_v31 = vld [vmem:[%s3100_s30 + $0x19] sm:$0x1]  ;;  %v2422_v36 = vsel %vm250_vm1, %v2421_v25, %v2420_v28  ;;  %v1021_v43 = vrot.slane %v1015_v35, 6  ;;  %v1828_v20 = vld [vmem:[%s3100_s30 + $0x16] sm:$0x1]  ;;  %v1833_v28 = vrot.slane %v1827_v19, 6 }
  0xd4   : > { %v2340_v45 = vpop.permute.xlu1 %2339  ;;  %v870_v38 = vrot.slane %v864_v31, 1  ;;  %v1715_v31 = vld [vmem:[%s3100_s30 + $0x2e] sm:$0x1]  ;;  %vm2008_vm10 = vcmask 261253   ;;  %v1685_v34 = vrot.slane %v1679_v22, 1  ;;  %s2812_s21 = sshll.u32 %s2973_s15, 11 }
  0xd5   : > { %2342 = vst.msk [vmem:[#allocation2 + $0x38] sm:$0x7] %vm2222_vm12, %v2340_v45  ;;  %v2220_v50 = vpop.permute.xlu0 %2219  ;;  %v1261_v45 = vld [vmem:[%s3100_s30 + $0x3] sm:$0x1]  ;;  %v1022_v53 = vsel %vm250_vm1, %v1021_v43, %v1020_v42  ;;  %v1950_v35 = vld [vmem:[%s3100_s30 + $0xe] sm:$0x1]  ;;  %s4161_s28 = scalar_lea.hbm %s4220_s3, %s2812_s21 }
  0xd6   : > { %2223 = vst.msk [vmem:[#allocation2 + $0x30] sm:$0x7] %vm2222_vm12, %v2220_v50  ;;  %1546 = vrot.lane.b32.xlu1 %v1543_v40, %s3003_s10  ;;  %vm1495_vm12 = vcmask 246912   ;;  %v2308_v40 = vsel %vm250_vm1, %v2307_v29, %v2306_v33  ;;  %v871_v49 = vsel %vm701_vm4, %v870_v38, %v869_v37  ;;  %v1267_v55 = vrot.slane %v1261_v45, 4  ;;  %v2059_v33 = vld [vmem:[%s3100_s30 + $0x16] sm:$0x1] }
  0xd7   : > { %1506 = vrot.lane.b32.xlu0 %v1503_v41, %s3000_s11  ;;  %v1016_v41 = vld [vmem:[%s3100_s30 + $0x23] sm:$0x1]  ;;  %v1834_v29 = vrot.slane %v1828_v20, 5  ;;  %v1720_v42 = vrot.slane %v1715_v31, 7  ;;  %v2060_v43 = vld [vmem:[%s3100_s30 + $0x26] sm:$0x1] }
  0xd8   : > { %v2235_v60 = vpop.permute.xlu1 %2234  ;;  %v1023_v50 = vrot.slane %v1016_v41, 5  ;;  %v1269_v4 = vsel %vm471_vm3, %v1268_v56, %v1267_v55  ;;  %v2065_v45 = vrot.slane %v2059_v33, 2  ;;  %v2067_v54 = vrot.slane %v2060_v43, 1 }
  0xd9   : > { %2238 = vst.msk [vmem:[#allocation2 + $0x30] sm:$0x7] %vm2237_vm13, %v2235_v60  ;;  %v1623_v3 = vpop.permute.xlu0 %1622  ;;  %v1161_v60 = vrot.slane %v1155_v48, 6  ;;  %v1271_v11 = vsel %vm1224_vm6, %v1270_v1, %v1269_v4  ;;  %v1835_v41 = vsel %vm975_vm5, %v1834_v29, %v1833_v28  ;;  %v1956_v48 = vrot.slane %v1950_v35, 6  ;;  %v2181_v1 = vld [vmem:[%s3100_s30 + $0x2e] sm:$0x1] }
  0xda   : > { %1627 = vst.msk [vmem:[#allocation2 + $0x28] sm:$0x3] %vm1476_vm14, %v1623_v3  ;;  %1707 = vrot.lane.b32.xlu1 %v1704_v57, %s3004_s5  ;;  %v1024_v63 = vsel %vm975_vm5, %v1023_v50, %v1022_v53  ;;  %v899_v3 = vld [vmem:[%s3100_s30 + $0x2b] sm:$0x1]  ;;  %v2315_v50 = vld [vmem:[%s3100_s30 + $0x18] sm:$0x1] }
  0xdb   : > { %1671 = vrot.lane.b32.xlu0 %v1668_v58, %s3001_s27  ;;  %v1156_v58 = vld [vmem:[%s3100_s30 + $0x2c] sm:$0x1]  ;;  %v1162_v7 = vsel %vm250_vm1, %v1161_v60, %v1160_v59  ;;  %v2316_v59 = vld [vmem:[%s3100_s30 + $0x28] sm:$0x1]  ;;  %v2320_v60 = vrot.slane %v2315_v50, 7 }
  0xdc   : > { %v1471_v12 = vpop.permute.xlu1 %1470  ;;  %v1163_v5 = vrot.slane %v1156_v58, 5  ;;  %v1959_v58 = vrot.slane %v1952_v47, 4  ;;  %v1170_v28 = vld [vmem:[%s3100_s30 + $0x1d] sm:$0x1] }
  0xdd   : > { %1477 = vst.msk [vmem:[#allocation2 + $0x20] sm:$0x3] %vm1476_vm14, %v1471_v12  ;;  %v2354_v18 = vpop.permute.xlu0 %2353  ;;  %vm844_vm14 = vcmask 114688   ;;  %v1516_v12 = vld [vmem:[%s3100_s30 + $0x3] sm:$0x1] }
  0xde   : > { %2356 = vst.msk [vmem:[#allocation2 + $0x38] sm:$0x7] %vm2237_vm13, %v2354_v18  ;;  %1946 = vrot.lane.b32.xlu1 %v1945_v10, %s2986_s6  ;;  %vm2252_vm13 = vcmask 379136   ;;  %v1406_v10 = vrot.slane %v1400_v62, 3  ;;  %v1164_v14 = vsel %vm975_vm5, %v1163_v5, %v1162_v7  ;;  %v1522_v21 = vrot.slane %v1516_v12, 1 }
  0xdf   : > { %1822 = vrot.lane.b32.xlu0 %v1821_v13, %s2986_s6  ;;  %v2322_v5 = vrot.slane %v2316_v59, 6  ;;  %v1575_v59 = vld [vmem:[%s3100_s30 + $0x26] sm:$0x1] }
  0xe0   : > { %v1759_v26 = vpop.permute.xlu1 %1758  ;;  %v1407_v18 = vsel %vm471_vm3, %v1406_v10, %v1405_v9  ;;  %v2188_v9 = vrot.slane %v2181_v1, 1  ;;  %v880_v10 = vld [vmem:[%s3100_s30 + $0xa] sm:$0x1] }
  0xe1   : > { %1762 = vst.msk [vmem:[#allocation2 + $0x20] sm:$0x1c] %vm1761_vm15, %v1759_v26  ;;  %v1640_v32 = vpop.permute.xlu0 %1639  ;;  %v1409_v25 = vsel %vm1224_vm6, %v1408_v15, %v1407_v18  ;;  %v1555_v26 = vld [vmem:[%s3100_s30 + $0x15] sm:$0x1]  ;;  %v1031_v15 = vld [vmem:[%s3100_s30 + $0x14] sm:$0x1] }
  0xe2   : > { %1644 = vst.msk [vmem:[#allocation2 + $0x28] sm:$0x3] %vm1495_vm12, %v1640_v32  ;;  %2175 = vrot.lane.b32.xlu1 %v2174_v24, %s2996_s26  ;;  %v2058_v32 = vld [vmem:[%s3100_s30 + $0x6] sm:$0x1]  ;;  %v1562_v37 = vsel %vm247_vm0, %v1561_v23, %v1555_v26  ;;  %v1037_v23 = vrot.slane %v1031_v15, 6 }
  0xe3   : > { %2053 = vrot.lane.b32.xlu0 %v2052_v27, %s2996_s26  ;;  %v1829_v27 = vld [vmem:[%s3100_s30 + $0x26] sm:$0x1]  ;;  %v1278_v26 = vld [vmem:[%s3100_s30 + $0x14] sm:$0x1]  ;;  %v1965_v15 = vld [vmem:[%s3100_s30 + $0xf] sm:$0x1] }
  0xe4   : > { %v2250_v39 = vpop.permute.xlu1 %2249  ;;  %v1836_v38 = vrot.slane %v1829_v27, 4  ;;  %v1169_v27 = vld [vmem:[%s3100_s30 + $0xd] sm:$0x1] }
  0xe5   : > { %2253 = vst.msk [vmem:[#allocation2 + $0x30] sm:$0x7] %vm2252_vm13, %v2250_v39  ;;  %v1887_v44 = vpop.permute.xlu0 %1886  ;;  %v1714_v39 = vld [vmem:[%s3100_s30 + $0x1e] sm:$0x1] }
  0xe6   : > { %1889 = vst.msk [vmem:[#allocation2 + $0x28] sm:$0x1c] %vm1761_vm15, %v1887_v44  ;;  %2423 = vrot.lane.b32.xlu1 %v2422_v36, %s3005_s7  ;;  %vm980_vm15 = vcmask 125961   ;;  %v1951_v36 = vld [vmem:[%s3100_s30 + $0x1e] sm:$0x1]  ;;  %v2064_v44 = vrot.slane %v2058_v32, 3  ;;  %v1837_v53 = vsel %vm468_vm2, %v1836_v38, %v1835_v41  ;;  %v1721_v56 = vsel %vm247_vm0, %v1720_v42, %v1714_v39 }
  0xe7   : > { %2309 = vrot.lane.b32.xlu0 %v2308_v40, %s3005_s7  ;;  %v753_v32 = vld [vmem:[%s3100_s30 + $0x23] sm:$0x1]  ;;  %v1171_v38 = vld [vmem:[%s3100_s30 + $0x2d] sm:$0x1]  ;;  %v1175_v39 = vrot.slane %v1169_v27, 7 }
  0xe8   : > { %v839_v51 = vpop.permute.xlu1 %838  ;;  %v1414_v41 = vld [vmem:[%s3100_s30 + $0xd] sm:$0x1]  ;;  %v1415_v42 = vld [vmem:[%s3100_s30 + $0x1d] sm:$0x1]  ;;  %v1967_v27 = vld [vmem:[%s3100_s30 + $0x2f] sm:$0x1] }
  0xe9   : > { %845 = vst.msk [vmem:[#allocation2 + $0x18] sm:$0x1] %vm844_vm14, %v839_v51  ;;  %v2368_v57 = vpop.permute.xlu0 %2367  ;;  %vm1474_vm14 = vcmask 121863   ;;  %v2179_v51 = vld [vmem:[%s3100_s30 + $0xe] sm:$0x1] }
  0xea   : > { %2370 = vst.msk [vmem:[#allocation2 + $0x38] sm:$0x7] %vm2252_vm13, %v2368_v57  ;;  %872 = vrot.lane.b32.xlu1 %v871_v49, %s3000_s11  ;;  %vm1514_vm13 = vcmask 378112   ;;  %v1957_v49 = vrot.slane %v1951_v36, 5  ;;  %v2066_v57 = vsel %vm1224_vm6, %v2065_v45, %v2064_v44  ;;  %v1284_v36 = vrot.slane %v1278_v26, 3  ;;  %s4232_s11 = smov 112  }
  0xeb   : > { %743 = vrot.lane.b32.xlu0 %v734_v52, %s3001_s27  ;;  %v2180_v52 = vld [vmem:[%s3100_s30 + $0x1e] sm:$0x1]  ;;  %v2068_v4 = vsel %vm701_vm4, %v2067_v54, %v2066_v57  ;;  %v1731_v26 = vld [vmem:[%s3100_s30 + $0x1f] sm:$0x1] }
  0xec   : > { %v1490_v2 = vpop.permute.xlu1 %1489  ;;  %v1958_v62 = vsel %vm975_vm5, %v1957_v49, %v1956_v48  ;;  %v1178_v48 = vrot.slane %v1171_v38, 5 }
  0xed   : > { %1496 = vst.msk [vmem:[#allocation2 + $0x20] sm:$0x3] %vm1495_vm12, %v1490_v2  ;;  %v1106_v6 = vpop.permute.xlu0 %1105  ;;  %vm1777_vm12 = vcmask 258186   ;;  %v2185_v2 = vrot.slane %v2179_v51, 3  ;;  %v1960_v7 = vsel %vm468_vm2, %v1959_v58, %v1958_v62  ;;  %v1416_v51 = vld [vmem:[%s3100_s30 + $0x2d] sm:$0x1] }
  0xee   : > { %1108 = vst.msk [vmem:[#allocation2 + $0x18] sm:$0xe] %vm980_vm15, %v1106_v6  ;;  %1025 = vrot.lane.b32.xlu1 %v1024_v63, %s2984_s4  ;;  %v2314_v63 = vld [vmem:[%s3100_s30 + $0x8] sm:$0x1]  ;;  %s3006_s4 = smov 111   ;;  %v1423_v58 = vrot.slane %v1416_v51, 2 }
  0xef   : > { %908 = vrot.lane.b32.xlu0 %v899_v3, %s3003_s10  ;;  %v2186_v3 = vrot.slane %v2180_v52, 2  ;;  %v2321_v8 = vsel %vm247_vm0, %v2320_v60, %v2314_v63  ;;  %v1420_v52 = vrot.slane %v1414_v41, 4  ;;  %v1843_v62 = vld [vmem:[%s3100_s30 + $0x7] sm:$0x1]  ;;  %v1844_v63 = vld [vmem:[%s3100_s30 + $0x17] sm:$0x1] }
  0xf0   : > { %v1657_v13 = vpop.permute.xlu1 %1656  ;;  %v2323_v16 = vsel %vm250_vm1, %v2322_v5, %v2321_v8  ;;  %v1849_v8 = vrot.slane %v1843_v62, 6  ;;  %v1184_v51 = vld [vmem:[%s3100_s30 + $0xe] sm:$0x1] }
  0xf1   : > { %1661 = vst.msk [vmem:[#allocation2 + $0x28] sm:$0x3] %vm1514_vm13, %v1657_v13  ;;  %v1621_v17 = vpop.permute.xlu0 %1620  ;;  %v2187_v13 = vsel %vm1224_vm6, %v2186_v3, %v2185_v2  ;;  %v1696_v2 = vld [vmem:[%s3100_s30 + $0xd] sm:$0x1]  ;;  %v1580_v3 = vrot.slane %v1575_v59, 7 }
  0xf2   : > { %1626 = vst.msk [vmem:[#allocation2 + $0x18] sm:$0x80] %vm1474_vm14, %v1621_v17  ;;  %1272 = vrot.lane.b32.xlu1 %v1271_v11, %s2993_s19  ;;  %v881_v11 = vld [vmem:[%s3100_s30 + $0x1a] sm:$0x1]  ;;  %v886_v17 = vrot.slane %v880_v10, 2  ;;  %v2189_v20 = vsel %vm701_vm4, %v2188_v9, %v2187_v13  ;;  %v1850_v9 = vrot.slane %v1844_v63, 5 }
  0xf3   : > { %1165 = vrot.lane.b32.xlu0 %v1164_v14, %s2986_s6  ;;  %v1030_v14 = vld [vmem:[%s3100_s30 + $0x4] sm:$0x1]  ;;  %v887_v18 = vrot.slane %v881_v11, 1  ;;  %v1732_v11 = vld [vmem:[%s3100_s30 + $0x2f] sm:$0x1] }
  0xf4   : > { %v1902_v24 = vpop.permute.xlu1 %1901  ;;  %v1036_v22 = vrot.slane %v1030_v14, 7  ;;  %v2075_v13 = vld [vmem:[%s3100_s30 + $0x17] sm:$0x1]  ;;  %v1702_v14 = vrot.slane %v1696_v2, 1  ;;  %v1048_v63 = vld [vmem:[%s3100_s30 + $0x25] sm:$0x1] }
  0xf5   : > { %1904 = vst.msk [vmem:[#allocation2 + $0x28] sm:$0x1c] %vm1777_vm12, %v1902_v24  ;;  %v1775_v30 = vpop.permute.xlu0 %1774  ;;  %v888_v29 = vsel %vm701_vm4, %v887_v18, %v886_v17 }
  0xf6   : > { %1778 = vst.msk [vmem:[#allocation2 + $0x20] sm:$0x1c] %vm1777_vm12, %v1775_v30  ;;  %1525 = vrot.lane.b32.xlu1 %v1522_v21, %s3001_s27  ;;  %vm2267_vm12 = vcmask 510336   ;;  %v1032_v21 = vld [vmem:[%s3100_s30 + $0x24] sm:$0x1]  ;;  %v1038_v33 = vsel %vm250_vm1, %v1037_v23, %v1036_v22 }
  0xf7   : > { %1410 = vrot.lane.b32.xlu0 %v1409_v25, %s2996_s26  ;;  %v1277_v25 = vld [vmem:[%s3100_s30 + $0x4] sm:$0x1]  ;;  %v1039_v30 = vrot.slane %v1032_v21, 5  ;;  %v1737_v21 = vrot.slane %v1732_v11, 7  ;;  %v2076_v22 = vld [vmem:[%s3100_s30 + $0x27] sm:$0x1] }
  0xf8   : > { %v2131_v40 = vpop.permute.xlu1 %2130  ;;  %v1283_v35 = vrot.slane %v1277_v25, 4 }
  0xf9   : > { %2133 = vst.msk [vmem:[#allocation2 + $0x28] sm:$0xe0] %vm2008_vm10, %v2131_v40  ;;  %v2006_v46 = vpop.permute.xlu0 %2005  ;;  %v1176_v40 = vrot.slane %v1170_v28, 6  ;;  %v1040_v43 = vsel %vm975_vm5, %v1039_v30, %v1038_v33  ;;  %v1971_v28 = vrot.slane %v1965_v15, 6  ;;  %v2194_v30 = vld [vmem:[%s3100_s30 + $0xf] sm:$0x1] }
  0xfa   : > { %2009 = vst.msk [vmem:[#allocation2 + $0x20] sm:$0xe0] %vm2008_vm10, %v2006_v46  ;;  %1688 = vrot.lane.b32.xlu1 %v1685_v34, %s3003_s10  ;;  %vm1243_vm10 = vcmask 260228   ;;  %v1279_v34 = vld [vmem:[%s3100_s30 + $0x24] sm:$0x1]  ;;  %v1285_v47 = vsel %vm471_vm3, %v1284_v36, %v1283_v35  ;;  %v2083_v33 = vrot.slane %v2076_v22, 1  ;;  %v1738_v35 = vsel %vm247_vm0, %v1737_v21, %v1731_v26 }
  0xfb   : > { %1565 = vrot.lane.b32.xlu0 %v1562_v37, %s3004_s5  ;;  %v1286_v44 = vrot.slane %v1279_v34, 2  ;;  %v916_v46 = vld [vmem:[%s3100_s30 + $0x2c] sm:$0x1]  ;;  %v1177_v50 = vsel %vm250_vm1, %v1176_v40, %v1175_v39  ;;  %v2196_v40 = vld [vmem:[%s3100_s30 + $0x2f] sm:$0x1]  ;;  %v2200_v41 = vrot.slane %v2194_v30, 3 }
  0xfc   : > { %v2382_v55 = vpop.permute.xlu1 %2381  ;;  %v1179_v57 = vsel %vm975_vm5, %v1178_v48, %v1177_v50  ;;  %v898_v48 = vld [vmem:[%s3100_s30 + $0x1b] sm:$0x1] }
  0xfd   : > { %2384 = vst.msk [vmem:[#allocation2 + $0x38] sm:$0x7] %vm2267_vm12, %v2382_v55  ;;  %v2265_v61 = vpop.permute.xlu0 %2264  ;;  %v1287_v54 = vsel %vm1224_vm6, %v1286_v44, %v1285_v47  ;;  %v1535_v55 = vld [vmem:[%s3100_s30 + $0x4] sm:$0x1]  ;;  %v897_v47 = vld [vmem:[%s3100_s30 + $0xb] sm:$0x1] }
  0xfe   : > { %2268 = vst.msk [vmem:[#allocation2 + $0x30] sm:$0x7] %vm2267_vm12, %v2265_v61  ;;  %1838 = vrot.lane.b32.xlu1 %v1837_v53, %s2989_s9  ;;  %vm996_vm12 = vcmask 257161   ;;  %v1421_v53 = vrot.slane %v1415_v42, 3  ;;  %v1541_v1 = vrot.slane %v1535_v55, 1 }
  0xff   : > { %1724 = vrot.lane.b32.xlu0 %v1721_v56, %s3005_s7  ;;  %v772_v55 = vld [vmem:[%s3100_s30 + $0x24] sm:$0x1] }
 0x100   : > { %v978_v6 = vpop.permute.xlu1 %977  ;;  %v1422_v61 = vsel %vm471_vm3, %v1421_v53, %v1420_v52  ;;  %v1185_v52 = vld [vmem:[%s3100_s30 + $0x1e] sm:$0x1]  ;;  %v1046_v53 = vld [vmem:[%s3100_s30 + $0x5] sm:$0x1] }
 0x101   : > { %981 = vst.msk [vmem:[#allocation2 + $0x10] sm:$0xe] %vm980_vm15, %v978_v6  ;;  %v858_v12 = vpop.permute.xlu0 %857  ;;  %vm1493_vm15 = vcmask 253063   ;;  %v1424_v5 = vsel %vm1224_vm6, %v1423_v58, %v1422_v61  ;;  %v1574_v6 = vld [vmem:[%s3100_s30 + $0x16] sm:$0x1]  ;;  %v1190_v61 = vrot.slane %v1184_v51, 7 }
 0x102   : > { %862 = vst.msk [vmem:[#allocation2 + $0x18] sm:$0x1] %vm711_vm9, %v858_v12  ;;  %2069 = vrot.lane.b32.xlu1 %v2068_v4, %s2995_s23  ;;  %vm1533_vm9 = vcmask 509312   ;;  %v2074_v12 = vld [vmem:[%s3100_s30 + $0x7] sm:$0x1]  ;;  %v1581_v17 = vsel %vm247_vm0, %v1580_v3, %v1574_v6  ;;  %v1191_v62 = vrot.slane %v1185_v52, 6 }
 0x103   : > { %1961 = vrot.lane.b32.xlu0 %v1960_v7, %s2989_s9  ;;  %v1845_v7 = vld [vmem:[%s3100_s30 + $0x27] sm:$0x1]  ;;  %v2080_v23 = vrot.slane %v2074_v12, 3  ;;  %v1052_v2 = vrot.slane %v1046_v53, 7  ;;  %v1293_v6 = vld [vmem:[%s3100_s30 + $0x5] sm:$0x1] }
 0x104   : > { %v1366_v19 = vpop.permute.xlu1 %1365  ;;  %v1852_v18 = vrot.slane %v1845_v7, 4  ;;  %v1294_v7 = vld [vmem:[%s3100_s30 + $0x15] sm:$0x1]  ;;  %v1192_v12 = vsel %vm250_vm1, %v1191_v62, %v1190_v61  ;;  %v751_v51 = vld [vmem:[%s3100_s30 + $0x3] sm:$0x1] }
 0x105   : > { %1368 = vst.msk [vmem:[#allocation2 + $0x18] sm:$0x70] %vm1243_vm10, %v1366_v19  ;;  %v1121_v24 = vpop.permute.xlu0 %1120  ;;  %v1300_v21 = vrot.slane %v1294_v7, 3  ;;  %v752_v52 = vld [vmem:[%s3100_s30 + $0x13] sm:$0x1] }
 0x106   : > { %1123 = vst.msk [vmem:[#allocation2 + $0x18] sm:$0xe] %vm996_vm12, %v1121_v24  ;;  %2324 = vrot.lane.b32.xlu1 %v2323_v16, %s3006_s4  ;;  %v1966_v16 = vld [vmem:[%s3100_s30 + $0x1f] sm:$0x1]  ;;  %v2081_v24 = vrot.slane %v2075_v13, 2  ;;  %v1055_v13 = vrot.slane %v1048_v63, 5 }
 0x107   : > { %2190 = vrot.lane.b32.xlu0 %v2189_v20, %s2995_s23  ;;  %v1851_v20 = vsel %vm975_vm5, %v1850_v9, %v1849_v8  ;;  %v933_v8 = vld [vmem:[%s3100_s30 + $0x2d] sm:$0x1]  ;;  %v914_v63 = vld [vmem:[%s3100_s30 + $0xc] sm:$0x1] }
 0x108   : > { %v1509_v31 = vpop.permute.xlu1 %1508  ;;  %v2082_v36 = vsel %vm1224_vm6, %v2081_v24, %v2080_v23  ;;  %v920_v7 = vrot.slane %v914_v63, 2  ;;  %v1326_v63 = vld [vmem:[%s3100_s30 + $0x17] sm:$0x1] }
 0x109   : > { %1515 = vst.msk [vmem:[#allocation2 + $0x20] sm:$0x3] %vm1514_vm13, %v1509_v31  ;;  %v1469_v37 = vpop.permute.xlu0 %1468  ;;  %vm1793_vm13 = vcmask 389386   ;;  %v2195_v31 = vld [vmem:[%s3100_s30 + $0x1f] sm:$0x1] }
 0x10a   : > { %1475 = vst.msk [vmem:[#allocation2 + $0x10] sm:$0x80] %vm1474_vm14, %v1469_v37  ;;  %889 = vrot.lane.b32.xlu1 %v888_v29, %s3001_s27  ;;  %vm2024_vm14 = vcmask 392453   ;;  %v1972_v29 = vrot.slane %v1966_v16, 5  ;;  %v1974_v37 = vrot.slane %v1967_v27, 4  ;;  %v2201_v42 = vrot.slane %v2195_v31, 2 }
 0x10b   : > { %762 = vrot.lane.b32.xlu0 %v753_v32, %s3003_s10  ;;  %v1853_v32 = vsel %vm468_vm2, %v1852_v18, %v1851_v20  ;;  %v1299_v20 = vrot.slane %v1293_v6, 4  ;;  %v1859_v31 = vld [vmem:[%s3100_s30 + $0x8] sm:$0x1] }
 0x10c   : > { %v1674_v45 = vpop.permute.xlu1 %1673  ;;  %v1973_v39 = vsel %vm975_vm5, %v1972_v29, %v1971_v28  ;;  %v2202_v50 = vsel %vm1224_vm6, %v2201_v42, %v2200_v41  ;;  %v1594_v28 = vld [vmem:[%s3100_s30 + $0x27] sm:$0x1] }
 0x10d   : > { %1678 = vst.msk [vmem:[#allocation2 + $0x28] sm:$0x3] %vm1533_vm9, %v1674_v45  ;;  %v1638_v49 = vpop.permute.xlu0 %1637  ;;  %v1975_v45 = vsel %vm468_vm2, %v1974_v37, %v1973_v39  ;;  %v1301_v30 = vsel %vm471_vm3, %v1300_v21, %v1299_v20  ;;  %v1861_v39 = vld [vmem:[%s3100_s30 + $0x28] sm:$0x1] }
 0x10e   : > { %1643 = vst.msk [vmem:[#allocation2 + $0x18] sm:$0x80] %vm1493_vm15, %v1638_v49  ;;  %1041 = vrot.lane.b32.xlu1 %v1040_v43, %s2986_s6  ;;  %v2084_v43 = vsel %vm701_vm4, %v2083_v33, %v2082_v36  ;;  %s4230_s6 = smov 96  }
 0x10f   : > { %925 = vrot.lane.b32.xlu0 %v916_v46, %s3004_s5  ;;  %v2203_v46 = vrot.slane %v2196_v40, 1  ;;  %v1865_v40 = vrot.slane %v1859_v31, 6  ;;  %v1444_v31 = vld [vmem:[%s3100_s30 + $0xf] sm:$0x1] }
 0x110   : > { %v1917_v56 = vpop.permute.xlu1 %1916 }
 0x111   : > { %1919 = vst.msk [vmem:[#allocation2 + $0x28] sm:$0x1c] %vm1793_vm13, %v1917_v56  ;;  %v1791_v60 = vpop.permute.xlu0 %1790  ;;  %v903_v56 = vrot.slane %v897_v47, 2  ;;  %v2204_v59 = vsel %vm701_vm4, %v2203_v46, %v2202_v50  ;;  %v1868_v47 = vrot.slane %v1861_v39, 4  ;;  %v1713_v50 = vld [vmem:[%s3100_s30 + $0xe] sm:$0x1] }
 0x112   : > { %1794 = vst.msk [vmem:[#allocation2 + $0x20] sm:$0x1c] %vm1793_vm13, %v1791_v60  ;;  %1288 = vrot.lane.b32.xlu1 %v1287_v54, %s2996_s26  ;;  %vm2282_vm13 = vcmask 641536   ;;  %v1047_v54 = vld [vmem:[%s3100_s30 + $0x15] sm:$0x1] }
 0x113   : > { %1180 = vrot.lane.b32.xlu0 %v1179_v57, %s2989_s9  ;;  %v904_v57 = vrot.slane %v898_v48, 1  ;;  %v1186_v60 = vld [vmem:[%s3100_s30 + $0x2e] sm:$0x1]  ;;  %v1053_v3 = vrot.slane %v1047_v54, 6  ;;  %v2092_v54 = vld [vmem:[%s3100_s30 + $0x28] sm:$0x1] }
 0x114   : > { %v2146_v4 = vpop.permute.xlu1 %2145  ;;  %v2099_v62 = vrot.slane %v2092_v54, 1 }
 0x115   : > { %2148 = vst.msk [vmem:[#allocation2 + $0x28] sm:$0xe0] %vm2024_vm14, %v2146_v4  ;;  %v2022_v10 = vpop.permute.xlu0 %2021  ;;  %v1429_v4 = vld [vmem:[%s3100_s30 + $0xe] sm:$0x1]  ;;  %v905_v9 = vsel %vm701_vm4, %v904_v57, %v903_v56  ;;  %v1054_v18 = vsel %vm250_vm1, %v1053_v3, %v1052_v2 }
 0x116   : > { %2025 = vst.msk [vmem:[#allocation2 + $0x20] sm:$0xe0] %vm2024_vm14, %v2022_v10  ;;  %1544 = vrot.lane.b32.xlu1 %v1541_v1, %s3003_s10  ;;  %vm842_vm14 = vcmask 121862   ;;  %v1193_v10 = vrot.slane %v1186_v60, 5  ;;  %v1435_v15 = vrot.slane %v1429_v4, 4  ;;  %v758_v60 = vrot.slane %v752_v52, 1 }
 0x117   : > { %1425 = vrot.lane.b32.xlu0 %v1424_v5, %s2995_s23  ;;  %v1430_v5 = vld [vmem:[%s3100_s30 + $0x1e] sm:$0x1]  ;;  %v1062_v4 = vld [vmem:[%s3100_s30 + $0x6] sm:$0x1] }
 0x118   : > { %v2396_v19 = vpop.permute.xlu1 %2395  ;;  %v1436_v16 = vrot.slane %v1430_v5, 3  ;;  %v1194_v22 = vsel %vm975_vm5, %v1193_v10, %v1192_v12  ;;  %v1063_v5 = vld [vmem:[%s3100_s30 + $0x16] sm:$0x1]  ;;  %v1068_v12 = vrot.slane %v1062_v4, 7 }
 0x119   : > { %2398 = vst.msk [vmem:[#allocation2 + $0x38] sm:$0x7] %vm2282_vm13, %v2396_v19  ;;  %v2280_v25 = vpop.permute.xlu0 %2279  ;;  %v1295_v19 = vld [vmem:[%s3100_s30 + $0x25] sm:$0x1] }
 0x11a   : > { %2283 = vst.msk [vmem:[#allocation2 + $0x30] sm:$0x7] %vm2282_vm13, %v2280_v25  ;;  %1705 = vrot.lane.b32.xlu1 %v1702_v14, %s3004_s5  ;;  %vm1012_vm13 = vcmask 388361   ;;  %v1431_v14 = vld [vmem:[%s3100_s30 + $0x2e] sm:$0x1]  ;;  %v1056_v25 = vsel %vm975_vm5, %v1055_v13, %v1054_v18  ;;  %v1437_v26 = vsel %vm471_vm3, %v1436_v16, %v1435_v15  ;;  %v1302_v27 = vrot.slane %v1295_v19, 2 }
 0x11b   : > { %1584 = vrot.lane.b32.xlu0 %v1581_v17, %s3005_s7  ;;  %v1438_v23 = vrot.slane %v1431_v14, 2  ;;  %v1069_v13 = vrot.slane %v1063_v5, 6  ;;  %v1309_v15 = vld [vmem:[%s3100_s30 + $0x6] sm:$0x1]  ;;  %v1310_v16 = vld [vmem:[%s3100_s30 + $0x16] sm:$0x1] }
 0x11c   : > { %v875_v34 = vpop.permute.xlu1 %874  ;;  %v1303_v37 = vsel %vm1224_vm6, %v1302_v27, %v1301_v30  ;;  %v1200_v18 = vld [vmem:[%s3100_s30 + $0x1f] sm:$0x1] }
 0x11d   : > { %879 = vst.msk [vmem:[#allocation2 + $0x18] sm:$0x1] %vm730_vm11, %v875_v34  ;;  %v837_v38 = vpop.permute.xlu0 %836  ;;  %vm1259_vm11 = vcmask 391428   ;;  %v1439_v33 = vsel %vm1224_vm6, %v1438_v23, %v1437_v26  ;;  %v1593_v34 = vld [vmem:[%s3100_s30 + $0x17] sm:$0x1]  ;;  %v1070_v23 = vsel %vm250_vm1, %v1069_v13, %v1068_v12  ;;  %v1316_v26 = vrot.slane %v1310_v16, 3 }
 0x11e   : > { %843 = vst.msk [vmem:[#allocation2 + $0x8] sm:$0xc0] %vm842_vm14, %v837_v38  ;;  %1854 = vrot.lane.b32.xlu1 %v1853_v32, %s2988_s8  ;;  %v1860_v32 = vld [vmem:[%s3100_s30 + $0x18] sm:$0x1]  ;;  %v1554_v38 = vld [vmem:[%s3100_s30 + $0x5] sm:$0x1] }
 0x11f   : > { %1741 = vrot.lane.b32.xlu0 %v1738_v35, %s3006_s4  ;;  %v1599_v35 = vrot.slane %v1594_v28, 7  ;;  %v1866_v41 = vrot.slane %v1860_v32, 5  ;;  %v1560_v46 = vrot.slane %v1554_v38, 1  ;;  %vm1028_vm14 = vcmask 519561   ;;  %v1201_v28 = vld [vmem:[%s3100_s30 + $0x2f] sm:$0x1] }
 0x120   : > { %v1136_v44 = vpop.permute.xlu1 %1135  ;;  %v1206_v30 = vrot.slane %v1200_v18, 6  ;;  %v1445_v32 = vld [vmem:[%s3100_s30 + $0x1f] sm:$0x1]  ;;  %v1208_v38 = vrot.slane %v1201_v28, 5  ;;  %v1080_v12 = vld [vmem:[%s3100_s30 + $0x27] sm:$0x1] }
 0x121   : > { %1138 = vst.msk [vmem:[#allocation2 + $0x18] sm:$0xe] %vm1012_vm13, %v1136_v44  ;;  %v994_v49 = vpop.permute.xlu0 %993  ;;  %v2091_v44 = vld [vmem:[%s3100_s30 + $0x18] sm:$0x1]  ;;  %v810_v16 = vld [vmem:[%s3100_s30 + $0x26] sm:$0x1] }
 0x122   : > { %997 = vst.msk [vmem:[#allocation2 + $0x10] sm:$0xe] %vm996_vm12, %v994_v49  ;;  %2085 = vrot.lane.b32.xlu1 %v2084_v43, %s4230_s6  ;;  %vm1512_vm12 = vcmask 384263   ;;  %v2090_v43 = vld [vmem:[%s3100_s30 + $0x8] sm:$0x1]  ;;  %v1867_v49 = vsel %vm975_vm5, %v1866_v41, %v1865_v40  ;;  %v2097_v56 = vrot.slane %v2091_v44, 2 }
 0x123   : > { %1976 = vrot.lane.b32.xlu0 %v1975_v45, %s2988_s8  ;;  %v1600_v45 = vsel %vm247_vm0, %v1599_v35, %v1593_v34  ;;  %vm2297_vm0 = vcmask 772736   ;;  %v1869_v57 = vsel %vm468_vm2, %v1868_v47, %v1867_v49  ;;  %vm749_vm2 = vcmask 508288   ;;  %v1446_v41 = vld [vmem:[%s3100_s30 + $0x2f] sm:$0x1]  ;;  %v770_v49 = vld [vmem:[%s3100_s30 + $0x4] sm:$0x1] }
 0x124   : > { %v1381_v58 = vpop.permute.xlu1 %1380  ;;  %v776_v54 = vrot.slane %v770_v49, 2 }
 0x125   : > { %1383 = vst.msk [vmem:[#allocation2 + $0x18] sm:$0x70] %vm1259_vm11, %v1381_v58  ;;  %v1241_v1 = vpop.permute.xlu0 %1240  ;;  %v1719_v58 = vrot.slane %v1713_v50, 1  ;;  %v771_v50 = vld [vmem:[%s3100_s30 + $0x14] sm:$0x1] }
 0x126   : > { %1244 = vst.msk [vmem:[#allocation2 + $0x10] sm:$0x70] %vm1243_vm10, %v1241_v1  ;;  %781 = vrot.lane.b32.xlu1 %v772_v55, %s3004_s5  ;;  %vm1552_vm10 = vcmask 640512   ;;  %v2096_v55 = vrot.slane %v2090_v43, 3  ;;  %v915_v1 = vld [vmem:[%s3100_s30 + $0x1c] sm:$0x1] }
 0x127   : > { %2205 = vrot.lane.b32.xlu0 %v2204_v59, %s4230_s6  ;;  %v757_v59 = vrot.slane %v751_v51, 2  ;;  %v1451_v43 = vrot.slane %v1445_v32, 3  ;;  %v809_v32 = vld [vmem:[%s3100_s30 + $0x16] sm:$0x1] }
 0x128   : > { %v1528_v11 = vpop.permute.xlu1 %1527  ;;  %v2098_v3 = vsel %vm1224_vm6, %v2097_v56, %v2096_v55  ;;  %v777_v55 = vrot.slane %v771_v50, 1 }
 0x129   : > { %1534 = vst.msk [vmem:[#allocation2 + $0x20] sm:$0x3] %vm1533_vm9, %v1528_v11  ;;  %v1488_v17 = vpop.permute.xlu0 %1487  ;;  %vm1809_vm9 = vcmask 520586   ;;  %v759_v6 = vsel %vm701_vm4, %v758_v60, %v757_v59  ;;  %v2100_v10 = vsel %vm701_vm4, %v2099_v62, %v2098_v3  ;;  %v1064_v11 = vld [vmem:[%s3100_s30 + $0x26] sm:$0x1] }
 0x12a   : > { %1494 = vst.msk [vmem:[#allocation2 + $0x10] sm:$0x80] %vm1493_vm15, %v1488_v17  ;;  %942 = vrot.lane.b32.xlu1 %v933_v8, %s3005_s7  ;;  %vm2040_vm15 = vcmask 523653   ;;  %v921_v8 = vrot.slane %v915_v1, 1  ;;  %v1199_v17 = vld [vmem:[%s3100_s30 + $0xf] sm:$0x1]  ;;  %v778_v3 = vsel %vm701_vm4, %v777_v55, %v776_v54 }
 0x12b   : > { %906 = vrot.lane.b32.xlu0 %v905_v9, %s3003_s10  ;;  %v1071_v20 = vrot.slane %v1064_v11, 5  ;;  %v931_v59 = vld [vmem:[%s3100_s30 + $0xd] sm:$0x1]  ;;  %v932_v60 = vld [vmem:[%s3100_s30 + $0x1d] sm:$0x1]  ;;  %v2443_v55 = vld [vmem:[%s4219_s2] sm:$0xff] }
 0x12c   : > { %v1691_v24 = vpop.permute.xlu1 %1690  ;;  %v922_v19 = vsel %vm701_vm4, %v921_v8, %v920_v7  ;;  %v1325_v62 = vld [vmem:[%s3100_s30 + $0x7] sm:$0x1]  ;;  %v937_v5 = vrot.slane %v931_v59, 2  ;;  %v2444_v54 = vld [vmem:[%s4219_s2 + $0x8] sm:$0xff]  ;;  %v2446_v59 = vld [vmem:[%s4219_s2 + $0x18] sm:$0xff] }
 0x12d   : > { %1695 = vst.msk [vmem:[#allocation2 + $0x28] sm:$0x3] %vm1552_vm10, %v1691_v24  ;;  %v1655_v29 = vpop.permute.xlu0 %1654  ;;  %v1311_v24 = vld [vmem:[%s3100_s30 + $0x26] sm:$0x1]  ;;  %v1078_v1 = vld [vmem:[%s3100_s30 + $0x7] sm:$0x1] }
 0x12e   : > { %1660 = vst.msk [vmem:[#allocation2 + $0x18] sm:$0x80] %vm1512_vm12, %v1655_v29  ;;  %1195 = vrot.lane.b32.xlu1 %v1194_v22, %s2988_s8  ;;  %v791_v22 = vld [vmem:[%s3100_s30 + $0x25] sm:$0x1]  ;;  %v1205_v29 = vrot.slane %v1199_v17, 7  ;;  %v1318_v34 = vrot.slane %v1311_v24, 2 }
 0x12f   : > { %1057 = vrot.lane.b32.xlu0 %v1056_v25, %s2989_s9  ;;  %s4231_s9 = smov 113   ;;  %v1315_v25 = vrot.slane %v1309_v15, 4  ;;  %v1327_v8 = vld [vmem:[%s3100_s30 + $0x27] sm:$0x1]  ;;  %v1084_v13 = vrot.slane %v1078_v1, 7 }
 0x130   : > { %v1932_v36 = vpop.permute.xlu1 %1931  ;;  %v1207_v40 = vsel %vm250_vm1, %v1206_v30, %v1205_v29  ;;  %v1334_v17 = vrot.slane %v1327_v8, 2  ;;  %v1592_v30 = vld [vmem:[%s3100_s30 + $0x7] sm:$0x1] }
 0x131   : > { %1934 = vst.msk [vmem:[#allocation2 + $0x28] sm:$0x1c] %vm1809_vm9, %v1932_v36  ;;  %v1807_v42 = vpop.permute.xlu0 %1806  ;;  %v950_v36 = vld [vmem:[%s3100_s30 + $0x2e] sm:$0x1]  ;;  %v1209_v47 = vsel %vm975_vm5, %v1208_v38, %v1207_v40 }
 0x132   : > { %1810 = vst.msk [vmem:[#allocation2 + $0x20] sm:$0x1c] %vm1809_vm9, %v1807_v42  ;;  %1440 = vrot.lane.b32.xlu1 %v1439_v33, %s4230_s6  ;;  %v1072_v33 = vsel %vm975_vm5, %v1071_v20, %v1070_v23  ;;  %v1450_v42 = vrot.slane %v1444_v31, 4  ;;  %v1087_v20 = vrot.slane %v1080_v12, 5  ;;  %vm2312_vm9 = vcmask 903936  }
 0x133   : > { %1304 = vrot.lane.b32.xlu0 %v1303_v37, %s2995_s23  ;;  %v1317_v37 = vsel %vm471_vm3, %v1316_v26, %v1315_v25  ;;  %v808_v31 = vld [vmem:[%s3100_s30 + $0x6] sm:$0x1] }
 0x134   : > { %v2161_v48 = vpop.permute.xlu1 %2160  ;;  %v1319_v44 = vsel %vm1224_vm6, %v1318_v34, %v1317_v37  ;;  %v1452_v52 = vsel %vm471_vm3, %v1451_v43, %v1450_v42  ;;  %v948_v34 = vld [vmem:[%s3100_s30 + $0xe] sm:$0x1]  ;;  %v1598_v37 = vrot.slane %v1592_v30, 1  ;;  %v814_v38 = vrot.slane %v808_v31, 2 }
 0x135   : > { %2163 = vst.msk [vmem:[#allocation2 + $0x28] sm:$0xe0] %vm2040_vm15, %v2161_v48  ;;  %v2038_v53 = vpop.permute.xlu0 %2037  ;;  %v1453_v48 = vrot.slane %v1446_v41, 2  ;;  %v954_v41 = vrot.slane %v948_v34, 2 }
 0x136   : > { %2041 = vst.msk [vmem:[#allocation2 + $0x20] sm:$0xe0] %vm2040_vm15, %v2038_v53  ;;  %1603 = vrot.lane.b32.xlu1 %v1600_v45, %s3006_s4  ;;  %v1573_v45 = vld [vmem:[%s3100_s30 + $0x6] sm:$0x1]  ;;  %vm1590_vm15 = vcmask 902912  }
 0x137   : > { %1563 = vrot.lane.b32.xlu0 %v1560_v46, %s3004_s5  ;;  %v1579_v53 = vrot.slane %v1573_v45, 1 }
 0x138   : > { %v2410_v61 = vpop.permute.xlu1 %2409 }
 0x139   : > { %2412 = vst.msk [vmem:[#allocation2 + $0x38] sm:$0x7] %vm2297_vm0, %v2410_v61  ;;  %v2295_v2 = vpop.permute.xlu0 %2294 }
 0x13a   : > { %2298 = vst.msk [vmem:[#allocation2 + $0x30] sm:$0x7] %vm2297_vm0, %v2295_v2  ;;  %1870 = vrot.lane.b32.xlu1 %v1869_v57, %s4231_s9  ;;  %v1454_v57 = vsel %vm1224_vm6, %v1453_v48, %v1452_v52  ;;  %v1079_v2 = vld [vmem:[%s3100_s30 + $0x17] sm:$0x1]  ;;  %vm2072_vm0 = vcmask 786053  }
 0x13b   : > { %1722 = vrot.lane.b32.xlu0 %v1719_v58, %s3005_s7  ;;  %v1730_v58 = vld [vmem:[%s3100_s30 + $0xf] sm:$0x1] }
 0x13c   : > { %v892_v9 = vpop.permute.xlu1 %891  ;;  %v1736_v4 = vrot.slane %v1730_v58, 1  ;;  %v2445_v58 = vld [vmem:[%s4219_s2 + $0x10] sm:$0xff] }
 0x13d   : > { %896 = vst.msk [vmem:[#allocation2 + $0x18] sm:$0x1] %vm749_vm2, %v892_v9  ;;  %v856_v14 = vpop.permute.xlu0 %855  ;;  %v1331_v9 = vrot.slane %v1325_v62, 4  ;;  %v2447_v62 = vld [vmem:[%s4219_s2 + $0x20] sm:$0xff] }
 0x13e   : > { %861 = vst.msk [vmem:[#allocation2 + $0x8] sm:$0xc0] %vm709_vm7, %v856_v14  ;;  %760 = vrot.lane.b32.xlu1 %v759_v6, %s3003_s10  ;;  %vm1275_vm7 = vcmask 522628   ;;  %v938_v6 = vrot.slane %v932_v60, 1  ;;  %v1085_v14 = vrot.slane %v1079_v2, 6  ;;  %s3008_s10 = smov [#allocation3]  }
 0x13f   : > { %2101 = vrot.lane.b32.xlu0 %v2100_v10, %s4232_s11  ;;  %v1332_v10 = vrot.slane %v1326_v63, 3  ;;  %v2448_v63 = vld [vmem:[%s4219_s2 + $0x28] sm:$0xff] }
 0x140   : > { %v1151_v21 = vpop.permute.xlu1 %1150  ;;  %v939_v15 = vsel %vm701_vm4, %v938_v6, %v937_v5  ;;  %v1086_v24 = vsel %vm250_vm1, %v1085_v14, %v1084_v13  ;;  %vm2516_vm1 = vcmask 1042432  }
 0x141   : > { %1153 = vst.msk [vmem:[#allocation2 + $0x18] sm:$0xe] %vm1028_vm14, %v1151_v21  ;;  %v1010_v27 = vpop.permute.xlu0 %1009  ;;  %v789_v21 = vld [vmem:[%s3100_s30 + $0x5] sm:$0x1]  ;;  %v1088_v29 = vsel %vm975_vm5, %v1087_v20, %v1086_v24  ;;  %vm1044_vm5 = vcmask 650761  }
 0x142   : > { %1013 = vst.msk [vmem:[#allocation2 + $0x10] sm:$0xe] %vm1012_vm13, %v1010_v27  ;;  %923 = vrot.lane.b32.xlu1 %v922_v19, %s3004_s5  ;;  %vm1571_vm13 = vcmask 771712   ;;  %v1333_v19 = vsel %vm471_vm3, %v1332_v10, %v1331_v9  ;;  %v795_v26 = vrot.slane %v789_v21, 2  ;;  %vm768_vm3 = vcmask 639488  }
 0x143   : > { %800 = vrot.lane.b32.xlu0 %v791_v22, %s3005_s7  ;;  %v790_v22 = vld [vmem:[%s3100_s30 + $0x15] sm:$0x1]  ;;  %v1335_v25 = vsel %vm1224_vm6, %v1334_v17, %v1333_v19  ;;  %vm1550_vm6 = vcmask 646663  }
 0x144   : > { %v1396_v35 = vpop.permute.xlu1 %1395  ;;  %v796_v27 = vrot.slane %v790_v22, 1 }
 0x145   : > { %1398 = vst.msk [vmem:[#allocation2 + $0x18] sm:$0x70] %vm1275_vm7, %v1396_v35  ;;  %v1257_v39 = vpop.permute.xlu0 %1256  ;;  %v949_v35 = vld [vmem:[%s3100_s30 + $0x1e] sm:$0x1]  ;;  %s207_s30 = sand.u32 1, %s2965_s13  }
 0x146   : > { %1260 = vst.msk [vmem:[#allocation2 + $0x10] sm:$0x70] %vm1259_vm11, %v1257_v39  ;;  %1073 = vrot.lane.b32.xlu1 %v1072_v33, %s2988_s8  ;;  %vm1531_vm11 = vcmask 515463   ;;  %v815_v39 = vrot.slane %v809_v32, 1  ;;  %v955_v42 = vrot.slane %v949_v35, 1  ;;  %s2795_s8 = sshll.u32 %s207_s30, 7 }
 0x147   : > { %959 = vrot.lane.b32.xlu0 %v950_v36, %s3006_s4  ;;  %v797_v36 = vsel %vm701_vm4, %v796_v27, %v795_v26  ;;  %s4140_s19 = scalar_lea.vmem [#allocation3], %s2795_s8  ;;  %s4171_s15 = scalar_lea.sflag [#allocation4], %s207_s30 }
 0x148   : > { %v1547_v46 = vpop.permute.xlu1 %1546  ;;  %s2685_s23 = sshll.u32 %s4140_s19, 4  ;;  %s4165_s23 = int_to_ptr.vmem [resolvable:$true] %s2685_s23 }
 0x149   : > { %1553 = vst.msk [vmem:[#allocation2 + $0x20] sm:$0x3] %vm1552_vm10, %v1547_v46  ;;  %v1507_v51 = vpop.permute.xlu0 %1506  ;;  %vm1825_vm10 = vcmask 651786   ;;  %s2905_s29 = scalar_lea.vmem %s4165_s23, 2048 }
 0x14a   : > { %1513 = vst.msk [vmem:[#allocation2 + $0x10] sm:$0x80] %vm1512_vm12, %v1507_v51  ;;  %1320 = vrot.lane.b32.xlu1 %v1319_v44, %s4230_s6  ;;  %vm2056_vm12 = vcmask 654853   ;;  %v816_v44 = vsel %vm701_vm4, %v815_v39, %v814_v38  ;;  %p2906_p12 = scmp.ne.s32.totalorder %s4165_s23, %s2905_s29 }
 0x14b   : > { %1210 = vrot.lane.b32.xlu0 %v1209_v47, %s4231_s9  ;;  %v956_v47 = vsel %vm701_vm4, %v955_v42, %v954_v41  ;;  %vm1291_vm4 = vcmask 653828  }
 0x14c   : > { %v1708_v56 = vpop.permute.xlu1 %1707  ;;  %p2907_p13 = pnand %p2906_p12, %p3070_p4 }
 0x14d   : > { %1712 = vst.msk [vmem:[#allocation2 + $0x28] sm:$0x3] %vm1571_vm13, %v1708_v56  ;;  %v1672_v61 = vpop.permute.xlu0 %1671 }
 0x14e   : > { %1677 = vst.msk [vmem:[#allocation2 + $0x18] sm:$0x80] %vm1531_vm11, %v1672_v61  ;;  %1582 = vrot.lane.b32.xlu1 %v1579_v53, %s3005_s7  ;;  %p2908_p0 = pneg %p2907_p13 }
 0x14f   : > { %1455 = vrot.lane.b32.xlu0 %v1454_v57, %s4232_s11  ;;  %v3007_v57 = vmov 0  }
 0x150   : > { %v1947_v7 = vpop.permute.xlu1 %1946  ;;  %2904 = vset.pattern.permute.xlu1 %v3007_v57  ;;  %2903 = vset.pattern.permute.xlu0 %v3007_v57 }
 0x151   : > { %1949 = vst.msk [vmem:[#allocation2 + $0x28] sm:$0x1c] %vm1825_vm10, %v1947_v7  ;;  %v1823_v11 = vpop.permute.xlu0 %1822 }
 0x152   : > { %1826 = vst.msk [vmem:[#allocation2 + $0x20] sm:$0x1c] %vm1825_vm10, %v1823_v11  ;;  %779 = vrot.lane.b32.xlu1 %v778_v3, %s3004_s5  ;;  %v2449_v3 = vld [vmem:[%s4219_s2 + $0x30] sm:$0xff]  ;;  %vm1569_vm10 = vcmask 777863   ;;  %s2909_s5 = sshll.u32 %s3008_s10, 4  ;;  %s2910_s5 = int_to_ptr.vmem [resolvable:$false] %s2909_s5 }
 0x153   : > { %1739 = vrot.lane.b32.xlu0 %v1736_v4, %s3006_s4  ;;  %v2450_v4 = vld [vmem:[%s4219_s2 + $0x38] sm:$0xff]  ;;  %p2912_p1 = scmp.lt.s32.totalorder %s4165_s23, %s2910_s5 }
 0x154   : > { %v2176_v18 = vpop.permute.xlu1 %2175 }
 0x155   : > { %2178 = vst.msk [vmem:[#allocation2 + $0x28] sm:$0xe0] %vm2056_vm12, %v2176_v18  ;;  %v2054_v23 = vpop.permute.xlu0 %2053 }
 0x156   : > { %2057 = vst.msk [vmem:[#allocation2 + $0x20] sm:$0xe0] %vm2056_vm12, %v2054_v23  ;;  %940 = vrot.lane.b32.xlu1 %v939_v15, %s3005_s7  ;;  %vm1857_vm12 = vcmask 914186  }
 0x157   : > { %819 = vrot.lane.b32.xlu0 %v810_v16, %s3006_s4 }
 0x158   : > { %v2424_v28 = vpop.permute.xlu1 %2423 }
 0x159   : > { %2426 = vst.msk [vmem:[#allocation2 + $0x38] sm:$0x7] %vm2312_vm9, %v2424_v28  ;;  %v2310_v33 = vpop.permute.xlu0 %2309 }
 0x15a   : > { %2313 = vst.msk [vmem:[#allocation2 + $0x30] sm:$0x7] %vm2312_vm9, %v2310_v33  ;;  %1336 = vrot.lane.b32.xlu1 %v1335_v25, %s4232_s11  ;;  %vm1609_vm9 = vcmask 1034112  }
 0x15b   : > { %1089 = vrot.lane.b32.xlu0 %v1088_v29, %s4231_s9 }
 0x15c   : > { %v873_v40 = vpop.permute.xlu1 %872 }
 0x15d   : > { %878 = vst.msk [vmem:[#allocation2 + $0x8] sm:$0xc0] %vm728_vm8, %v873_v40  ;;  %v744_v43 = vpop.permute.xlu0 %743  ;;  %vm1841_vm8 = vcmask 782986  }
 0x15e   : > { %750 = vst.msk [vmem:[#allocation2 + $0x10] sm:$0x1] %vm749_vm2, %v744_v43  ;;  %798 = vrot.lane.b32.xlu1 %v797_v36, %s3005_s7  ;;  %vm2327_vm2 = vcmask 1035136   ;;  %s2911_s7 = scalar_lea.vmem %s2910_s5, 4096 }
 0x15f   : > { %1601 = vrot.lane.b32.xlu0 %v1598_v37, %s3006_s4  ;;  %p2913_p2 = scmp.lt.s32.totalorder %s2911_s7, %s2905_s29 }
 0x160   : > { %v1026_v45 = vpop.permute.xlu1 %1025  ;;  %v2442_v46 = vld [vmem:[#allocation2 + $0x38] sm:$0x7] }
 0x161   : > { %1029 = vst.msk [vmem:[#allocation2 + $0x10] sm:$0xe] %vm1028_vm14, %v1026_v45  ;;  %v909_v48 = vpop.permute.xlu0 %908  ;;  %2797 = vmatprep.subr.msk.mxu0 %vm2516_vm1, %v2442_v46  ;;  %2813 = vmatprep.subr.msk.mxu1 %vm2516_vm1, %v2442_v46  ;;  %vm4233_vm14 = vcmask 515462   ;;  %p2914_p3 = por %p2913_p2, %p2912_p1 }
 0x162   : > { %913 = vst.msk [vmem:[#allocation2 + $0x18] sm:$0x1] %vm768_vm3, %v909_v48  ;;  %817 = vrot.lane.b32.xlu1 %v816_v44, %s3006_s4 }
 0x163   : > { %957 = vrot.lane.b32.xlu0 %v956_v47, %s3006_s4  ;;  %p2915_p5 = pnand %p2914_p3, %p2908_p0 }
 0x164   : > { %v1273_v49 = vpop.permute.xlu1 %1272 }
 0x165   : > { %1276 = vst.msk [vmem:[#allocation2 + $0x10] sm:$0x70] %vm1275_vm7, %v1273_v49  ;;  %v1166_v50 = vpop.permute.xlu0 %1165  ;;  %vm787_vm7 = vcmask 770688  }
 0x166   : > { %1168 = vst.msk [vmem:[#allocation2 + $0x18] sm:$0xe] %vm1044_vm5, %v1166_v50  ;;  %2458 = vperm.xlu1 %2904, %v2444_v54  }
 0x167   : > { %2453 = vperm.xlu0 %2903, %v2443_v55  }
 0x168   : > { %v1526_v51 = vpop.permute.xlu1 %1525 }
 0x169   : > { %1532 = vst.msk [vmem:[#allocation2 + $0x10] sm:$0x80] %vm1531_vm11, %v1526_v51  ;;  %v1411_v52 = vpop.permute.xlu0 %1410  ;;  %vm1307_vm11 = vcmask 785028  }
 0x16a   : > { %1413 = vst.msk [vmem:[#allocation2 + $0x18] sm:$0x70] %vm1291_vm4, %v1411_v52  ;;  %2463 = vperm.xlu1 %2904, %v2445_v58  }
 0x16b   : > { %2468 = vperm.xlu0 %2903, %v2446_v59  }
 0x16c   : > { %v1689_v53 = vpop.permute.xlu1 %1688 }
 0x16d   : > { %1694 = vst.msk [vmem:[#allocation2 + $0x18] sm:$0x80] %vm1550_vm6, %v1689_v53  ;;  %v1566_v56 = vpop.permute.xlu0 %1565 }
 0x16e   : > { %1572 = vst.msk [vmem:[#allocation2 + $0x20] sm:$0x3] %vm1571_vm13, %v1566_v56  ;;  %2473 = vperm.xlu1 %2904, %v2447_v62   ;;  %vm1060_vm13 = vcmask 781961   ;;  %v2428_v62 = vld [vmem:[%s4218_s1 + $0x8] sm:$0xff] }
 0x16f   : > { %2478 = vperm.xlu0 %2903, %v2448_v63   ;;  %v2432_v63 = vld [vmem:[%s4218_s1 + $0x28] sm:$0xff] }
 0x170   : > { %v1839_v60 = vpop.permute.xlu1 %1838 }
 0x171   : > { %1842 = vst.msk [vmem:[#allocation2 + $0x20] sm:$0x1c] %vm1841_vm8, %v1839_v60  ;;  %v1725_v61 = vpop.permute.xlu0 %1724  ;;  %v2427_v60 = vld [vmem:[%s4218_s1] sm:$0xff] }
 0x172   : > { %1729 = vst.msk [vmem:[#allocation2 + $0x28] sm:$0x3] %vm1590_vm15, %v1725_v61  ;;  %2483 = vperm.xlu1 %2904, %v2449_v3   ;;  %v2431_v61 = vld [vmem:[%s4218_s1 + $0x20] sm:$0xff]  ;;  %v2430_v3 = vld [vmem:[%s4218_s1 + $0x18] sm:$0xff] }
 0x173   : > { %2488 = vperm.xlu0 %2903, %v2450_v4   ;;  %v2434_v4 = vld [vmem:[%s4218_s1 + $0x38] sm:$0xff] }
 0x174   : > { %v2070_v1 = vpop.permute.xlu1 %2069 }
 0x175   : > { %2073 = vst.msk [vmem:[#allocation2 + $0x20] sm:$0xe0] %vm2072_vm0, %v2070_v1  ;;  %v1962_v2 = vpop.permute.xlu0 %1961  ;;  %v2429_v1 = vld [vmem:[%s4218_s1 + $0x10] sm:$0xff] }
 0x176   : > { %1964 = vst.msk [vmem:[#allocation2 + $0x28] sm:$0x1c] %vm1841_vm8, %v1962_v2  ;;  %vm1873_vm8 = vcmask 1045386   ;;  %v2433_v2 = vld [vmem:[%s4218_s1 + $0x30] sm:$0xff] }
 0x178   : > { %v2325_v5 = vpop.permute.xlu1 %2324 }
 0x179   : > { %2328 = vst.msk [vmem:[#allocation2 + $0x30] sm:$0x7] %vm2327_vm2, %v2325_v5  ;;  %v2191_v6 = vpop.permute.xlu0 %2190  ;;  %vm785_vm2 = vcmask 777862  }
 0x17a   : > { %2193 = vst.msk [vmem:[#allocation2 + $0x28] sm:$0xe0] %vm2072_vm0, %v2191_v6  ;;  %vm2104_vm0 = vcmask 1048453  }
 0x17c   : > { %v890_v7 = vpop.permute.xlu1 %889 }
 0x17d   : > { %895 = vst.msk [vmem:[#allocation2 + $0x8] sm:$0xc0] %vm4233_vm14, %v890_v7  ;;  %v763_v8 = vpop.permute.xlu0 %762  ;;  %vm825_vm14 = vcmask 1033088  }
 0x17e   : > { %769 = vst.msk [vmem:[#allocation2 + $0x10] sm:$0x1] %vm768_vm3, %v763_v8  ;;  %vm806_vm3 = vcmask 901888  }
 0x180   : > { %v1042_v9 = vpop.permute.xlu1 %1041  ;;  %v2441_v10 = vld [vmem:[#allocation2 + $0x30] sm:$0x7] }
 0x181   : > { %1045 = vst.msk [vmem:[#allocation2 + $0x10] sm:$0xe] %vm1044_vm5, %v1042_v9  ;;  %v926_v11 = vpop.permute.xlu0 %925  ;;  %2798 = vmatpush1.msk.msra.mxu0 %vm2516_vm1, %v2441_v10  ;;  %2817 = vmatpush1.msk.msra.mxu1 %vm2516_vm1, %v2441_v10  ;;  %vm2088_vm1 = vcmask 917253   ;;  %vm766_vm5 = vcmask 646662  }
 0x182   : > { %930 = vst.msk [vmem:[#allocation2 + $0x18] sm:$0x1] %vm787_vm7, %v926_v11 }
 0x184   : > { %v1289_v12 = vpop.permute.xlu1 %1288 }
 0x185   : > { %1292 = vst.msk [vmem:[#allocation2 + $0x10] sm:$0x70] %vm1291_vm4, %v1289_v12  ;;  %v1181_v13 = vpop.permute.xlu0 %1180  ;;  %vm1076_vm4 = vcmask 913161  }
 0x186   : > { %1183 = vst.msk [vmem:[#allocation2 + $0x18] sm:$0xe] %vm1060_vm13, %v1181_v13 }
 0x188   : > { %v1545_v14 = vpop.permute.xlu1 %1544 }
 0x189   : > { %1551 = vst.msk [vmem:[#allocation2 + $0x10] sm:$0x80] %vm1550_vm6, %v1545_v14  ;;  %v1426_v15 = vpop.permute.xlu0 %1425  ;;  %vm1323_vm6 = vcmask 916228  }
 0x18a   : > { %1428 = vst.msk [vmem:[#allocation2 + $0x18] sm:$0x70] %vm1307_vm11, %v1426_v15 }
 0x18c   : > { %v1706_v16 = vpop.permute.xlu1 %1705 }
 0x18d   : > { %1711 = vst.msk [vmem:[#allocation2 + $0x18] sm:$0x80] %vm1569_vm10, %v1706_v16  ;;  %v1585_v17 = vpop.permute.xlu0 %1584 }
 0x18e   : > { %1591 = vst.msk [vmem:[#allocation2 + $0x20] sm:$0x3] %vm1590_vm15, %v1585_v17  ;;  %vm1588_vm15 = vcmask 909063  }
 0x190   : > { %v1855_v18 = vpop.permute.xlu1 %1854 }
 0x191   : > { %1858 = vst.msk [vmem:[#allocation2 + $0x20] sm:$0x1c] %vm1857_vm12, %v1855_v18  ;;  %v1742_v19 = vpop.permute.xlu0 %1741 }
 0x192   : > { %1746 = vst.msk [vmem:[#allocation2 + $0x28] sm:$0x3] %vm1609_vm9, %v1742_v19 }
 0x194   : > { %v2086_v20 = vpop.permute.xlu1 %2085 }
 0x195   : > { %2089 = vst.msk [vmem:[#allocation2 + $0x20] sm:$0xe0] %vm2088_vm1, %v2086_v20  ;;  %v1977_v21 = vpop.permute.xlu0 %1976 }
 0x196   : > { %1979 = vst.msk [vmem:[#allocation2 + $0x28] sm:$0x1c] %vm1857_vm12, %v1977_v21  ;;  %vm823_vm12 = vcmask 1040262  }
 0x198   : > { %v782_v22 = vpop.permute.xlu1 %781 }
 0x199   : > { %788 = vst.msk [vmem:[#allocation2 + $0x10] sm:$0x1] %vm787_vm7, %v782_v22  ;;  %v2206_v23 = vpop.permute.xlu0 %2205  ;;  %vm1092_vm7 = vcmask 1044361  }
 0x19a   : > { %2208 = vst.msk [vmem:[#allocation2 + $0x28] sm:$0xe0] %vm2088_vm1, %v2206_v23 }
 0x19c   : > { %v943_v24 = vpop.permute.xlu1 %942 }
 0x19d   : > { %947 = vst.msk [vmem:[#allocation2 + $0x18] sm:$0x1] %vm806_vm3, %v943_v24  ;;  %v907_v25 = vpop.permute.xlu0 %906 }
 0x19e   : > { %912 = vst.msk [vmem:[#allocation2 + $0x8] sm:$0xc0] %vm766_vm5, %v907_v25 }
 0x1a0   : > { %v1196_v26 = vpop.permute.xlu1 %1195 }
 0x1a1   : > { %1198 = vst.msk [vmem:[#allocation2 + $0x18] sm:$0xe] %vm1076_vm4, %v1196_v26  ;;  %v1058_v27 = vpop.permute.xlu0 %1057  ;;  %v2440_v28 = vld [vmem:[#allocation2 + $0x28] sm:$0xff] }
 0x1a2   : > { %1061 = vst.msk [vmem:[#allocation2 + $0x10] sm:$0xe] %vm1060_vm13, %v1058_v27  ;;  %2549 = vmatprep.subr.mxu0 %v2440_v28  ;;  %2814 = vmatprep.subr.mxu1 %v2440_v28  ;;  %vm1339_vm13 = vcmask 1047428  }
 0x1a4   : > { %v1441_v29 = vpop.permute.xlu1 %1440 }
 0x1a5   : > { %1443 = vst.msk [vmem:[#allocation2 + $0x18] sm:$0x70] %vm1323_vm6, %v1441_v29  ;;  %v1305_v30 = vpop.permute.xlu0 %1304 }
 0x1a6   : > { %1308 = vst.msk [vmem:[#allocation2 + $0x10] sm:$0x70] %vm1307_vm11, %v1305_v30  ;;  %vm1607_vm11 = vcmask 1040263  }
 0x1a8   : > { %v1604_v31 = vpop.permute.xlu1 %1603 }
 0x1a9   : > { %1610 = vst.msk [vmem:[#allocation2 + $0x20] sm:$0x3] %vm1609_vm9, %v1604_v31  ;;  %v1564_v32 = vpop.permute.xlu0 %1563  ;;  %vm2491_vm9 = vcmask 220160  }
 0x1aa   : > { %1570 = vst.msk [vmem:[#allocation2 + $0x10] sm:$0x80] %vm1569_vm10, %v1564_v32  ;;  %vm804_vm10 = vcmask 909062  }
 0x1ac   : > { %v1871_v33 = vpop.permute.xlu1 %1870 }
 0x1ad   : > { %1874 = vst.msk [vmem:[#allocation2 + $0x20] sm:$0x1c] %vm1873_vm8, %v1871_v33  ;;  %v1723_v34 = vpop.permute.xlu0 %1722 }
 0x1ae   : > { %1728 = vst.msk [vmem:[#allocation2 + $0x18] sm:$0x80] %vm1588_vm15, %v1723_v34 }
 0x1b0   : > { %v761_v35 = vpop.permute.xlu1 %760 }
 0x1b1   : > { %767 = vst.msk [vmem:[#allocation2] sm:$0xc0] %vm766_vm5, %v761_v35  ;;  %v2102_v36 = vpop.permute.xlu0 %2101 }
 0x1b2   : > { %2105 = vst.msk [vmem:[#allocation2 + $0x20] sm:$0xe0] %vm2104_vm0, %v2102_v36 }
 0x1b4   : > { %v924_v37 = vpop.permute.xlu1 %923 }
 0x1b5   : > { %929 = vst.msk [vmem:[#allocation2 + $0x8] sm:$0xc0] %vm785_vm2, %v924_v37  ;;  %v801_v38 = vpop.permute.xlu0 %800 }
 0x1b6   : > { %807 = vst.msk [vmem:[#allocation2 + $0x10] sm:$0x1] %vm806_vm3, %v801_v38 }
 0x1b8   : > { %v1074_v39 = vpop.permute.xlu1 %1073 }
 0x1b9   : > { %1077 = vst.msk [vmem:[#allocation2 + $0x10] sm:$0xe] %vm1076_vm4, %v1074_v39  ;;  %v960_v40 = vpop.permute.xlu0 %959  ;;  %v2439_v41 = vld [vmem:[#allocation2 + $0x20] sm:$0xff] }
 0x1ba   : > { %964 = vst.msk [vmem:[#allocation2 + $0x18] sm:$0x1] %vm825_vm14, %v960_v40  ;;  %2550 = vmatpush1.msra.mxu0 %v2439_v41  ;;  %2818 = vmatpush1.msra.mxu1 %v2439_v41 }
 0x1bc   : > { %v1321_v42 = vpop.permute.xlu1 %1320 }
 0x1bd   : > { %1324 = vst.msk [vmem:[#allocation2 + $0x10] sm:$0x70] %vm1323_vm6, %v1321_v42  ;;  %v1211_v43 = vpop.permute.xlu0 %1210 }
 0x1be   : > { %1213 = vst.msk [vmem:[#allocation2 + $0x18] sm:$0xe] %vm1092_vm7, %v1211_v43 }
 0x1c0   : > { %v1583_v44 = vpop.permute.xlu1 %1582 }
 0x1c1   : > { %1589 = vst.msk [vmem:[#allocation2 + $0x10] sm:$0x80] %vm1588_vm15, %v1583_v44  ;;  %v1456_v45 = vpop.permute.xlu0 %1455 }
 0x1c2   : > { %1458 = vst.msk [vmem:[#allocation2 + $0x18] sm:$0x70] %vm1339_vm13, %v1456_v45 }
 0x1c4   : > { %v780_v46 = vpop.permute.xlu1 %779 }
 0x1c5   : > { %786 = vst.msk [vmem:[#allocation2] sm:$0xc0] %vm785_vm2, %v780_v46  ;;  %v1740_v47 = vpop.permute.xlu0 %1739 }
 0x1c6   : > { %1745 = vst.msk [vmem:[#allocation2 + $0x18] sm:$0x80] %vm1607_vm11, %v1740_v47 }
 0x1c8   : > { %v941_v48 = vpop.permute.xlu1 %940 }
 0x1c9   : > { %946 = vst.msk [vmem:[#allocation2 + $0x8] sm:$0xc0] %vm804_vm10, %v941_v48  ;;  %v820_v49 = vpop.permute.xlu0 %819 }
 0x1ca   : > { %826 = vst.msk [vmem:[#allocation2 + $0x10] sm:$0x1] %vm825_vm14, %v820_v49 }
 0x1cc   : > { %v1337_v50 = vpop.permute.xlu1 %1336 }
 0x1cd   : > { %1340 = vst.msk [vmem:[#allocation2 + $0x10] sm:$0x70] %vm1339_vm13, %v1337_v50  ;;  %v1090_v51 = vpop.permute.xlu0 %1089  ;;  %v2438_v52 = vld [vmem:[#allocation2 + $0x18] sm:$0xff] }
 0x1ce   : > { %1093 = vst.msk [vmem:[#allocation2 + $0x10] sm:$0xe] %vm1092_vm7, %v1090_v51  ;;  %2551 = vmatprep.subr.mxu0 %v2438_v52  ;;  %2815 = vmatprep.subr.mxu1 %v2438_v52 }
 0x1d0   : > { %v799_v53 = vpop.permute.xlu1 %798 }
 0x1d1   : > { %805 = vst.msk [vmem:[#allocation2] sm:$0xc0] %vm804_vm10, %v799_v53  ;;  %v1602_v54 = vpop.permute.xlu0 %1601 }
 0x1d2   : > { %1608 = vst.msk [vmem:[#allocation2 + $0x10] sm:$0x80] %vm1607_vm11, %v1602_v54 }
 0x1d4   : > { %v818_v55 = vpop.permute.xlu1 %817 }
 0x1d5   : > { %824 = vst.msk [vmem:[#allocation2] sm:$0xc0] %vm823_vm12, %v818_v55  ;;  %v958_v56 = vpop.permute.xlu0 %957 }
 0x1d6   : > { %963 = vst.msk [vmem:[#allocation2 + $0x8] sm:$0xc0] %vm823_vm12, %v958_v56 }
 0x1d9   : > { %v2437_v57 = vld [vmem:[#allocation2 + $0x10] sm:$0xff] }
 0x1da   : > { %2552 = vmatpush1.msra.mxu0 %v2437_v57  ;;  %2819 = vmatpush1.msra.mxu1 %v2437_v57 }
 0x1dc   : > { %v2435_v58 = vld [vmem:[#allocation2] sm:$0xff] }
 0x1dd   : > { %v2436_v59 = vld [vmem:[#allocation2 + $0x8] sm:$0xff] }
 0x1de   : > { %2553 = vmatprep.subr.mxu0 %v2436_v59  ;;  %2816 = vmatprep.subr.mxu1 %v2436_v59 }
 0x1df   : > { %2554 = vmatpush1.msra.mxu0 %v2435_v58  ;;  %2820 = vmatpush1.msra.mxu1 %v2435_v58 }
 0x1e0   : > { %2799 = vmatmul.mubr.msk.f32.vlgmr.msra.gmra.mxu0 %vm2491_vm9, %v2427_v60  ;;  %2803 = vmatmul.mubr.msk.f32.vlgmr.msra.gmra.mxu1 %vm2491_vm9, %v2431_v61 }
 0x1e1   : > { %2593 = vmatprep.mubr.f32.mxu0 %v2983_v0  ;;  %2617 = vmatprep.mubr.f32.mxu1 %v2983_v0  ;;  %v2459_v5 = vpop.permute.xlu1 %2458 }
 0x1e2   : > { %v2454_v6 = vpop.permute.xlu0 %2453 }
 0x1e4   : > { %2800 = vmatmul.mubr.msk.f32.gmra.mxu0 %vm2491_vm9, %v2428_v62  ;;  %2804 = vmatmul.mubr.msk.f32.gmra.mxu1 %vm2491_vm9, %v2432_v63 }
 0x1e5   : > { %2599 = vmatprep.mubr.f32.mxu0 %v2983_v0  ;;  %2623 = vmatprep.mubr.f32.mxu1 %v2983_v0  ;;  %v2464_v7 = vpop.permute.xlu1 %2463 }
 0x1e6   : > { %v4136_v8 = vpop.permute.xlu0 %2468 }
 0x1e8   : > { %2801 = vmatmul.mubr.msk.f32.gmra.mxu0 %vm2491_vm9, %v2429_v1  ;;  %2805 = vmatmul.mubr.msk.f32.gmra.mxu1 %vm2491_vm9, %v2433_v2 }
 0x1e9   : > { %2605 = vmatprep.mubr.f32.mxu0 %v2983_v0  ;;  %2629 = vmatprep.mubr.f32.mxu1 %v2983_v0  ;;  %v2474_v9 = vpop.permute.xlu1 %2473 }
 0x1ea   : > { %v2479_v15 = vpop.permute.xlu0 %2478 }
 0x1ec   : > { %2802 = vmatmul.mubr.msk.f32.gmra.mxu0 %vm2491_vm9, %v2430_v3  ;;  %2806 = vmatmul.mubr.msk.f32.gmra.mxu1 %vm2491_vm9, %v2434_v4 }
 0x1ed   : > { %v2484_v28 = vpop.permute.xlu1 %2483 }
 0x1ee   : > { %v2489_v41 = vpop.permute.xlu0 %2488 }
 0x2a0   : > { %v2589_v0 = vpop.f32.mrf.mxu0  ;;  %v2613_v10 = vpop.f32.mrf.mxu1 }
 0x2a1   : > { %v2590_v11 = vadd.f32 %v2589_v0, %v2454_v6  ;;  %v2614_v12 = vadd.f32 %v2613_v10, %v2474_v9 }
 0x2a2   : > { %v2591_v13 = vpop.f32.mrf.mxu0  ;;  %v2615_v14 = vpop.f32.mrf.mxu1 }
 0x2a3   : > { %v2636_v16 = vmax.f32 %v2590_v11, 0.0  ;;  %v2644_v17 = vmax.f32 %v2614_v12, 0.0  ;;  %v2592_v18 = vadd.f32 %v2591_v13, %v2454_v6  ;;  %v2616_v19 = vadd.f32 %v2615_v14, %v2474_v9 }
 0x2a4   : > { %v2595_v20 = vpop.f32.mrf.mxu0  ;;  %v2619_v21 = vpop.f32.mrf.mxu1 }
 0x2a5   : > { %2652 = vst [vmem:[%s4140_s19] sm:$0xff] %v2636_v16  ;;  %2660 = vst [vmem:[%s4140_s19 + $0x40] sm:$0xff] %v2644_v17  ;;  %v2637_v22 = vmax.f32 %v2592_v18, 0.0  ;;  %v2645_v23 = vmax.f32 %v2616_v19, 0.0  ;;  %v2596_v24 = vadd.f32 %v2595_v20, %v2459_v5  ;;  %v2620_v25 = vadd.f32 %v2619_v21, %v2479_v15 }
 0x2a6   : > { %v2597_v26 = vpop.f32.mrf.mxu0  ;;  %v2621_v27 = vpop.f32.mrf.mxu1 }
 0x2a7   : > { %2653 = vst [vmem:[%s4140_s19 + $0x8] sm:$0xff] %v2637_v22  ;;  %2661 = vst [vmem:[%s4140_s19 + $0x48] sm:$0xff] %v2645_v23  ;;  %v2638_v29 = vmax.f32 %v2596_v24, 0.0  ;;  %v2646_v30 = vmax.f32 %v2620_v25, 0.0  ;;  %v2598_v31 = vadd.f32 %v2597_v26, %v2459_v5  ;;  %v2622_v32 = vadd.f32 %v2621_v27, %v2479_v15 }
 0x2a8   : > { %v2601_v33 = vpop.f32.mrf.mxu0  ;;  %v2625_v34 = vpop.f32.mrf.mxu1 }
 0x2a9   : > { %2654 = vst [vmem:[%s4140_s19 + $0x10] sm:$0xff] %v2638_v29  ;;  %2662 = vst [vmem:[%s4140_s19 + $0x50] sm:$0xff] %v2646_v30  ;;  %v2639_v35 = vmax.f32 %v2598_v31, 0.0  ;;  %v2647_v36 = vmax.f32 %v2622_v32, 0.0  ;;  %v2602_v37 = vadd.f32 %v2601_v33, %v2464_v7  ;;  %v2626_v38 = vadd.f32 %v2625_v34, %v2484_v28 }
 0x2aa   : > { %v2603_v39 = vpop.f32.mrf.mxu0  ;;  %v2627_v40 = vpop.f32.mrf.mxu1 }
 0x2ab   : > { %2655 = vst [vmem:[%s4140_s19 + $0x18] sm:$0xff] %v2639_v35  ;;  %2663 = vst [vmem:[%s4140_s19 + $0x58] sm:$0xff] %v2647_v36  ;;  %v2640_v42 = vmax.f32 %v2602_v37, 0.0  ;;  %v2648_v43 = vmax.f32 %v2626_v38, 0.0  ;;  %v2604_v44 = vadd.f32 %v2603_v39, %v2464_v7  ;;  %v2628_v45 = vadd.f32 %v2627_v40, %v2484_v28 }
 0x2ac   : > { %v2607_v46 = vpop.f32.mrf.mxu0  ;;  %v2631_v47 = vpop.f32.mrf.mxu1 }
 0x2ad   : > { %2656 = vst [vmem:[%s4140_s19 + $0x20] sm:$0xff] %v2640_v42  ;;  %2664 = vst [vmem:[%s4140_s19 + $0x60] sm:$0xff] %v2648_v43  ;;  %v2641_v48 = vmax.f32 %v2604_v44, 0.0  ;;  %v2649_v49 = vmax.f32 %v2628_v45, 0.0  ;;  %v2608_v50 = vadd.f32 %v2607_v46, %v4136_v8  ;;  %v2632_v51 = vadd.f32 %v2631_v47, %v2489_v41 }
 0x2ae   : > { %v2609_v52 = vpop.f32.mrf.mxu0  ;;  %v2633_v53 = vpop.f32.mrf.mxu1 }
 0x2af   : > { %2657 = vst [vmem:[%s4140_s19 + $0x28] sm:$0xff] %v2641_v48  ;;  %2665 = vst [vmem:[%s4140_s19 + $0x68] sm:$0xff] %v2649_v49  ;;  %v2642_v54 = vmax.f32 %v2608_v50, 0.0  ;;  %v2650_v55 = vmax.f32 %v2632_v51, 0.0  ;;  %v2610_v56 = vadd.f32 %v2609_v52, %v4136_v8  ;;  %v2634_v57 = vadd.f32 %v2633_v53, %v2489_v41 }
 0x2b1   : > { %2658 = vst [vmem:[%s4140_s19 + $0x30] sm:$0xff] %v2642_v54  ;;  %2666 = vst [vmem:[%s4140_s19 + $0x70] sm:$0xff] %v2650_v55  ;;  %v2643_v58 = vmax.f32 %v2610_v56, 0.0  ;;  %v2651_v59 = vmax.f32 %v2634_v57, 0.0 }
 0x2b3   : > { %2659 = vst [vmem:[%s4140_s19 + $0x38] sm:$0xff] %v2643_v58  ;;  %2667 = vst [vmem:[%s4140_s19 + $0x78] sm:$0xff] %v2651_v59 }
 0x2b4   : > { %2918 = shalt.err (!%p2915_p5)
}
 0x2b5   : > { %s2919_s4 = scalar_lea.hbm %s4161_s28, 2048  ;;  %s2923_s11 = scalar_lea.hbm %s4220_s3, 4096 }
 0x2b6   : > { %p2920_p6 = scmp.ne.s32.totalorder %s4161_s28, %s2919_s4  ;;  %p2924_p10 = scmp.lt.s32.totalorder %s4161_s28, %s4220_s3 }
 0x2b7   : > { %p2925_p11 = scmp.lt.s32.totalorder %s2923_s11, %s2919_s4 }
 0x2b8   : > { %p2921_p7 = pnand %p2920_p6, %p3070_p4 }
 0x2b9   : > { %p2926_p12 = por %p2925_p11, %p2924_p10 }
 0x2ba   : > { %p2922_p9 = pneg %p2921_p7 }
 0x2bc   : > { %p2927_p13 = pnand %p2926_p12, %p2922_p9 }
 0x2be   : > { %2930 = shalt.err (!%p2927_p13)
}
 0x2bf   : > { %s3009_s19 = smov 256  }
 0x2c0   : > { %2822 = dma.vmem_to_hbm [thread:$0]  (%p3070_p4), %s4165_s23, 2048, %s4161_s28, %s4171_s15, %s3009_s19, %s3009_s19, %s2992_s18  }
 0x2c1 PF: > { %p2828_p0 = scmp.ge.s32.totalorder %s2981_s17, 2  ;;  %s2700_s21 = sand.u32 1, %s2961_s12  }
 0x2c2   : > { %s2701_s26 = scalar_lea.sflag [#allocation4], %s2700_s21 }
 0x2c3   : > { %p2825_p1 = pnand %p2828_p0, %p3077_p8 }
 0x2c5   : > { %p2826_p2 = pneg %p2825_p1 }
 0x2c7   : > { %2956 = dma.done.wait (%p2826_p2), %s2701_s26, 2048  }
 0x2c8   : > { %2958 = vsyncadd (%p2826_p2), %s2701_s26, 4294965248  ;;  %s16_s17 = sadd.s32 1, %s2981_s17   ;;  %s4234_s12 = smov %s2965_s13 }
 0x2c9   : > { %p13_p3 = scmp.ge.s32.totalorder %s16_s17, 4   ;;  %s4235_s13 = smov %s2969_s14 }
 0x2ca   : > { %s4236_s14 = smov %s3083_s25  ;;  %s4237_s15 = smov %s2977_s16 }
 0x2cb   : > { %s4238_s16 = smov %s4240_s20  ;;  %15 = sbr.rel (!%p13_p3) target bundleno = 4 (0x4), region = 77 }
 0x2d0   :  { %2706 = vsyncpa [#allocation4], 1 }
 0x2d1   :  { %2708 = vsyncpa [#allocation4 + $0x1], 1 }

</bundles_post_ra>
